<compile_context>
chip_gen: v7x
topology: tpu7x:2x2x1
jax: 0.10.0
libtpu: 0.0.40
codegen_flags: <defaults>
</compile_context>

<pallas_src>
import functools
import math

import jax
import jax.numpy as jnp
import numpy as np
from jax import lax
from jax.experimental import pallas as pl
from jax.experimental.pallas import tpu as pltpu


SB = 8  # images per inner fori_loop iteration (multiple of 8 sublanes)


def _mdot(a, b):
    """MXU matmul: bf16 operands, f32 accumulation."""
    return jnp.dot(a.astype(jnp.bfloat16), b.astype(jnp.bfloat16),
                   preferred_element_type=jnp.float32)


# ---------------------------------------------------------------------------
# Fused Pallas kernel: whole Net3 forward, block_b images per grid step.
# ---------------------------------------------------------------------------
def _net3_kernel(
    x_ref,                       # (BB, 28, 28) f32 input images
    t1_ref, b1_ref,              # conv1 Toeplitz (5,28,120) bf16, bias (1,120) f32
    r1s_ref, c1s_ref,            # pool1 row sel (2,SB*16,SB*24), col sel (2,120,60) bf16
    t2_ref, b2_ref,              # conv2 Toeplitz (5,60,160) bf16, bias (1,160) f32
    r2s_ref, c2s_ref,            # pool2 row sel (2,SB*4,SB*8), col sel (2,160,80) bf16
    hsel_ref,                    # fc1 per-row gather selectors (4, SB, SB*4) bf16
    wf1_ref, bf1_ref,            # fc1 packed (4,80,30) bf16, bias (1,30) f32
    wf2_ref, bf2_ref,            # fc2 packed (30,10) bf16, bias (1,10) f32
    o_ref,                       # (BB, 10) f32 log-probabilities
):
    n_sub = x_ref.shape[0] // SB

    def sub_batch(s, carry):
        base = pl.multiple_of(s * SB, SB)
        xs = x_ref[pl.ds(base, SB), :, :]             # (SB, 28, 28) f32

        # ---- conv1 (k=5, 1->5): 5 Toeplitz taps, M = SB*24 = 192 ---------
        # merged rows r = b*24 + ho, lanes = input col wi (28)
        acc1 = _mdot(xs[:, 0:24, :].reshape(SB * 24, 28), t1_ref[0])
        for dy in range(1, 5):
            acc1 = acc1 + _mdot(xs[:, dy:dy + 24, :].reshape(SB * 24, 28),
                                t1_ref[dy])
        y1 = acc1 + b1_ref[...]                       # (192, 120), lanes co*24+wo

        # ---- pool1: 2x2 max + ReLU via 0/1 selector matmuls ---------------
        # rows b*24 + 2j(+1) -> b*16 + j  (rows 12..15 per image are zero pad)
        r1 = jnp.maximum(_mdot(r1s_ref[0], y1), _mdot(r1s_ref[1], y1))  # (128,120)
        p1 = jnp.maximum(_mdot(r1, c1s_ref[0]), _mdot(r1, c1s_ref[1]))  # (128, 60)
        p1 = jnp.maximum(p1, 0.0)                     # lanes ci*12 + wj
        p1 = p1.reshape(SB, 16, 60)                   # layout-preserving (16 % 8 == 0)

        # ---- conv2 (k=5, 5->20): 5 Toeplitz taps, M = SB*8 = 64 -----------
        # TODO(synk): Dropout2d is stochastic; treated as identity (eval mode).
        acc2 = _mdot(p1[:, 0:8, :].reshape(SB * 8, 60), t2_ref[0])
        for dy in range(1, 5):
            acc2 = acc2 + _mdot(p1[:, dy:dy + 8, :].reshape(SB * 8, 60),
                                t2_ref[dy])
        y2 = acc2 + b2_ref[...]                       # (64, 160), lanes co*8+wo

        # ---- pool2: 2x2 max + ReLU -> (SB*4, 80), lanes co*4 + w ----------
        r2 = jnp.maximum(_mdot(r2s_ref[0], y2), _mdot(r2s_ref[1], y2))  # (32,160)
        p2 = jnp.maximum(_mdot(r2, c2s_ref[0]), _mdot(r2, c2s_ref[1]))  # (32, 80)
        p2 = jnp.maximum(p2, 0.0)

        # ---- fc1 (320 -> 30): per-image row gather (view(-1,320)) + matmul -
        z = _mdot(_mdot(hsel_ref[0], p2), wf1_ref[0])                   # (SB, 30)
        for h in range(1, 4):
            z = z + _mdot(_mdot(hsel_ref[h], p2), wf1_ref[h])
        z = jnp.maximum(z + bf1_ref[...], 0.0)
        # TODO(synk): F.dropout is stochastic; treated as identity (eval mode).

        # ---- fc2 (30 -> 10) + log_softmax ----------------------------------
        z2 = _mdot(z, wf2_ref[...]) + bf2_ref[...]                      # (SB, 10)
        m = jnp.max(z2, axis=-1, keepdims=True)
        sh = z2 - m
        lse = jnp.log(jnp.sum(jnp.exp(sh), axis=-1, keepdims=True))
        o_ref[pl.ds(base, SB), :] = (sh - lse).astype(o_ref.dtype)
        return carry

    lax.fori_loop(0, n_sub, sub_batch, 0)


# ---------------------------------------------------------------------------
# One-time weight packing (Toeplitz conv weights, pool/gather selectors, fc)
# ---------------------------------------------------------------------------
_CONST_ORDER = ("t1", "b1", "r1s", "c1s", "t2", "b2", "r2s", "c2s",
                "hsel", "wf1", "bf1", "wf2", "bf2")


def pack_params(p):
    f32 = np.float32
    w1 = np.asarray(p["conv1_w"], f32); b1 = np.asarray(p["conv1_b"], f32)
    w2 = np.asarray(p["conv2_w"], f32); b2 = np.asarray(p["conv2_b"], f32)
    wf1 = np.asarray(p["fc1_w"], f32); bf1 = np.asarray(p["fc1_b"], f32)
    wf2 = np.asarray(p["fc2_w"], f32); bf2 = np.asarray(p["fc2_b"], f32)

    # conv1 Toeplitz: t1[dy, wi, co*24+wo] = w1[co,0,dy,wi-wo] (0 <= wi-wo <= 4)
    place1 = np.zeros((5, 28, 24), f32)
    for dx in range(5):
        place1[dx, dx + np.arange(24), np.arange(24)] = 1.0
    t1 = np.einsum("oyx,xjw->yjow", w1[:, 0], place1).reshape(5, 28, 120)

    # conv2 Toeplitz: t2[dy, ci*12+j, co*8+wo] = w2[co,ci,dy,j-wo]
    place2 = np.zeros((5, 12, 8), f32)
    for dx in range(5):
        place2[dx, dx + np.arange(8), np.arange(8)] = 1.0
    t2 = np.einsum("ocyx,xjw->ycjow", w2, place2).reshape(5, 60, 160)

    b1row = np.repeat(b1, 24).reshape(1, 120)
    b2row = np.repeat(b2, 8).reshape(1, 160)

    # fc1 packed per flatten-row h: wf1p[h, co*4+w, k] = Wf1[k, co*16 + h*4 + w]
    wf1p = np.transpose(wf1.reshape(30, 20, 4, 4), (2, 1, 3, 0)).reshape(4, 80, 30)
    wf2p = wf2.T                                   # (30, 10)

    # ---- 0/1 selector matrices (block-diagonal over the SB sub-batch) ----
    def row_pool_sel(h_in, h_pad, parity):
        # (SB*h_pad, SB*h_in): input row b*h_in + 2j + parity -> b*h_pad + j
        h_out = h_in // 2
        m = np.zeros((SB * h_pad, SB * h_in), f32)
        for b in range(SB):
            j = np.arange(h_out)
            m[b * h_pad + j, b * h_in + 2 * j + parity] = 1.0
        return m

    def col_pool_sel(nchan, w_out, parity):
        m = np.zeros((nchan * 2 * w_out, nchan * w_out), f32)
        for c in range(nchan):
            w = np.arange(w_out)
            m[c * 2 * w_out + 2 * w + parity, c * w_out + w] = 1.0
        return m

    r1s = np.stack([row_pool_sel(24, 16, 0), row_pool_sel(24, 16, 1)])  # (2,128,192)
    c1s = np.stack([col_pool_sel(5, 12, 0), col_pool_sel(5, 12, 1)])    # (2,120,60)
    r2s = np.stack([row_pool_sel(8, 4, 0), row_pool_sel(8, 4, 1)])      # (2,32,64)
    c2s = np.stack([col_pool_sel(20, 4, 0), col_pool_sel(20, 4, 1)])    # (2,160,80)

    # fc1 row gather: hsel[h][b, b*4+h] = 1  (picks flatten-row h of image b)
    hsel = np.zeros((4, SB, SB * 4), f32)
    for h in range(4):
        hsel[h, np.arange(SB), np.arange(SB) * 4 + h] = 1.0

    bf16 = jnp.bfloat16
    return dict(
        t1=jnp.asarray(t1, bf16), b1=jnp.asarray(b1row),
        r1s=jnp.asarray(r1s, bf16), c1s=jnp.asarray(c1s, bf16),
        t2=jnp.asarray(t2, bf16), b2=jnp.asarray(b2row),
        r2s=jnp.asarray(r2s, bf16), c2s=jnp.asarray(c2s, bf16),
        hsel=jnp.asarray(hsel, bf16),
        wf1=jnp.asarray(wf1p, bf16), bf1=jnp.asarray(bf1.reshape(1, 30)),
        wf2=jnp.asarray(wf2p, bf16), bf2=jnp.asarray(bf2.reshape(1, 10)),
    )


# ---------------------------------------------------------------------------
# Forward wrapper: one fused pallas_call, batch-blocked grid
# ---------------------------------------------------------------------------
def net3_forward(x, pk, *, block_b=32):
    """x: (N, 1, 28, 28) float32 -> (N, 10) float32 log-probabilities."""
    assert block_b % SB == 0
    n = x.shape[0]
    x2d = x.reshape(n, 28, 28).astype(jnp.float32)

    bb = min(block_b, -(-n // SB) * SB)       # images per grid step (multiple of SB)
    n_pad = -(-n // bb) * bb
    if n_pad != n:                            # pad batch with zero images
        pad = jnp.zeros((n_pad - n, 28, 28), x2d.dtype)
        x2d = jnp.concatenate([x2d, pad], axis=0)

    consts = [pk[k] for k in _CONST_ORDER]

    def const_spec(a):
        return pl.BlockSpec(a.shape, lambda i, _nd=a.ndim: (0,) * _nd)

    out = pl.pallas_call(
        _net3_kernel,
        out_shape=jax.ShapeDtypeStruct((n_pad, 10), jnp.float32),
        grid=(n_pad // bb,),
        in_specs=[pl.BlockSpec((bb, 28, 28), lambda i: (i, 0, 0))]
        + [const_spec(a) for a in consts],
        out_specs=pl.BlockSpec((bb, 10), lambda i: (i, 0)),
        compiler_params=pltpu.CompilerParams(
            dimension_semantics=("parallel",)),
    )(x2d, *consts)
    return out[:n]


# ---------------------------------------------------------------------------
# Pure-JAX reference (for correctness check)
# ---------------------------------------------------------------------------
def net3_reference(x, p):
    def conv(y, w, b):
        y = lax.conv_general_dilated(
            y, w, (1, 1), "VALID", dimension_numbers=("NCHW", "OIHW", "NCHW"))
        return y + b[None, :, None, None]

    def pool(y):
        return lax.reduce_window(
            y, -jnp.inf, lax.max, (1, 1, 2, 2), (1, 1, 2, 2), "VALID")

    y = jax.nn.relu(pool(conv(x, p["conv1_w"], p["conv1_b"])))
    y = jax.nn.relu(pool(conv(y, p["conv2_w"], p["conv2_b"])))
    y = y.reshape(-1, 320)
    y = jax.nn.relu(y @ p["fc1_w"].T + p["fc1_b"])
    y = y @ p["fc2_w"].T + p["fc2_b"]
    return jax.nn.log_softmax(y, axis=-1)


# ---------------------------------------------------------------------------
# Deterministic parameter init (PyTorch-style uniform bounds)
# ---------------------------------------------------------------------------
def init_params(key):
    def uinit(k, shape, fan_in):
        bound = 1.0 / math.sqrt(fan_in)
        return jax.random.uniform(k, shape, jnp.float32, -bound, bound)

    ks = jax.random.split(key, 8)
    return {
        "conv1_w": uinit(ks[0], (5, 1, 5, 5), 1 * 25),
        "conv1_b": uinit(ks[1], (5,), 1 * 25),
        "conv2_w": uinit(ks[2], (20, 5, 5, 5), 5 * 25),
        "conv2_b": uinit(ks[3], (20,), 5 * 25),
        "fc1_w": uinit(ks[4], (30, 320), 320),
        "fc1_b": uinit(ks[5], (30,), 320),
        "fc2_w": uinit(ks[6], (10, 30), 30),
        "fc2_b": uinit(ks[7], (10,), 30),
    }


if __name__ == "__main__":
    key = jax.random.PRNGKey(0)
    pkey, xkey = jax.random.split(key)
    params = init_params(pkey)

    # Shape dictated by the module's view(-1, 320): (N, 1, 28, 28).
    # N=20 with block_b=8 exercises multiple grid steps + batch padding.
    n = 20
    x = jax.random.normal(xkey, (n, 1, 28, 28), jnp.float32)

    packed = pack_params(params)                       # one-time weight packing
    fwd = jax.jit(functools.partial(net3_forward, block_b=8))
    out = jax.block_until_ready(fwd(x, packed))

    ref = jax.block_until_ready(net3_reference(x, params))
    # bf16 MXU operands (f32 accumulation) vs f32 reference -> loose tolerance.
    np.testing.assert_allclose(np.asarray(out), np.asarray(ref),
                               rtol=5e-2, atol=5e-2)
    assert out.shape == (n, 10)

    print("KERNEL_OK")
</pallas_src>

<mosaic_0001>
module attributes {stable_mosaic.version = 11 : i64} {
  func.func @_net3_kernel(%arg0: i32, %arg1: memref<8x28x28xf32, #tpu.memory_space<vmem>>, %arg2: memref<5x28x120xbf16, #tpu.memory_space<vmem>>, %arg3: memref<1x120xf32, #tpu.memory_space<vmem>>, %arg4: memref<2x128x192xbf16, #tpu.memory_space<vmem>>, %arg5: memref<2x120x60xbf16, #tpu.memory_space<vmem>>, %arg6: memref<5x60x160xbf16, #tpu.memory_space<vmem>>, %arg7: memref<1x160xf32, #tpu.memory_space<vmem>>, %arg8: memref<2x32x64xbf16, #tpu.memory_space<vmem>>, %arg9: memref<2x160x80xbf16, #tpu.memory_space<vmem>>, %arg10: memref<4x8x32xbf16, #tpu.memory_space<vmem>>, %arg11: memref<4x80x30xbf16, #tpu.memory_space<vmem>>, %arg12: memref<1x30xf32, #tpu.memory_space<vmem>>, %arg13: memref<30x10xbf16, #tpu.memory_space<vmem>>, %arg14: memref<1x10xf32, #tpu.memory_space<vmem>>, %arg15: memref<8x10xf32, #tpu.memory_space<vmem>>) attributes {dimension_semantics = [#tpu.dimension_semantics<parallel>], iteration_bounds = array<i64: 3>, scalar_prefetch = 0 : i64, scratch_operands = 0 : i64, tpu.core_type = #tpu.core_type<tc>, window_params = [{transform_indices = @transform_0, window_bounds = array<i64: 8, 28, 28>}, {pipeline_mode = #tpu.pipeline_mode<synchronous>, transform_indices = @transform_1, window_bounds = array<i64: 5, 28, 120>}, {pipeline_mode = #tpu.pipeline_mode<synchronous>, transform_indices = @transform_2, window_bounds = array<i64: 1, 120>}, {pipeline_mode = #tpu.pipeline_mode<synchronous>, transform_indices = @transform_3, window_bounds = array<i64: 2, 128, 192>}, {pipeline_mode = #tpu.pipeline_mode<synchronous>, transform_indices = @transform_4, window_bounds = array<i64: 2, 120, 60>}, {pipeline_mode = #tpu.pipeline_mode<synchronous>, transform_indices = @transform_5, window_bounds = array<i64: 5, 60, 160>}, {pipeline_mode = #tpu.pipeline_mode<synchronous>, transform_indices = @transform_6, window_bounds = array<i64: 1, 160>}, {pipeline_mode = #tpu.pipeline_mode<synchronous>, transform_indices = @transform_7, window_bounds = array<i64: 2, 32, 64>}, {pipeline_mode = #tpu.pipeline_mode<synchronous>, transform_indices = @transform_8, window_bounds = array<i64: 2, 160, 80>}, {pipeline_mode = #tpu.pipeline_mode<synchronous>, transform_indices = @transform_9, window_bounds = array<i64: 4, 8, 32>}, {pipeline_mode = #tpu.pipeline_mode<synchronous>, transform_indices = @transform_10, window_bounds = array<i64: 4, 80, 30>}, {pipeline_mode = #tpu.pipeline_mode<synchronous>, transform_indices = @transform_11, window_bounds = array<i64: 1, 30>}, {pipeline_mode = #tpu.pipeline_mode<synchronous>, transform_indices = @transform_12, window_bounds = array<i64: 30, 10>}, {pipeline_mode = #tpu.pipeline_mode<synchronous>, transform_indices = @transform_13, window_bounds = array<i64: 1, 10>}, {transform_indices = @transform_14, window_bounds = array<i64: 8, 10>}]} {
    %c0_i32 = arith.constant 0 : i32
    %c8_i32 = arith.constant 8 : i32
    %0 = arith.muli %c0_i32, %c8_i32 : i32
    %1 = tpu.assume_multiple %0, 8 : i32
    %2 = arith.index_cast %1 : i32 to index
    %c0 = arith.constant 0 : index
    %c0_0 = arith.constant 0 : index
    %3 = vector.load %arg1[%2, %c0, %c0_0] : memref<8x28x28xf32, #tpu.memory_space<vmem>>, vector<8x28x28xf32>
    %4 = vector.extract_strided_slice %3 {offsets = [0, 0, 0], sizes = [8, 24, 28], strides = [1, 1, 1]} : vector<8x28x28xf32> to vector<8x24x28xf32>
    %5 = vector.shape_cast %4 : vector<8x24x28xf32> to vector<192x28xf32>
    %c0_1 = arith.constant 0 : index
    %c0_2 = arith.constant 0 : index
    %c0_3 = arith.constant 0 : index
    %6 = vector.load %arg2[%c0_1, %c0_2, %c0_3] : memref<5x28x120xbf16, #tpu.memory_space<vmem>>, vector<1x28x120xbf16>
    %7 = vector.shape_cast %6 : vector<1x28x120xbf16> to vector<28x120xbf16>
    %8 = arith.truncf %5 : vector<192x28xf32> to vector<192x28xbf16>
    %cst = arith.constant dense<0.000000e+00> : vector<192x120xf32>
    %9 = tpu.matmul %8, %7, %cst {dimension_numbers = #tpu.dot_dimension_numbers<[1], [0], [0], [1], [0, 0, 1, 1], [], []>} : vector<192x28xbf16>, vector<28x120xbf16>, vector<192x120xf32> -> vector<192x120xf32>
    %10 = vector.extract_strided_slice %3 {offsets = [0, 1, 0], sizes = [8, 24, 28], strides = [1, 1, 1]} : vector<8x28x28xf32> to vector<8x24x28xf32>
    %11 = vector.shape_cast %10 : vector<8x24x28xf32> to vector<192x28xf32>
    %c1 = arith.constant 1 : index
    %c0_4 = arith.constant 0 : index
    %c0_5 = arith.constant 0 : index
    %12 = vector.load %arg2[%c1, %c0_4, %c0_5] : memref<5x28x120xbf16, #tpu.memory_space<vmem>>, vector<1x28x120xbf16>
    %13 = vector.shape_cast %12 : vector<1x28x120xbf16> to vector<28x120xbf16>
    %14 = arith.truncf %11 : vector<192x28xf32> to vector<192x28xbf16>
    %cst_6 = arith.constant dense<0.000000e+00> : vector<192x120xf32>
    %15 = tpu.matmul %14, %13, %cst_6 {dimension_numbers = #tpu.dot_dimension_numbers<[1], [0], [0], [1], [0, 0, 1, 1], [], []>} : vector<192x28xbf16>, vector<28x120xbf16>, vector<192x120xf32> -> vector<192x120xf32>
    %16 = arith.addf %9, %15 : vector<192x120xf32>
    %17 = vector.extract_strided_slice %3 {offsets = [0, 2, 0], sizes = [8, 24, 28], strides = [1, 1, 1]} : vector<8x28x28xf32> to vector<8x24x28xf32>
    %18 = vector.shape_cast %17 : vector<8x24x28xf32> to vector<192x28xf32>
    %c2 = arith.constant 2 : index
    %c0_7 = arith.constant 0 : index
    %c0_8 = arith.constant 0 : index
    %19 = vector.load %arg2[%c2, %c0_7, %c0_8] : memref<5x28x120xbf16, #tpu.memory_space<vmem>>, vector<1x28x120xbf16>
    %20 = vector.shape_cast %19 : vector<1x28x120xbf16> to vector<28x120xbf16>
    %21 = arith.truncf %18 : vector<192x28xf32> to vector<192x28xbf16>
    %cst_9 = arith.constant dense<0.000000e+00> : vector<192x120xf32>
    %22 = tpu.matmul %21, %20, %cst_9 {dimension_numbers = #tpu.dot_dimension_numbers<[1], [0], [0], [1], [0, 0, 1, 1], [], []>} : vector<192x28xbf16>, vector<28x120xbf16>, vector<192x120xf32> -> vector<192x120xf32>
    %23 = arith.addf %16, %22 : vector<192x120xf32>
    %24 = vector.extract_strided_slice %3 {offsets = [0, 3, 0], sizes = [8, 24, 28], strides = [1, 1, 1]} : vector<8x28x28xf32> to vector<8x24x28xf32>
    %25 = vector.shape_cast %24 : vector<8x24x28xf32> to vector<192x28xf32>
    %c3 = arith.constant 3 : index
    %c0_10 = arith.constant 0 : index
    %c0_11 = arith.constant 0 : index
    %26 = vector.load %arg2[%c3, %c0_10, %c0_11] : memref<5x28x120xbf16, #tpu.memory_space<vmem>>, vector<1x28x120xbf16>
    %27 = vector.shape_cast %26 : vector<1x28x120xbf16> to vector<28x120xbf16>
    %28 = arith.truncf %25 : vector<192x28xf32> to vector<192x28xbf16>
    %cst_12 = arith.constant dense<0.000000e+00> : vector<192x120xf32>
    %29 = tpu.matmul %28, %27, %cst_12 {dimension_numbers = #tpu.dot_dimension_numbers<[1], [0], [0], [1], [0, 0, 1, 1], [], []>} : vector<192x28xbf16>, vector<28x120xbf16>, vector<192x120xf32> -> vector<192x120xf32>
    %30 = arith.addf %23, %29 : vector<192x120xf32>
    %31 = vector.extract_strided_slice %3 {offsets = [0, 4, 0], sizes = [8, 24, 28], strides = [1, 1, 1]} : vector<8x28x28xf32> to vector<8x24x28xf32>
    %32 = vector.shape_cast %31 : vector<8x24x28xf32> to vector<192x28xf32>
    %c4 = arith.constant 4 : index
    %c0_13 = arith.constant 0 : index
    %c0_14 = arith.constant 0 : index
    %33 = vector.load %arg2[%c4, %c0_13, %c0_14] : memref<5x28x120xbf16, #tpu.memory_space<vmem>>, vector<1x28x120xbf16>
    %34 = vector.shape_cast %33 : vector<1x28x120xbf16> to vector<28x120xbf16>
    %35 = arith.truncf %32 : vector<192x28xf32> to vector<192x28xbf16>
    %cst_15 = arith.constant dense<0.000000e+00> : vector<192x120xf32>
    %36 = tpu.matmul %35, %34, %cst_15 {dimension_numbers = #tpu.dot_dimension_numbers<[1], [0], [0], [1], [0, 0, 1, 1], [], []>} : vector<192x28xbf16>, vector<28x120xbf16>, vector<192x120xf32> -> vector<192x120xf32>
    %37 = arith.addf %30, %36 : vector<192x120xf32>
    %c0_16 = arith.constant 0 : index
    %c0_17 = arith.constant 0 : index
    %38 = vector.load %arg3[%c0_16, %c0_17] : memref<1x120xf32, #tpu.memory_space<vmem>>, vector<1x120xf32>
    %39 = vector.broadcast %38 : vector<1x120xf32> to vector<192x120xf32>
    %40 = arith.addf %37, %39 : vector<192x120xf32>
    %c0_18 = arith.constant 0 : index
    %c0_19 = arith.constant 0 : index
    %c0_20 = arith.constant 0 : index
    %41 = vector.load %arg4[%c0_18, %c0_19, %c0_20] : memref<2x128x192xbf16, #tpu.memory_space<vmem>>, vector<1x128x192xbf16>
    %42 = vector.shape_cast %41 : vector<1x128x192xbf16> to vector<128x192xbf16>
    %43 = arith.truncf %40 : vector<192x120xf32> to vector<192x120xbf16>
    %cst_21 = arith.constant dense<0.000000e+00> : vector<128x120xf32>
    %44 = tpu.matmul %42, %43, %cst_21 {dimension_numbers = #tpu.dot_dimension_numbers<[1], [0], [0], [1], [0, 0, 1, 1], [], []>} : vector<128x192xbf16>, vector<192x120xbf16>, vector<128x120xf32> -> vector<128x120xf32>
    %c1_22 = arith.constant 1 : index
    %c0_23 = arith.constant 0 : index
    %c0_24 = arith.constant 0 : index
    %45 = vector.load %arg4[%c1_22, %c0_23, %c0_24] : memref<2x128x192xbf16, #tpu.memory_space<vmem>>, vector<1x128x192xbf16>
    %46 = vector.shape_cast %45 : vector<1x128x192xbf16> to vector<128x192xbf16>
    %47 = arith.truncf %40 : vector<192x120xf32> to vector<192x120xbf16>
    %cst_25 = arith.constant dense<0.000000e+00> : vector<128x120xf32>
    %48 = tpu.matmul %46, %47, %cst_25 {dimension_numbers = #tpu.dot_dimension_numbers<[1], [0], [0], [1], [0, 0, 1, 1], [], []>} : vector<128x192xbf16>, vector<192x120xbf16>, vector<128x120xf32> -> vector<128x120xf32>
    %49 = arith.maximumf %44, %48 : vector<128x120xf32>
    %c0_26 = arith.constant 0 : index
    %c0_27 = arith.constant 0 : index
    %c0_28 = arith.constant 0 : index
    %50 = vector.load %arg5[%c0_26, %c0_27, %c0_28] : memref<2x120x60xbf16, #tpu.memory_space<vmem>>, vector<1x120x60xbf16>
    %51 = vector.shape_cast %50 : vector<1x120x60xbf16> to vector<120x60xbf16>
    %52 = arith.truncf %49 : vector<128x120xf32> to vector<128x120xbf16>
    %cst_29 = arith.constant dense<0.000000e+00> : vector<128x60xf32>
    %53 = tpu.matmul %52, %51, %cst_29 {dimension_numbers = #tpu.dot_dimension_numbers<[1], [0], [0], [1], [0, 0, 1, 1], [], []>} : vector<128x120xbf16>, vector<120x60xbf16>, vector<128x60xf32> -> vector<128x60xf32>
    %c1_30 = arith.constant 1 : index
    %c0_31 = arith.constant 0 : index
    %c0_32 = arith.constant 0 : index
    %54 = vector.load %arg5[%c1_30, %c0_31, %c0_32] : memref<2x120x60xbf16, #tpu.memory_space<vmem>>, vector<1x120x60xbf16>
    %55 = vector.shape_cast %54 : vector<1x120x60xbf16> to vector<120x60xbf16>
    %56 = arith.truncf %49 : vector<128x120xf32> to vector<128x120xbf16>
    %cst_33 = arith.constant dense<0.000000e+00> : vector<128x60xf32>
    %57 = tpu.matmul %56, %55, %cst_33 {dimension_numbers = #tpu.dot_dimension_numbers<[1], [0], [0], [1], [0, 0, 1, 1], [], []>} : vector<128x120xbf16>, vector<120x60xbf16>, vector<128x60xf32> -> vector<128x60xf32>
    %58 = arith.maximumf %53, %57 : vector<128x60xf32>
    %cst_34 = arith.constant 0.000000e+00 : f32
    %59 = vector.broadcast %cst_34 : f32 to vector<128x60xf32>
    %60 = arith.maximumf %58, %59 : vector<128x60xf32>
    %61 = vector.shape_cast %60 : vector<128x60xf32> to vector<8x16x60xf32>
    %62 = vector.extract_strided_slice %61 {offsets = [0, 0, 0], sizes = [8, 8, 60], strides = [1, 1, 1]} : vector<8x16x60xf32> to vector<8x8x60xf32>
    %63 = vector.shape_cast %62 : vector<8x8x60xf32> to vector<64x60xf32>
    %c0_35 = arith.constant 0 : index
    %c0_36 = arith.constant 0 : index
    %c0_37 = arith.constant 0 : index
    %64 = vector.load %arg6[%c0_35, %c0_36, %c0_37] : memref<5x60x160xbf16, #tpu.memory_space<vmem>>, vector<1x60x160xbf16>
    %65 = vector.shape_cast %64 : vector<1x60x160xbf16> to vector<60x160xbf16>
    %66 = arith.truncf %63 : vector<64x60xf32> to vector<64x60xbf16>
    %cst_38 = arith.constant dense<0.000000e+00> : vector<64x160xf32>
    %67 = tpu.matmul %66, %65, %cst_38 {dimension_numbers = #tpu.dot_dimension_numbers<[1], [0], [0], [1], [0, 0, 1, 1], [], []>} : vector<64x60xbf16>, vector<60x160xbf16>, vector<64x160xf32> -> vector<64x160xf32>
    %68 = vector.extract_strided_slice %61 {offsets = [0, 1, 0], sizes = [8, 8, 60], strides = [1, 1, 1]} : vector<8x16x60xf32> to vector<8x8x60xf32>
    %69 = vector.shape_cast %68 : vector<8x8x60xf32> to vector<64x60xf32>
    %c1_39 = arith.constant 1 : index
    %c0_40 = arith.constant 0 : index
    %c0_41 = arith.constant 0 : index
    %70 = vector.load %arg6[%c1_39, %c0_40, %c0_41] : memref<5x60x160xbf16, #tpu.memory_space<vmem>>, vector<1x60x160xbf16>
    %71 = vector.shape_cast %70 : vector<1x60x160xbf16> to vector<60x160xbf16>
    %72 = arith.truncf %69 : vector<64x60xf32> to vector<64x60xbf16>
    %cst_42 = arith.constant dense<0.000000e+00> : vector<64x160xf32>
    %73 = tpu.matmul %72, %71, %cst_42 {dimension_numbers = #tpu.dot_dimension_numbers<[1], [0], [0], [1], [0, 0, 1, 1], [], []>} : vector<64x60xbf16>, vector<60x160xbf16>, vector<64x160xf32> -> vector<64x160xf32>
    %74 = arith.addf %67, %73 : vector<64x160xf32>
    %75 = vector.extract_strided_slice %61 {offsets = [0, 2, 0], sizes = [8, 8, 60], strides = [1, 1, 1]} : vector<8x16x60xf32> to vector<8x8x60xf32>
    %76 = vector.shape_cast %75 : vector<8x8x60xf32> to vector<64x60xf32>
    %c2_43 = arith.constant 2 : index
    %c0_44 = arith.constant 0 : index
    %c0_45 = arith.constant 0 : index
    %77 = vector.load %arg6[%c2_43, %c0_44, %c0_45] : memref<5x60x160xbf16, #tpu.memory_space<vmem>>, vector<1x60x160xbf16>
    %78 = vector.shape_cast %77 : vector<1x60x160xbf16> to vector<60x160xbf16>
    %79 = arith.truncf %76 : vector<64x60xf32> to vector<64x60xbf16>
    %cst_46 = arith.constant dense<0.000000e+00> : vector<64x160xf32>
    %80 = tpu.matmul %79, %78, %cst_46 {dimension_numbers = #tpu.dot_dimension_numbers<[1], [0], [0], [1], [0, 0, 1, 1], [], []>} : vector<64x60xbf16>, vector<60x160xbf16>, vector<64x160xf32> -> vector<64x160xf32>
    %81 = arith.addf %74, %80 : vector<64x160xf32>
    %82 = vector.extract_strided_slice %61 {offsets = [0, 3, 0], sizes = [8, 8, 60], strides = [1, 1, 1]} : vector<8x16x60xf32> to vector<8x8x60xf32>
    %83 = vector.shape_cast %82 : vector<8x8x60xf32> to vector<64x60xf32>
    %c3_47 = arith.constant 3 : index
    %c0_48 = arith.constant 0 : index
    %c0_49 = arith.constant 0 : index
    %84 = vector.load %arg6[%c3_47, %c0_48, %c0_49] : memref<5x60x160xbf16, #tpu.memory_space<vmem>>, vector<1x60x160xbf16>
    %85 = vector.shape_cast %84 : vector<1x60x160xbf16> to vector<60x160xbf16>
    %86 = arith.truncf %83 : vector<64x60xf32> to vector<64x60xbf16>
    %cst_50 = arith.constant dense<0.000000e+00> : vector<64x160xf32>
    %87 = tpu.matmul %86, %85, %cst_50 {dimension_numbers = #tpu.dot_dimension_numbers<[1], [0], [0], [1], [0, 0, 1, 1], [], []>} : vector<64x60xbf16>, vector<60x160xbf16>, vector<64x160xf32> -> vector<64x160xf32>
    %88 = arith.addf %81, %87 : vector<64x160xf32>
    %89 = vector.extract_strided_slice %61 {offsets = [0, 4, 0], sizes = [8, 8, 60], strides = [1, 1, 1]} : vector<8x16x60xf32> to vector<8x8x60xf32>
    %90 = vector.shape_cast %89 : vector<8x8x60xf32> to vector<64x60xf32>
    %c4_51 = arith.constant 4 : index
    %c0_52 = arith.constant 0 : index
    %c0_53 = arith.constant 0 : index
    %91 = vector.load %arg6[%c4_51, %c0_52, %c0_53] : memref<5x60x160xbf16, #tpu.memory_space<vmem>>, vector<1x60x160xbf16>
    %92 = vector.shape_cast %91 : vector<1x60x160xbf16> to vector<60x160xbf16>
    %93 = arith.truncf %90 : vector<64x60xf32> to vector<64x60xbf16>
    %cst_54 = arith.constant dense<0.000000e+00> : vector<64x160xf32>
    %94 = tpu.matmul %93, %92, %cst_54 {dimension_numbers = #tpu.dot_dimension_numbers<[1], [0], [0], [1], [0, 0, 1, 1], [], []>} : vector<64x60xbf16>, vector<60x160xbf16>, vector<64x160xf32> -> vector<64x160xf32>
    %95 = arith.addf %88, %94 : vector<64x160xf32>
    %c0_55 = arith.constant 0 : index
    %c0_56 = arith.constant 0 : index
    %96 = vector.load %arg7[%c0_55, %c0_56] : memref<1x160xf32, #tpu.memory_space<vmem>>, vector<1x160xf32>
    %97 = vector.broadcast %96 : vector<1x160xf32> to vector<64x160xf32>
    %98 = arith.addf %95, %97 : vector<64x160xf32>
    %c0_57 = arith.constant 0 : index
    %c0_58 = arith.constant 0 : index
    %c0_59 = arith.constant 0 : index
    %99 = vector.load %arg8[%c0_57, %c0_58, %c0_59] : memref<2x32x64xbf16, #tpu.memory_space<vmem>>, vector<1x32x64xbf16>
    %100 = vector.shape_cast %99 : vector<1x32x64xbf16> to vector<32x64xbf16>
    %101 = arith.truncf %98 : vector<64x160xf32> to vector<64x160xbf16>
    %cst_60 = arith.constant dense<0.000000e+00> : vector<32x160xf32>
    %102 = tpu.matmul %100, %101, %cst_60 {dimension_numbers = #tpu.dot_dimension_numbers<[1], [0], [0], [1], [0, 0, 1, 1], [], []>} : vector<32x64xbf16>, vector<64x160xbf16>, vector<32x160xf32> -> vector<32x160xf32>
    %c1_61 = arith.constant 1 : index
    %c0_62 = arith.constant 0 : index
    %c0_63 = arith.constant 0 : index
    %103 = vector.load %arg8[%c1_61, %c0_62, %c0_63] : memref<2x32x64xbf16, #tpu.memory_space<vmem>>, vector<1x32x64xbf16>
    %104 = vector.shape_cast %103 : vector<1x32x64xbf16> to vector<32x64xbf16>
    %105 = arith.truncf %98 : vector<64x160xf32> to vector<64x160xbf16>
    %cst_64 = arith.constant dense<0.000000e+00> : vector<32x160xf32>
    %106 = tpu.matmul %104, %105, %cst_64 {dimension_numbers = #tpu.dot_dimension_numbers<[1], [0], [0], [1], [0, 0, 1, 1], [], []>} : vector<32x64xbf16>, vector<64x160xbf16>, vector<32x160xf32> -> vector<32x160xf32>
    %107 = arith.maximumf %102, %106 : vector<32x160xf32>
    %c0_65 = arith.constant 0 : index
    %c0_66 = arith.constant 0 : index
    %c0_67 = arith.constant 0 : index
    %108 = vector.load %arg9[%c0_65, %c0_66, %c0_67] : memref<2x160x80xbf16, #tpu.memory_space<vmem>>, vector<1x160x80xbf16>
    %109 = vector.shape_cast %108 : vector<1x160x80xbf16> to vector<160x80xbf16>
    %110 = arith.truncf %107 : vector<32x160xf32> to vector<32x160xbf16>
    %cst_68 = arith.constant dense<0.000000e+00> : vector<32x80xf32>
    %111 = tpu.matmul %110, %109, %cst_68 {dimension_numbers = #tpu.dot_dimension_numbers<[1], [0], [0], [1], [0, 0, 1, 1], [], []>} : vector<32x160xbf16>, vector<160x80xbf16>, vector<32x80xf32> -> vector<32x80xf32>
    %c1_69 = arith.constant 1 : index
    %c0_70 = arith.constant 0 : index
    %c0_71 = arith.constant 0 : index
    %112 = vector.load %arg9[%c1_69, %c0_70, %c0_71] : memref<2x160x80xbf16, #tpu.memory_space<vmem>>, vector<1x160x80xbf16>
    %113 = vector.shape_cast %112 : vector<1x160x80xbf16> to vector<160x80xbf16>
    %114 = arith.truncf %107 : vector<32x160xf32> to vector<32x160xbf16>
    %cst_72 = arith.constant dense<0.000000e+00> : vector<32x80xf32>
    %115 = tpu.matmul %114, %113, %cst_72 {dimension_numbers = #tpu.dot_dimension_numbers<[1], [0], [0], [1], [0, 0, 1, 1], [], []>} : vector<32x160xbf16>, vector<160x80xbf16>, vector<32x80xf32> -> vector<32x80xf32>
    %116 = arith.maximumf %111, %115 : vector<32x80xf32>
    %cst_73 = arith.constant 0.000000e+00 : f32
    %117 = vector.broadcast %cst_73 : f32 to vector<32x80xf32>
    %118 = arith.maximumf %116, %117 : vector<32x80xf32>
    %c0_74 = arith.constant 0 : index
    %c0_75 = arith.constant 0 : index
    %c0_76 = arith.constant 0 : index
    %119 = vector.load %arg10[%c0_74, %c0_75, %c0_76] : memref<4x8x32xbf16, #tpu.memory_space<vmem>>, vector<1x8x32xbf16>
    %120 = vector.shape_cast %119 : vector<1x8x32xbf16> to vector<8x32xbf16>
    %121 = arith.truncf %118 : vector<32x80xf32> to vector<32x80xbf16>
    %cst_77 = arith.constant dense<0.000000e+00> : vector<8x80xf32>
    %122 = tpu.matmul %120, %121, %cst_77 {dimension_numbers = #tpu.dot_dimension_numbers<[1], [0], [0], [1], [0, 0, 1, 1], [], []>} : vector<8x32xbf16>, vector<32x80xbf16>, vector<8x80xf32> -> vector<8x80xf32>
    %c0_78 = arith.constant 0 : index
    %c0_79 = arith.constant 0 : index
    %c0_80 = arith.constant 0 : index
    %123 = vector.load %arg11[%c0_78, %c0_79, %c0_80] : memref<4x80x30xbf16, #tpu.memory_space<vmem>>, vector<1x80x30xbf16>
    %124 = vector.shape_cast %123 : vector<1x80x30xbf16> to vector<80x30xbf16>
    %125 = arith.truncf %122 : vector<8x80xf32> to vector<8x80xbf16>
    %cst_81 = arith.constant dense<0.000000e+00> : vector<8x30xf32>
    %126 = tpu.matmul %125, %124, %cst_81 {dimension_numbers = #tpu.dot_dimension_numbers<[1], [0], [0], [1], [0, 0, 1, 1], [], []>} : vector<8x80xbf16>, vector<80x30xbf16>, vector<8x30xf32> -> vector<8x30xf32>
    %c1_82 = arith.constant 1 : index
    %c0_83 = arith.constant 0 : index
    %c0_84 = arith.constant 0 : index
    %127 = vector.load %arg10[%c1_82, %c0_83, %c0_84] : memref<4x8x32xbf16, #tpu.memory_space<vmem>>, vector<1x8x32xbf16>
    %128 = vector.shape_cast %127 : vector<1x8x32xbf16> to vector<8x32xbf16>
    %129 = arith.truncf %118 : vector<32x80xf32> to vector<32x80xbf16>
    %cst_85 = arith.constant dense<0.000000e+00> : vector<8x80xf32>
    %130 = tpu.matmul %128, %129, %cst_85 {dimension_numbers = #tpu.dot_dimension_numbers<[1], [0], [0], [1], [0, 0, 1, 1], [], []>} : vector<8x32xbf16>, vector<32x80xbf16>, vector<8x80xf32> -> vector<8x80xf32>
    %c1_86 = arith.constant 1 : index
    %c0_87 = arith.constant 0 : index
    %c0_88 = arith.constant 0 : index
    %131 = vector.load %arg11[%c1_86, %c0_87, %c0_88] : memref<4x80x30xbf16, #tpu.memory_space<vmem>>, vector<1x80x30xbf16>
    %132 = vector.shape_cast %131 : vector<1x80x30xbf16> to vector<80x30xbf16>
    %133 = arith.truncf %130 : vector<8x80xf32> to vector<8x80xbf16>
    %cst_89 = arith.constant dense<0.000000e+00> : vector<8x30xf32>
    %134 = tpu.matmul %133, %132, %cst_89 {dimension_numbers = #tpu.dot_dimension_numbers<[1], [0], [0], [1], [0, 0, 1, 1], [], []>} : vector<8x80xbf16>, vector<80x30xbf16>, vector<8x30xf32> -> vector<8x30xf32>
    %135 = arith.addf %126, %134 : vector<8x30xf32>
    %c2_90 = arith.constant 2 : index
    %c0_91 = arith.constant 0 : index
    %c0_92 = arith.constant 0 : index
    %136 = vector.load %arg10[%c2_90, %c0_91, %c0_92] : memref<4x8x32xbf16, #tpu.memory_space<vmem>>, vector<1x8x32xbf16>
    %137 = vector.shape_cast %136 : vector<1x8x32xbf16> to vector<8x32xbf16>
    %138 = arith.truncf %118 : vector<32x80xf32> to vector<32x80xbf16>
    %cst_93 = arith.constant dense<0.000000e+00> : vector<8x80xf32>
    %139 = tpu.matmul %137, %138, %cst_93 {dimension_numbers = #tpu.dot_dimension_numbers<[1], [0], [0], [1], [0, 0, 1, 1], [], []>} : vector<8x32xbf16>, vector<32x80xbf16>, vector<8x80xf32> -> vector<8x80xf32>
    %c2_94 = arith.constant 2 : index
    %c0_95 = arith.constant 0 : index
    %c0_96 = arith.constant 0 : index
    %140 = vector.load %arg11[%c2_94, %c0_95, %c0_96] : memref<4x80x30xbf16, #tpu.memory_space<vmem>>, vector<1x80x30xbf16>
    %141 = vector.shape_cast %140 : vector<1x80x30xbf16> to vector<80x30xbf16>
    %142 = arith.truncf %139 : vector<8x80xf32> to vector<8x80xbf16>
    %cst_97 = arith.constant dense<0.000000e+00> : vector<8x30xf32>
    %143 = tpu.matmul %142, %141, %cst_97 {dimension_numbers = #tpu.dot_dimension_numbers<[1], [0], [0], [1], [0, 0, 1, 1], [], []>} : vector<8x80xbf16>, vector<80x30xbf16>, vector<8x30xf32> -> vector<8x30xf32>
    %144 = arith.addf %135, %143 : vector<8x30xf32>
    %c3_98 = arith.constant 3 : index
    %c0_99 = arith.constant 0 : index
    %c0_100 = arith.constant 0 : index
    %145 = vector.load %arg10[%c3_98, %c0_99, %c0_100] : memref<4x8x32xbf16, #tpu.memory_space<vmem>>, vector<1x8x32xbf16>
    %146 = vector.shape_cast %145 : vector<1x8x32xbf16> to vector<8x32xbf16>
    %147 = arith.truncf %118 : vector<32x80xf32> to vector<32x80xbf16>
    %cst_101 = arith.constant dense<0.000000e+00> : vector<8x80xf32>
    %148 = tpu.matmul %146, %147, %cst_101 {dimension_numbers = #tpu.dot_dimension_numbers<[1], [0], [0], [1], [0, 0, 1, 1], [], []>} : vector<8x32xbf16>, vector<32x80xbf16>, vector<8x80xf32> -> vector<8x80xf32>
    %c3_102 = arith.constant 3 : index
    %c0_103 = arith.constant 0 : index
    %c0_104 = arith.constant 0 : index
    %149 = vector.load %arg11[%c3_102, %c0_103, %c0_104] : memref<4x80x30xbf16, #tpu.memory_space<vmem>>, vector<1x80x30xbf16>
    %150 = vector.shape_cast %149 : vector<1x80x30xbf16> to vector<80x30xbf16>
    %151 = arith.truncf %148 : vector<8x80xf32> to vector<8x80xbf16>
    %cst_105 = arith.constant dense<0.000000e+00> : vector<8x30xf32>
    %152 = tpu.matmul %151, %150, %cst_105 {dimension_numbers = #tpu.dot_dimension_numbers<[1], [0], [0], [1], [0, 0, 1, 1], [], []>} : vector<8x80xbf16>, vector<80x30xbf16>, vector<8x30xf32> -> vector<8x30xf32>
    %153 = arith.addf %144, %152 : vector<8x30xf32>
    %c0_106 = arith.constant 0 : index
    %c0_107 = arith.constant 0 : index
    %154 = vector.load %arg12[%c0_106, %c0_107] : memref<1x30xf32, #tpu.memory_space<vmem>>, vector<1x30xf32>
    %155 = vector.broadcast %154 : vector<1x30xf32> to vector<8x30xf32>
    %156 = arith.addf %153, %155 : vector<8x30xf32>
    %cst_108 = arith.constant 0.000000e+00 : f32
    %157 = vector.broadcast %cst_108 : f32 to vector<8x30xf32>
    %158 = arith.maximumf %156, %157 : vector<8x30xf32>
    %c0_109 = arith.constant 0 : index
    %c0_110 = arith.constant 0 : index
    %159 = vector.load %arg13[%c0_109, %c0_110] : memref<30x10xbf16, #tpu.memory_space<vmem>>, vector<30x10xbf16>
    %160 = arith.truncf %158 : vector<8x30xf32> to vector<8x30xbf16>
    %cst_111 = arith.constant dense<0.000000e+00> : vector<8x10xf32>
    %161 = tpu.matmul %160, %159, %cst_111 {dimension_numbers = #tpu.dot_dimension_numbers<[1], [0], [0], [1], [0, 0, 1, 1], [], []>} : vector<8x30xbf16>, vector<30x10xbf16>, vector<8x10xf32> -> vector<8x10xf32>
    %c0_112 = arith.constant 0 : index
    %c0_113 = arith.constant 0 : index
    %162 = vector.load %arg14[%c0_112, %c0_113] : memref<1x10xf32, #tpu.memory_space<vmem>>, vector<1x10xf32>
    %163 = vector.broadcast %162 : vector<1x10xf32> to vector<8x10xf32>
    %164 = arith.addf %161, %163 : vector<8x10xf32>
    %cst_114 = arith.constant dense<0xFF800000> : vector<8xf32>
    %165 = vector.multi_reduction <maximumf>, %164, %cst_114 [1] : vector<8x10xf32> to vector<8xf32>
    %166 = vector.shape_cast %165 : vector<8xf32> to vector<8x1xf32>
    %167 = vector.broadcast %166 : vector<8x1xf32> to vector<8x10xf32>
    %168 = arith.subf %164, %167 : vector<8x10xf32>
    %169 = math.exp %168 : vector<8x10xf32>
    %cst_115 = arith.constant dense<0.000000e+00> : vector<8xf32>
    %170 = vector.multi_reduction <add>, %169, %cst_115 [1] : vector<8x10xf32> to vector<8xf32>
    %171 = vector.shape_cast %170 : vector<8xf32> to vector<8x1xf32>
    %172 = math.log %171 : vector<8x1xf32>
    %173 = vector.broadcast %172 : vector<8x1xf32> to vector<8x10xf32>
    %174 = arith.subf %168, %173 : vector<8x10xf32>
    %175 = arith.index_cast %1 : i32 to index
    %c0_116 = arith.constant 0 : index
    %176 = vector.load %arg15[%175, %c0_116] : memref<8x10xf32, #tpu.memory_space<vmem>>, vector<8x10xf32>
    tpu.vector_store %arg15[%175, %c0_116], %174 {strides = array<i32>} : memref<8x10xf32, #tpu.memory_space<vmem>>, vector<8x10xf32>,
    %c1_i32 = arith.constant 1 : i32
    return
  }
  func.func @transform_0(%arg0: i32) -> (i32, i32, i32) {
    %c0_i32 = arith.constant 0 : i32
    %c0_i32_0 = arith.constant 0 : i32
    %c0_i32_1 = arith.constant 0 : i32
    return %arg0, %c0_i32, %c0_i32_0 : i32, i32, i32
  }
  func.func @transform_1(%arg0: i32) -> (i32, i32, i32) {
    %c0_i32 = arith.constant 0 : i32
    %c0_i32_0 = arith.constant 0 : i32
    %c0_i32_1 = arith.constant 0 : i32
    %c0_i32_2 = arith.constant 0 : i32
    return %c0_i32, %c0_i32_0, %c0_i32_1 : i32, i32, i32
  }
  func.func @transform_2(%arg0: i32) -> (i32, i32) {
    %c0_i32 = arith.constant 0 : i32
    %c0_i32_0 = arith.constant 0 : i32
    %c0_i32_1 = arith.constant 0 : i32
    return %c0_i32, %c0_i32_0 : i32, i32
  }
  func.func @transform_3(%arg0: i32) -> (i32, i32, i32) {
    %c0_i32 = arith.constant 0 : i32
    %c0_i32_0 = arith.constant 0 : i32
    %c0_i32_1 = arith.constant 0 : i32
    %c0_i32_2 = arith.constant 0 : i32
    return %c0_i32, %c0_i32_0, %c0_i32_1 : i32, i32, i32
  }
  func.func @transform_4(%arg0: i32) -> (i32, i32, i32) {
    %c0_i32 = arith.constant 0 : i32
    %c0_i32_0 = arith.constant 0 : i32
    %c0_i32_1 = arith.constant 0 : i32
    %c0_i32_2 = arith.constant 0 : i32
    return %c0_i32, %c0_i32_0, %c0_i32_1 : i32, i32, i32
  }
  func.func @transform_5(%arg0: i32) -> (i32, i32, i32) {
    %c0_i32 = arith.constant 0 : i32
    %c0_i32_0 = arith.constant 0 : i32
    %c0_i32_1 = arith.constant 0 : i32
    %c0_i32_2 = arith.constant 0 : i32
    return %c0_i32, %c0_i32_0, %c0_i32_1 : i32, i32, i32
  }
  func.func @transform_6(%arg0: i32) -> (i32, i32) {
    %c0_i32 = arith.constant 0 : i32
    %c0_i32_0 = arith.constant 0 : i32
    %c0_i32_1 = arith.constant 0 : i32
    return %c0_i32, %c0_i32_0 : i32, i32
  }
  func.func @transform_7(%arg0: i32) -> (i32, i32, i32) {
    %c0_i32 = arith.constant 0 : i32
    %c0_i32_0 = arith.constant 0 : i32
    %c0_i32_1 = arith.constant 0 : i32
    %c0_i32_2 = arith.constant 0 : i32
    return %c0_i32, %c0_i32_0, %c0_i32_1 : i32, i32, i32
  }
  func.func @transform_8(%arg0: i32) -> (i32, i32, i32) {
    %c0_i32 = arith.constant 0 : i32
    %c0_i32_0 = arith.constant 0 : i32
    %c0_i32_1 = arith.constant 0 : i32
    %c0_i32_2 = arith.constant 0 : i32
    return %c0_i32, %c0_i32_0, %c0_i32_1 : i32, i32, i32
  }
  func.func @transform_9(%arg0: i32) -> (i32, i32, i32) {
    %c0_i32 = arith.constant 0 : i32
    %c0_i32_0 = arith.constant 0 : i32
    %c0_i32_1 = arith.constant 0 : i32
    %c0_i32_2 = arith.constant 0 : i32
    return %c0_i32, %c0_i32_0, %c0_i32_1 : i32, i32, i32
  }
  func.func @transform_10(%arg0: i32) -> (i32, i32, i32) {
    %c0_i32 = arith.constant 0 : i32
    %c0_i32_0 = arith.constant 0 : i32
    %c0_i32_1 = arith.constant 0 : i32
    %c0_i32_2 = arith.constant 0 : i32
    return %c0_i32, %c0_i32_0, %c0_i32_1 : i32, i32, i32
  }
  func.func @transform_11(%arg0: i32) -> (i32, i32) {
    %c0_i32 = arith.constant 0 : i32
    %c0_i32_0 = arith.constant 0 : i32
    %c0_i32_1 = arith.constant 0 : i32
    return %c0_i32, %c0_i32_0 : i32, i32
  }
  func.func @transform_12(%arg0: i32) -> (i32, i32) {
    %c0_i32 = arith.constant 0 : i32
    %c0_i32_0 = arith.constant 0 : i32
    %c0_i32_1 = arith.constant 0 : i32
    return %c0_i32, %c0_i32_0 : i32, i32
  }
  func.func @transform_13(%arg0: i32) -> (i32, i32) {
    %c0_i32 = arith.constant 0 : i32
    %c0_i32_0 = arith.constant 0 : i32
    %c0_i32_1 = arith.constant 0 : i32
    return %c0_i32, %c0_i32_0 : i32, i32
  }
  func.func @transform_14(%arg0: i32) -> (i32, i32) {
    %c0_i32 = arith.constant 0 : i32
    %c0_i32_0 = arith.constant 0 : i32
    return %arg0, %c0_i32 : i32, i32
  }
}

</mosaic_0001>

<bundles_post_ra>
// kernel: net3_forward.1
= control target key start
LH: loop header
LB: loop body
LE: loop exit
PB: predicated region body
PF: predicated region fallthrough
CT: control target
= control target key end

     0   :  { %s6145_s29 = smov 0   ;;  %s7692_s0 = inlined_call_operand.vmem [shape: f32[24,28,28], index: 0, kind: input, shape index: {}]   ;;  %s7693_s1 = inlined_call_operand.vmem [shape: bf16[5,28,120], index: 1, kind: input, shape index: {}]   ;;  %s7694_s2 = inlined_call_operand.vmem [shape: f32[1,120], index: 2, kind: input, shape index: {}]   ;;  %s7695_s3 = inlined_call_operand.vmem [shape: bf16[2,128,192], index: 3, kind: input, shape index: {}]   ;;  %s7696_s4 = inlined_call_operand.vmem [shape: bf16[2,120,60], index: 4, kind: input, shape index: {}]   ;;  %s7697_s5 = inlined_call_operand.vmem [shape: bf16[5,60,160], index: 5, kind: input, shape index: {}]   ;;  %s7698_s6 = inlined_call_operand.vmem [shape: f32[1,160], index: 6, kind: input, shape index: {}]   ;;  %s7699_s7 = inlined_call_operand.vmem [shape: bf16[2,32,64], index: 7, kind: input, shape index: {}]   ;;  %s7700_s8 = inlined_call_operand.vmem [shape: bf16[2,160,80], index: 8, kind: input, shape index: {}]   ;;  %s7701_s9 = inlined_call_operand.vmem [shape: bf16[4,8,32], index: 9, kind: input, shape index: {}]   ;;  %s7702_s10 = inlined_call_operand.vmem [shape: bf16[4,80,30], index: 10, kind: input, shape index: {}]   ;;  %s7703_s11 = inlined_call_operand.vmem [shape: f32[1,30], index: 11, kind: input, shape index: {}]   ;;  %s7704_s12 = inlined_call_operand.vmem [shape: bf16[30,10], index: 12, kind: input, shape index: {}]   ;;  %s7705_s13 = inlined_call_operand.vmem [shape: f32[1,10], index: 13, kind: input, shape index: {}]   ;;  %s7706_s14 = inlined_call_operand.vmem [shape: f32[24,10], index: 14, kind: output, shape index: {}]  }
   0x1 LB: > { %s6151_s30 = sadd.s32 4294967295, %s6065_s29   ;;  %p4823_p0 = scmp.ge.s32.totalorder %s6065_s29, 1  ;;  %s6065_s29 = sphi %s6145_s29, %s24_s29  }
   0x2   : > { %p414_p1 = scmp.lt.s32.totalorder %s6065_s29, 4 }
   0x4   : > { %p415_p2 = pnand %p4823_p0, %p414_p1 }
   0x5   : > { %v5867_v0 = vld [vmem:[%s7693_s1 + $0x10] sm:$0xff] (!%p415_p2)   ;;  %vm700_vm0 = vcmask (!%p415_p2), 1045504   ;;  %v5868_v1 = vld [vmem:[%s7693_s1 + $0x18] sm:$0x3f] (!%p415_p2)   ;;  %s4824_s19 = sshll.u32 (!%p415_p2), %s6151_s30, 3  ;;  %v5869_v3 = vld [vmem:[%s7693_s1] sm:$0xff] (!%p415_p2)  }
   0x6   : > { %418 = sbr.rel (%p415_p2) target bundleno = 3137 (0xc41), region = 76  ;;  %5389 = vmatprep.subr.bf16.mxu0 (!%p415_p2), %v5867_v0  ;;  %p461_p3 = scmp.lt.s32.totalorder (!%p415_p2), %s4824_s19, 23  ;;  %v702_v2 = vsel (!%p415_p2), %vm700_vm0, %v5868_v1, 0  ;;  %vm554_vm1 = vcmask (!%p415_p2), 1046528   ;;  %vm663_vm2 = vcmask (!%p415_p2), 228352   ;;  %v6245_v44 = vld [vmem:[%s7693_s1 + $0x20] sm:$0xff] (!%p415_p2)  }
   0x7   : > { %5390 = vmatpush3.bf16.msra.mxu0 (!%p415_p2), %v5867_v0  ;;  %v5870_v38 = vld [vmem:[%s7693_s1 + $0x8] sm:$0x3f] (!%p415_p2)   ;;  %vm1312_vm3 = vcmask (!%p415_p2), 1044480   ;;  %vm1613_vm4 = vcmask (!%p415_p2), 1043456   ;;  %vm2045_vm5 = vcmask (!%p415_p2), 523264   ;;  %vm2461_vm6 = vcmask (!%p415_p2), 982016  }
   0x8   : > { %5849 = vmatprep.subr.msk.bf16.mxu0 (!%p415_p2), %vm700_vm0, %v5868_v1  ;;  %v881_v50 = vsel (!%p415_p2), %vm700_vm0, %v5870_v38, 0  ;;  %vm2890_vm7 = vcmask (!%p415_p2), 490496   ;;  %vm3956_vm8 = vcmask (!%p415_p2), 261120   ;;  %vm6069_vm9 = vmmov (!%p415_p2), 0   ;;  %p467_p4 = scmp.lt.s32.totalorder (!%p415_p2), %s6151_s30, 2 }
   0x9   : > { %vm4294_vm10 = vcmask (!%p415_p2), 654336   ;;  %vm4705_vm11 = vcmask (!%p415_p2), 244736   ;;  %vm4752_vm12 = vcmask (!%p415_p2), 80896  }
   0xb   : > { %5392 = vmatpush3.bf16.msra.mxu0 (!%p415_p2), %v702_v2 }
   0xc   : > { %5417 = vmatprep.subr.bf16.mxu0 (!%p415_p2), %v5869_v3 }
   0xd   : > { %s7708_s19 = smov (!%p461_p3, %s4824_s19), 23  ;;  %s7710_s30 = smov (!%p467_p4, %s6151_s30), 2 }
   0xe   : > { %s5247_s22 = sshll.u32 %s7708_s19, 5  ;;  %s4827_s16 = sshll.u32 %s7710_s30, 3 }
   0xf   : > { %s6170_s25 = scalar_lea.vmem %s7692_s0, %s5247_s22  ;;  %s470_s19 = scalar_lea.vmem %s7706_s14, %s4827_s16 }
  0x10   : > { %v6173_v4 = vld [vmem:[%s6170_s25] sm:$0xff]  ;;  %v6176_v5 = vld [vmem:[%s6170_s25 + $0x8] sm:$0xff]  ;;  %v6179_v6 = vld [vmem:[%s6170_s25 + $0x10] sm:$0xff] }
  0x11   : > { %v555_v7 = vrot.slane %v6173_v4, 1  ;;  %v556_v8 = vrot.slane %v6176_v5, 1  ;;  %v558_v9 = vrot.slane %v6179_v6, 1  ;;  %v6185_v10 = vld [vmem:[%s6170_s25 + $0x18] sm:$0xf]  ;;  %v6188_v11 = vld [vmem:[%s6170_s25 + $0x20] sm:$0xff] }
  0x12   : > { %v6191_v12 = vld [vmem:[%s6170_s25 + $0x28] sm:$0xff]  ;;  %v560_v13 = vrot.slane %v6185_v10, 1  ;;  %v562_v14 = vrot.slane %v6188_v11, 1  ;;  %v6196_v15 = vld [vmem:[%s6170_s25 + $0x30] sm:$0xff]  ;;  %v6202_v19 = vld [vmem:[%s6170_s25 + $0x38] sm:$0xf] }
  0x13   : > { %v557_v16 = vsel %vm554_vm1, %v555_v7, %v556_v8  ;;  %v559_v17 = vsel %vm554_vm1, %v556_v8, %v558_v9  ;;  %v563_v18 = vrot.slane %v6191_v12, 1  ;;  %v6205_v20 = vld [vmem:[%s6170_s25 + $0x40] sm:$0xff]  ;;  %v6208_v21 = vld [vmem:[%s6170_s25 + $0x48] sm:$0xff]  ;;  %v565_v24 = vrot.slane %v6196_v15, 1  ;;  %v6214_v26 = vld [vmem:[%s6170_s25 + $0x50] sm:$0xff] }
  0x14   : > { %v640_v22 = vpack.c.bf16 %v559_v17, %v557_v16  ;;  %v561_v23 = vsel %vm554_vm1, %v558_v9, %v560_v13  ;;  %v567_v25 = vrot.slane %v6202_v19, 1  ;;  %v6217_v27 = vld [vmem:[%s6170_s25 + $0x58] sm:$0xf]  ;;  %v6220_v28 = vld [vmem:[%s6170_s25 + $0x60] sm:$0xff]  ;;  %v569_v30 = vrot.slane %v6205_v20, 1  ;;  %v6227_v33 = vld [vmem:[%s6170_s25 + $0x68] sm:$0xff] }
  0x15   : > { %v564_v29 = vsel %vm554_vm1, %v562_v14, %v563_v18  ;;  %v570_v31 = vrot.slane %v6208_v21, 1  ;;  %v572_v32 = vrot.slane %v6214_v26, 1  ;;  %v566_v35 = vsel %vm554_vm1, %v563_v18, %v565_v24  ;;  %v6250_v47 = vld [vmem:[%s6170_s25 + $0x70] sm:$0xff]  ;;  %v6253_v48 = vld [vmem:[%s6170_s25 + $0x78] sm:$0xf]  ;;  %v6256_v49 = vld [vmem:[%s6170_s25 + $0x80] sm:$0xff] }
  0x16   : > { %5393 = vmatprep.mubr.msk.bf16.mxu0 %vm663_vm2, %v640_v22  ;;  %v641_v34 = vpack.c.bf16 %v564_v29, %v561_v23  ;;  %v568_v36 = vsel %vm554_vm1, %v565_v24, %v567_v25  ;;  %v574_v37 = vrot.slane %v6217_v27, 1  ;;  %v576_v40 = vrot.slane %v6220_v28, 1  ;;  %v6261_v51 = vld [vmem:[%s6170_s25 + $0x88] sm:$0xff]  ;;  %v6264_v52 = vld [vmem:[%s6170_s25 + $0x90] sm:$0xff]  ;;  %v6273_v60 = vld [vmem:[%s6170_s25 + $0x98] sm:$0xf] }
  0x17   : > { %v642_v39 = vpack.c.bf16 %v568_v36, %v566_v35  ;;  %v577_v41 = vrot.slane %v6227_v33, 1  ;;  %v571_v42 = vsel %vm554_vm1, %v569_v30, %v570_v31  ;;  %v573_v43 = vsel %vm554_vm1, %v570_v31, %v572_v32  ;;  %v6276_v61 = vld [vmem:[%s6170_s25 + $0xa0] sm:$0xff]  ;;  %v6279_v62 = vld [vmem:[%s6170_s25 + $0xa8] sm:$0xff]  ;;  %v6283_v63 = vld [vmem:[%s6170_s25 + $0xb0] sm:$0xff] }
  0x18   : > { %5394 = vmatmul.mubr.msk.bf16.vlgmr.msra.gmra.mrb[0].mxu0 %vm663_vm2, %v641_v34  ;;  %v575_v45 = vsel %vm554_vm1, %v572_v32, %v574_v37  ;;  %v643_v53 = vpack.c.bf16 %v573_v43, %v571_v42  ;;  %v579_v55 = vrot.slane %v6250_v47, 1  ;;  %v581_v56 = vrot.slane %v6253_v48, 1  ;;  %v6286_v0 = vld [vmem:[%s6170_s25 + $0xb8] sm:$0xf]  ;;  %v6301_v24 = vld [vmem:[%s6170_s25 + $0xc0] sm:$0xff]  ;;  %v6304_v25 = vld [vmem:[%s6170_s25 + $0xc8] sm:$0xff] }
  0x19   : > { %5397 = vmatprep.mubr.msk.bf16.mxu0 %vm663_vm2, %v642_v39  ;;  %5418 = vmatpush3.bf16.msra.mxu0 %v5869_v3  ;;  %v578_v46 = vsel %vm554_vm1, %v576_v40, %v577_v41  ;;  %v583_v57 = vrot.slane %v6256_v49, 1  ;;  %v584_v58 = vrot.slane %v6261_v51, 1  ;;  %v586_v59 = vrot.slane %v6264_v52, 1  ;;  %v6307_v29 = vld [vmem:[%s6170_s25 + $0xd0] sm:$0xff]  ;;  %v6314_v35 = vld [vmem:[%s6170_s25 + $0xd8] sm:$0xf] }
  0x1a   : > { %5850 = vmatprep.subr.msk.bf16.mxu0 %vm700_vm0, %v5870_v38  ;;  %v644_v54 = vpack.c.bf16 %v578_v46, %v575_v45  ;;  %v580_v1 = vsel %vm554_vm1, %v577_v41, %v579_v55  ;;  %v582_v2 = vsel %vm554_vm1, %v579_v55, %v581_v56  ;;  %v1017_v8 = vrot.slane %v6185_v10, 2  ;;  %v6317_v36 = vld [vmem:[%s6170_s25 + $0xe0] sm:$0xff]  ;;  %v6347_v56 = vld [vmem:[%s6170_s25 + $0xe8] sm:$0xff] }
  0x1b   : > { %v585_v3 = vsel %vm554_vm1, %v583_v57, %v584_v58  ;;  %v587_v7 = vsel %vm554_vm1, %v584_v58, %v586_v59  ;;  %v645_v9 = vpack.c.bf16 %v582_v2, %v580_v1  ;;  %v588_v13 = vrot.slane %v6273_v60, 1 }
  0x1c   : > { %v590_v14 = vrot.slane %v6276_v61, 1  ;;  %v591_v16 = vrot.slane %v6279_v62, 1  ;;  %v646_v17 = vpack.c.bf16 %v587_v7, %v585_v3  ;;  %v593_v18 = vrot.slane %v6283_v63, 1  ;;  %v6353_v3 = vld [vmem:[%s6170_s25 + $0xf0] sm:$0xff]  ;;  %v6357_v7 = vld [vmem:[%s6170_s25 + $0xf8] sm:$0xf] }
  0x1d   : > { %5420 = vmatpush3.bf16.msra.mxu0 %v881_v50  ;;  %v595_v22 = vrot.slane %v6286_v0, 1  ;;  %v1012_v23 = vrot.slane %v6173_v4, 2  ;;  %v1013_v30 = vrot.slane %v6176_v5, 2  ;;  %v1015_v31 = vrot.slane %v6179_v6, 2 }
  0x1e   : > { %5445 = vmatprep.subr.bf16.mxu0 %v6245_v44  ;;  %v1019_v32 = vrot.slane %v6188_v11, 2  ;;  %v1020_v34 = vrot.slane %v6191_v12, 2  ;;  %v589_v41 = vsel %vm554_vm1, %v586_v59, %v588_v13  ;;  %v592_v42 = vsel %vm554_vm1, %v590_v14, %v591_v16 }
  0x1f   : > { %v6321_v37 = vsel %vm700_vm0, %v1012_v23, %v1013_v30  ;;  %v6324_v38 = vsel %vm700_vm0, %v1013_v30, %v1015_v31  ;;  %v6327_v39 = vsel %vm700_vm0, %v1015_v31, %v1017_v8  ;;  %v594_v46 = vsel %vm554_vm1, %v591_v16, %v593_v18 }
  0x20   : > { %5398 = vmatmul.mubr.msk.bf16.gmra.mrb[4].mxu0 %vm663_vm2, %v643_v53  ;;  %v6332_v40 = vsel %vm700_vm0, %v1019_v32, %v1020_v34  ;;  %v1097_v43 = vpack.c.bf16 %v6324_v38, %v6321_v37  ;;  %v596_v50 = vsel %vm554_vm1, %v593_v18, %v595_v22  ;;  %v597_v53 = vrot.slane %v6301_v24, 1  ;;  %v5874_v38 = vld [vmem:[%s7693_s1 + $0x38] sm:$0x3f]  }
  0x21   : > { %5401 = vmatprep.mubr.msk.bf16.mxu0 %vm663_vm2, %v644_v54  ;;  %v1098_v45 = vpack.c.bf16 %v6332_v40, %v6327_v39  ;;  %v598_v54 = vrot.slane %v6304_v25, 1  ;;  %v600_v55 = vrot.slane %v6307_v29, 1  ;;  %v647_v57 = vpack.c.bf16 %v592_v42, %v589_v41  ;;  %v6497_v39 = vld [vmem:[%s7693_s1 + $0x40] sm:$0xff]  }
  0x22   : > { %v602_v58 = vrot.slane %v6314_v35, 1  ;;  %v604_v59 = vrot.slane %v6317_v36, 1  ;;  %v648_v1 = vpack.c.bf16 %v596_v50, %v594_v46  ;;  %v605_v2 = vrot.slane %v6347_v56, 1 }
  0x23   : > { %v599_v8 = vsel %vm554_vm1, %v597_v53, %v598_v54  ;;  %v1318_v16 = vrot.slane %v6185_v10, 3  ;;  %v607_v18 = vrot.slane %v6353_v3, 1  ;;  %v609_v22 = vrot.slane %v6357_v7, 1 }
  0x24   : > { %v603_v13 = vsel %vm554_vm1, %v600_v55, %v602_v58  ;;  %v606_v14 = vsel %vm554_vm1, %v604_v59, %v605_v2  ;;  %v1313_v30 = vrot.slane %v6173_v4, 3  ;;  %v1314_v31 = vrot.slane %v6176_v5, 3 }
  0x25   : > { %v650_v23 = vpack.c.bf16 %v606_v14, %v603_v13  ;;  %v1316_v32 = vrot.slane %v6179_v6, 3  ;;  %v1320_v41 = vrot.slane %v6188_v11, 3  ;;  %v608_v42 = vsel %vm554_vm1, %v605_v2, %v607_v18  ;;  %v5873_v14 = vld [vmem:[%s7693_s1 + $0x30] sm:$0xff]  }
  0x26   : > { %v1321_v46 = vrot.slane %v6191_v12, 3  ;;  %v610_v50 = vsel %vm554_vm1, %v607_v18, %v609_v22  ;;  %v6377_v53 = vsel %vm1312_vm3, %v1313_v30, %v1314_v31  ;;  %v510_v2 = vpack.c.bf16 %v6176_v5, %v6173_v4 }
  0x27   : > { %v512_v13 = vpack.c.bf16 %v6196_v15, %v6191_v12  ;;  %v513_v18 = vpack.c.bf16 %v6208_v21, %v6205_v20  ;;  %v514_v22 = vpack.c.bf16 %v6220_v28, %v6214_v26  ;;  %v1621_v30 = vrot.slane %v6188_v11, 4 }
  0x28   : > { %5402 = vmatmul.mubr.msk.bf16.gmra.mrb[8].mxu0 %vm663_vm2, %v645_v9  ;;  %v601_v9 = vsel %vm554_vm1, %v598_v54, %v600_v55  ;;  %v6380_v54 = vsel %vm1312_vm3, %v1314_v31, %v1316_v32  ;;  %v6383_v55 = vsel %vm1312_vm3, %v1316_v32, %v1318_v16  ;;  %v6390_v58 = vsel %vm1312_vm3, %v1320_v41, %v1321_v46 }
  0x29   : > { %5405 = vmatprep.mubr.msk.bf16.mxu0 %vm663_vm2, %v646_v17  ;;  %v649_v17 = vpack.c.bf16 %v601_v9, %v599_v8  ;;  %v1399_v59 = vpack.c.bf16 %v6390_v58, %v6383_v55  ;;  %v5872_v8 = vld [vmem:[%s7693_s1 + $0x28] sm:$0x3f]   ;;  %v511_v9 = vpack.c.bf16 %v6188_v11, %v6179_v6  ;;  %v1619_v16 = vrot.slane %v6185_v10, 4 }
  0x2a   : > { %v1614_v10 = vrot.slane %v6173_v4, 4  ;;  %v1622_v31 = vrot.slane %v6191_v12, 4  ;;  %v1034_v37 = vrot.slane %v6227_v33, 2  ;;  %v1337_v55 = vrot.slane %v6250_v47, 3 }
  0x2b   : > { %v1341_v58 = vrot.slane %v6256_v49, 3 }
  0x30   : > { %5406 = vmatmul.mubr.msk.bf16.gmra.mrb[12].mxu0 %vm663_vm2, %v647_v57  ;;  %v1398_v57 = vpack.c.bf16 %v6380_v54, %v6377_v53  ;;  %v1335_v53 = vrot.slane %v6227_v33, 3  ;;  %v5876_v54 = vld [vmem:[%s7693_s1 + $0x48] sm:$0x3f]  }
  0x31   : > { %5409 = vmatprep.mubr.msk.bf16.mxu0 %vm663_vm2, %v648_v1  ;;  %v651_v1 = vpack.c.bf16 %v610_v50, %v608_v42  ;;  %v516_v50 = vpack.c.bf16 %v6261_v51, %v6256_v49 }
  0x38   : > { %5410 = vmatmul.mubr.msk.bf16.gmra.mrb[16].mxu0 %vm663_vm2, %v649_v17  ;;  %v1157_v17 = vsel %vm700_vm0, %v5872_v8, 0 }
  0x39   : > { %5413 = vmatprep.mubr.msk.bf16.mxu0 %vm663_vm2, %v650_v23  ;;  %v1615_v23 = vrot.slane %v6176_v5, 4  ;;  %v6439_v5 = vsel %vm1613_vm4, %v1621_v30, %v1622_v31  ;;  %v1029_v30 = vrot.slane %v6214_v26, 2 }
  0x3b   : > { %v6426_v32 = vsel %vm1613_vm4, %v1614_v10, %v1615_v23 }
  0x40   : > { %5414 = vmatmul.mubr.msk.bf16.gmra.mrb[20].mxu0 %vm663_vm2, %v651_v1  ;;  %v517_v1 = vpack.c.bf16 %v6276_v61, %v6264_v52 }
  0x41   : > { %5421 = vmatprep.mubr.msk.bf16.mxu0 %vm663_vm2, %v510_v2  ;;  %v518_v2 = vpack.c.bf16 %v6283_v63, %v6279_v62 }
  0x48   : > { %5422 = vmatmul.mubr.msk.bf16.vlgmr.msra.gmra.mrb[0].mxu0 %vm663_vm2, %v511_v9  ;;  %v520_v9 = vpack.c.bf16 %v6317_v36, %v6307_v29 }
  0x49   : > { %5425 = vmatprep.mubr.msk.bf16.mxu0 %vm663_vm2, %v512_v13  ;;  %5446 = vmatpush3.bf16.msra.mxu0 %v6245_v44  ;;  %v1617_v44 = vrot.slane %v6179_v6, 4  ;;  %v515_v6 = vpack.c.bf16 %v6250_v47, %v6227_v33  ;;  %v521_v13 = vpack.c.bf16 %v6353_v3, %v6347_v56 }
  0x4a   : > { %5851 = vmatprep.subr.msk.bf16.mxu0 %vm700_vm0, %v5872_v8  ;;  %v519_v8 = vpack.c.bf16 %v6304_v25, %v6301_v24 }
  0x4b   : > { %v6429_v41 = vsel %vm1613_vm4, %v1615_v23, %v1617_v44  ;;  %v6432_v42 = vsel %vm1613_vm4, %v1617_v44, %v1619_v16  ;;  %v1022_v16 = vrot.slane %v6196_v15, 2  ;;  %v1026_v23 = vrot.slane %v6205_v20, 2 }
  0x4c   : > { %v1699_v4 = vpack.c.bf16 %v6429_v41, %v6426_v32  ;;  %v1700_v11 = vpack.c.bf16 %v6439_v5, %v6432_v42  ;;  %v1027_v44 = vrot.slane %v6208_v21, 2  ;;  %v6058_v32 = vld [vmem:[%s6170_s25 + $0x68] sm:$0xff]  ;;  %v1642_v42 = vrot.slane %v6256_v49, 4 }
  0x4d   : > { %5448 = vmatpush3.bf16.msra.mxu0 %v1157_v17  ;;  %v1024_v17 = vrot.slane %v6202_v19, 2  ;;  %v1636_v41 = vrot.slane %v6058_v32, 4  ;;  %v1643_v5 = vrot.slane %v6261_v51, 4 }
  0x4e   : > { %5473 = vmatprep.subr.bf16.mxu0 %v5873_v14 }
  0x50   : > { %5426 = vmatmul.mubr.msk.bf16.gmra.mrb[4].mxu0 %vm663_vm2, %v513_v18  ;;  %v1023_v18 = vsel %vm700_vm0, %v1020_v34, %v1022_v16  ;;  %v1028_v34 = vsel %vm700_vm0, %v1026_v23, %v1027_v44 }
  0x51   : > { %5429 = vmatprep.mubr.msk.bf16.mxu0 %vm663_vm2, %v514_v22  ;;  %v1025_v22 = vsel %vm700_vm0, %v1022_v16, %v1024_v17  ;;  %v1041_v16 = vrot.slane %v6261_v51, 2  ;;  %v1043_v17 = vrot.slane %v6264_v52, 2 }
  0x52   : > { %v1099_v10 = vpack.c.bf16 %v1025_v22, %v1023_v18 }
  0x53   : > { %v1044_v23 = vsel %vm700_vm0, %v1041_v16, %v1043_v17 }
  0x58   : > { %5430 = vmatmul.mubr.msk.bf16.gmra.mrb[8].mxu0 %vm663_vm2, %v515_v6  ;;  %v1031_v6 = vrot.slane %v6217_v27, 2 }
  0x59   : > { %5433 = vmatprep.mubr.msk.bf16.mxu0 %vm663_vm2, %v516_v50  ;;  %v1033_v50 = vrot.slane %v6220_v28, 2 }
  0x60   : > { %5434 = vmatmul.mubr.msk.bf16.gmra.mrb[12].mxu0 %vm663_vm2, %v517_v1  ;;  %v1032_v1 = vsel %vm700_vm0, %v1029_v30, %v1031_v6  ;;  %v1045_v6 = vrot.slane %v6273_v60, 2 }
  0x61   : > { %5437 = vmatprep.mubr.msk.bf16.mxu0 %vm663_vm2, %v518_v2  ;;  %v1035_v2 = vsel %vm700_vm0, %v1033_v50, %v1034_v37  ;;  %v1047_v50 = vrot.slane %v6276_v61, 2 }
  0x68   : > { %5438 = vmatmul.mubr.msk.bf16.gmra.mrb[16].mxu0 %vm663_vm2, %v519_v8  ;;  %v1458_v8 = vsel %vm700_vm0, %v5874_v38, 0 }
  0x69   : > { %5441 = vmatprep.mubr.msk.bf16.mxu0 %vm663_vm2, %v520_v9  ;;  %v1036_v9 = vrot.slane %v6250_v47, 2 }
  0x6b   : > { %v1037_v18 = vsel %vm700_vm0, %v1034_v37, %v1036_v9  ;;  %v1046_v37 = vsel %vm700_vm0, %v1043_v17, %v1045_v6  ;;  %v1062_v17 = vrot.slane %v6347_v56, 2 }
  0x70   : > { %5442 = vmatmul.mubr.msk.bf16.gmra.mrb[20].mxu0 %vm663_vm2, %v521_v13  ;;  %v1038_v13 = vrot.slane %v6253_v48, 2 }
  0x71   : > { %5449 = vmatprep.mubr.msk.bf16.mxu0 %vm663_vm2, %v1097_v43  ;;  %v1030_v43 = vsel %vm700_vm0, %v1027_v44, %v1029_v30 }
  0x72   : > { %v1100_v40 = vpack.c.bf16 %v1030_v43, %v1028_v34  ;;  %v1039_v22 = vsel %vm700_vm0, %v1036_v9, %v1038_v13  ;;  %v1050_v34 = vrot.slane %v6283_v63, 2  ;;  %v1052_v43 = vrot.slane %v6286_v0, 2 }
  0x73   : > { %v1102_v44 = vpack.c.bf16 %v1039_v22, %v1037_v18  ;;  %v1054_v9 = vrot.slane %v6301_v24, 2  ;;  %v1055_v13 = vrot.slane %v6304_v25, 2  ;;  %v1061_v18 = vrot.slane %v6317_v36, 2 }
  0x75   : > { %v1056_v22 = vsel %vm700_vm0, %v1054_v9, %v1055_v13  ;;  %v1327_v9 = vrot.slane %v6205_v20, 3 }
  0x78   : > { %5450 = vmatmul.mubr.msk.bf16.vlgmr.msra.gmra.mrb[0].mxu0 %vm663_vm2, %v1098_v45  ;;  %v1101_v45 = vpack.c.bf16 %v1035_v2, %v1032_v1 }
  0x79   : > { %5453 = vmatprep.mubr.msk.bf16.mxu0 %vm663_vm2, %v1099_v10  ;;  %5474 = vmatpush3.bf16.msra.mxu0 %v5873_v14  ;;  %v1040_v14 = vrot.slane %v6256_v49, 2  ;;  %v1647_v49 = vrot.slane %v6273_v60, 4 }
  0x7a   : > { %5852 = vmatprep.subr.msk.bf16.mxu0 %vm700_vm0, %v5874_v38  ;;  %v1048_v38 = vrot.slane %v6279_v62, 2 }
  0x7b   : > { %v1042_v10 = vsel %vm700_vm0, %v1040_v14, %v1041_v16  ;;  %v1057_v14 = vrot.slane %v6307_v29, 2  ;;  %v1059_v16 = vrot.slane %v6314_v35, 2 }
  0x7c   : > { %v1103_v30 = vpack.c.bf16 %v1044_v23, %v1042_v10  ;;  %v1049_v1 = vsel %vm700_vm0, %v1047_v50, %v1048_v38  ;;  %v1051_v2 = vsel %vm700_vm0, %v1048_v38, %v1050_v34  ;;  %v1064_v50 = vrot.slane %v6353_v3, 2 }
  0x7d   : > { %5476 = vmatpush3.bf16.msra.mxu0 %v1458_v8  ;;  %v1053_v8 = vsel %vm700_vm0, %v1050_v34, %v1052_v43  ;;  %v1058_v10 = vsel %vm700_vm0, %v1055_v13, %v1057_v14  ;;  %v1060_v23 = vsel %vm700_vm0, %v1057_v14, %v1059_v16  ;;  %v1066_v38 = vrot.slane %v6357_v7, 2 }
  0x7e   : > { %5501 = vmatprep.subr.bf16.mxu0 %v6497_v39  ;;  %v1065_v34 = vsel %vm700_vm0, %v1062_v17, %v1064_v50  ;;  %v1332_v13 = vrot.slane %v6217_v27, 3  ;;  %v1334_v14 = vrot.slane %v6220_v28, 3  ;;  %v1759_v28 = vsel %vm700_vm0, %v5876_v54, 0 }
  0x7f   : > { %v1067_v43 = vsel %vm700_vm0, %v1064_v50, %v1066_v38  ;;  %v1338_v16 = vsel %vm1312_vm3, %v1335_v53, %v1337_v55  ;;  %v1351_v50 = vrot.slane %v6283_v63, 3  ;;  %v1353_v38 = vrot.slane %v6286_v0, 3 }
  0x80   : > { %5454 = vmatmul.mubr.msk.bf16.gmra.mrb[4].mxu0 %vm663_vm2, %v1100_v40  ;;  %v1104_v40 = vpack.c.bf16 %v1049_v1, %v1046_v37  ;;  %v1108_v37 = vpack.c.bf16 %v1067_v43, %v1065_v34  ;;  %v1323_v1 = vrot.slane %v6196_v15, 3  ;;  %v1328_v15 = vrot.slane %v6208_v21, 3 }
  0x81   : > { %5457 = vmatprep.mubr.msk.bf16.mxu0 %vm663_vm2, %v1101_v45  ;;  %v1105_v45 = vpack.c.bf16 %v1053_v8, %v1051_v2  ;;  %v1325_v2 = vrot.slane %v6202_v19, 3  ;;  %v1330_v19 = vrot.slane %v6214_v26, 3  ;;  %v1336_v27 = vsel %vm1312_vm3, %v1334_v14, %v1335_v53 }
  0x82   : > { %v1324_v8 = vsel %vm1312_vm3, %v1321_v46, %v1323_v1  ;;  %v1329_v20 = vsel %vm1312_vm3, %v1327_v9, %v1328_v15  ;;  %v1358_v9 = vrot.slane %v6307_v29, 3 }
  0x83   : > { %v1331_v21 = vsel %vm1312_vm3, %v1328_v15, %v1330_v19  ;;  %v1333_v26 = vsel %vm1312_vm3, %v1330_v19, %v1332_v13  ;;  %v1360_v15 = vrot.slane %v6314_v35, 3  ;;  %v1362_v19 = vrot.slane %v6317_v36, 3 }
  0x84   : > { %v1401_v33 = vpack.c.bf16 %v1331_v21, %v1329_v20  ;;  %v1402_v46 = vpack.c.bf16 %v1336_v27, %v1333_v26  ;;  %v1363_v13 = vrot.slane %v6347_v56, 3  ;;  %v1365_v27 = vrot.slane %v6353_v3, 3 }
  0x86   : > { %v1364_v20 = vsel %vm1312_vm3, %v1362_v19, %v1363_v13 }
  0x88   : > { %5458 = vmatmul.mubr.msk.bf16.gmra.mrb[8].mxu0 %vm663_vm2, %v1102_v44  ;;  %v1063_v44 = vsel %vm700_vm0, %v1061_v18, %v1062_v17 }
  0x89   : > { %5461 = vmatprep.mubr.msk.bf16.mxu0 %vm663_vm2, %v1103_v30  ;;  %v1106_v30 = vpack.c.bf16 %v1058_v10, %v1056_v22  ;;  %v1107_v6 = vpack.c.bf16 %v1063_v44, %v1060_v23  ;;  %v1346_v44 = vrot.slane %v6273_v60, 3 }
  0x90   : > { %5462 = vmatmul.mubr.msk.bf16.gmra.mrb[12].mxu0 %vm663_vm2, %v1104_v40  ;;  %v1326_v40 = vsel %vm1312_vm3, %v1323_v1, %v1325_v2  ;;  %v1354_v1 = vsel %vm1312_vm3, %v1351_v50, %v1353_v38 }
  0x91   : > { %5465 = vmatprep.mubr.msk.bf16.mxu0 %vm663_vm2, %v1105_v45  ;;  %v1400_v45 = vpack.c.bf16 %v1326_v40, %v1324_v8  ;;  %v1355_v40 = vrot.slane %v6301_v24, 3 }
  0x98   : > { %5466 = vmatmul.mubr.msk.bf16.gmra.mrb[16].mxu0 %vm663_vm2, %v1106_v30  ;;  %v1348_v30 = vrot.slane %v6276_v61, 3 }
  0x99   : > { %5469 = vmatprep.mubr.msk.bf16.mxu0 %vm663_vm2, %v1107_v6  ;;  %v1349_v6 = vrot.slane %v6279_v62, 3 }
  0x9b   : > { %v1350_v43 = vsel %vm1312_vm3, %v1348_v30, %v1349_v6  ;;  %v6055_v30 = vld [vmem:[%s6170_s25 + $0x50] sm:$0xff] }
  0xa0   : > { %5470 = vmatmul.mubr.msk.bf16.gmra.mrb[20].mxu0 %vm663_vm2, %v1108_v37  ;;  %v1352_v37 = vsel %vm1312_vm3, %v1349_v6, %v1351_v50  ;;  %v1631_v6 = vrot.slane %v6055_v30, 4  ;;  %v6056_v50 = vld [vmem:[%s6170_s25 + $0x58] sm:$0xf] }
  0xa1   : > { %5477 = vmatprep.mubr.msk.bf16.mxu0 %vm663_vm2, %v1398_v57  ;;  %v1339_v57 = vrot.slane %v6253_v48, 3  ;;  %v1406_v8 = vpack.c.bf16 %v1354_v1, %v1352_v37  ;;  %v1633_v38 = vrot.slane %v6056_v50, 4 }
  0xa3   : > { %v1340_v18 = vsel %vm1312_vm3, %v1337_v55, %v1339_v57  ;;  %v6051_v57 = vld [vmem:[%s6170_s25 + $0x30] sm:$0xff] }
  0xa4   : > { %v1403_v10 = vpack.c.bf16 %v1340_v18, %v1338_v16 }
  0xa8   : > { %5478 = vmatmul.mubr.msk.bf16.vlgmr.msra.gmra.mrb[0].mxu0 %vm663_vm2, %v1399_v59  ;;  %v1342_v59 = vrot.slane %v6261_v51, 3  ;;  %v1649_v51 = vrot.slane %v6276_v61, 4 }
  0xa9   : > { %5481 = vmatprep.mubr.msk.bf16.mxu0 %vm663_vm2, %v1400_v45  ;;  %5502 = vmatpush3.bf16.msra.mxu0 %v6497_v39  ;;  %v1344_v39 = vrot.slane %v6264_v52, 3  ;;  %v1356_v45 = vrot.slane %v6304_v25, 3 }
  0xaa   : > { %5853 = vmatprep.subr.msk.bf16.mxu0 %vm700_vm0, %v5876_v54  ;;  %v1343_v17 = vsel %vm1312_vm3, %v1341_v58, %v1342_v59  ;;  %v1361_v54 = vsel %vm1312_vm3, %v1358_v9, %v1360_v15  ;;  %v1624_v58 = vrot.slane %v6051_v57, 4  ;;  %v1644_v15 = vsel %vm1613_vm4, %v1642_v42, %v1643_v5 }
  0xab   : > { %v1345_v22 = vsel %vm1312_vm3, %v1342_v59, %v1344_v39  ;;  %v1347_v34 = vsel %vm1312_vm3, %v1344_v39, %v1346_v44  ;;  %v1357_v14 = vsel %vm1312_vm3, %v1355_v40, %v1356_v45  ;;  %v1359_v53 = vsel %vm1312_vm3, %v1356_v45, %v1358_v9  ;;  %v6052_v59 = vld [vmem:[%s6170_s25 + $0x38] sm:$0xf] }
  0xac   : > { %v1404_v23 = vpack.c.bf16 %v1345_v22, %v1343_v17  ;;  %v1405_v2 = vpack.c.bf16 %v1350_v43, %v1347_v34  ;;  %v1407_v21 = vpack.c.bf16 %v1359_v53, %v1357_v14  ;;  %v1408_v26 = vpack.c.bf16 %v1364_v20, %v1361_v54  ;;  %v6053_v22 = vld [vmem:[%s6170_s25 + $0x40] sm:$0xff] }
  0xad   : > { %5504 = vmatpush3.bf16.msra.mxu0 %v1759_v28  ;;  %v1367_v28 = vrot.slane %v6357_v7, 3  ;;  %v1626_v39 = vrot.slane %v6052_v59, 4  ;;  %v1625_v16 = vsel %vm1613_vm4, %v1622_v31, %v1624_v58  ;;  %v6057_v34 = vld [vmem:[%s6170_s25 + $0x60] sm:$0xff]  ;;  %v1640_v40 = vrot.slane %v6253_v48, 4 }
  0xae   : > { %v1635_v43 = vrot.slane %v6057_v34, 4  ;;  %v1654_v14 = vrot.slane %v6286_v0, 4  ;;  %v1659_v0 = vrot.slane %v6307_v29, 4  ;;  %v6067_v59 = vmov 0  }
  0xaf   : > { %v1627_v18 = vsel %vm1613_vm4, %v1624_v58, %v1626_v39  ;;  %2070 = vmatprep.subr.bf16.mxu1 %v6067_v59  ;;  %v6688_v39 = vld [vmem:[%s7694_s2] ss:$0 sm:$0xff] }
  0xb0   : > { %5482 = vmatmul.mubr.msk.bf16.gmra.mrb[4].mxu0 %vm663_vm2, %v1401_v33  ;;  %v1366_v33 = vsel %vm1312_vm3, %v1363_v13, %v1365_v27  ;;  %v1701_v17 = vpack.c.bf16 %v1627_v18, %v1625_v16  ;;  %v1637_v37 = vsel %vm1613_vm4, %v1635_v43, %v1636_v41  ;;  %v1652_v13 = vrot.slane %v6283_v63, 4 }
  0xb1   : > { %5485 = vmatprep.mubr.msk.bf16.mxu0 %vm663_vm2, %v1402_v46  ;;  %v1368_v46 = vsel %vm1312_vm3, %v1365_v27, %v1367_v28  ;;  %v1657_v63 = vrot.slane %v6304_v25, 4  ;;  %v1663_v27 = vrot.slane %v6317_v36, 4  ;;  %v1664_v28 = vrot.slane %v6347_v56, 4 }
  0xb2   : > { %v1409_v55 = vpack.c.bf16 %v1368_v46, %v1366_v33  ;;  %v1655_v60 = vsel %vm1613_vm4, %v1652_v13, %v1654_v14  ;;  %v1668_v36 = vrot.slane %v6357_v7, 4 }
  0xb3   : > { %v1660_v46 = vsel %vm1613_vm4, %v1657_v63, %v1659_v0  ;;  %v1665_v25 = vsel %vm1613_vm4, %v1663_v27, %v1664_v28 }
  0xb8   : > { %5486 = vmatmul.mubr.msk.bf16.gmra.mrb[8].mxu0 %vm663_vm2, %v1403_v10  ;;  %v1628_v10 = vrot.slane %v6053_v22, 4 }
  0xb9   : > { %5489 = vmatprep.mubr.msk.bf16.mxu0 %vm663_vm2, %v1404_v23  ;;  %v6054_v23 = vld [vmem:[%s6170_s25 + $0x48] sm:$0xff] }
  0xba   : > { %v1629_v44 = vrot.slane %v6054_v23, 4 }
  0xbc   : > { %v1630_v12 = vsel %vm1613_vm4, %v1628_v10, %v1629_v44  ;;  %v1632_v31 = vsel %vm1613_vm4, %v1629_v44, %v1631_v6 }
  0xbd   : > { %v1702_v1 = vpack.c.bf16 %v1632_v31, %v1630_v12 }
  0xc0   : > { %5490 = vmatmul.mubr.msk.bf16.gmra.mrb[12].mxu0 %vm663_vm2, %v1405_v2 }
  0xc1   : > { %5493 = vmatprep.mubr.msk.bf16.mxu0 %vm663_vm2, %v1406_v8  ;;  %v1638_v8 = vrot.slane %v6250_v47, 4 }
  0xc3   : > { %v1639_v45 = vsel %vm1613_vm4, %v1636_v41, %v1638_v8  ;;  %v1641_v9 = vsel %vm1613_vm4, %v1638_v8, %v1640_v40 }
  0xc4   : > { %v1704_v19 = vpack.c.bf16 %v1641_v9, %v1639_v45 }
  0xc8   : > { %5494 = vmatmul.mubr.msk.bf16.gmra.mrb[16].mxu0 %vm663_vm2, %v1407_v21 }
  0xc9   : > { %5497 = vmatprep.mubr.msk.bf16.mxu0 %vm663_vm2, %v1408_v26  ;;  %v1661_v26 = vrot.slane %v6314_v35, 4  ;;  %v1666_v35 = vrot.slane %v6353_v3, 4  ;;  %v5879_v3 = vld [vmem:[%s7695_s3 + $0x4] ss:$8 sps:$4 sm:$0xff]  }
  0xca   : > { %4931 = vmatprep.mubr.msk.bf16.mxu1 %vm2045_vm5, %v5879_v3  ;;  %v5880_v3 = vld [vmem:[%s7695_s3 + $0x14] ss:$8 sps:$4 sm:$0xff]  }
  0xcb   : > { %v1667_v56 = vsel %vm1613_vm4, %v1664_v28, %v1666_v35  ;;  %v1669_v57 = vsel %vm1613_vm4, %v1666_v35, %v1668_v36 }
  0xcc   : > { %v1710_v58 = vpack.c.bf16 %v1669_v57, %v1667_v56 }
  0xd0   : > { %5498 = vmatmul.mubr.msk.bf16.gmra.mrb[20].mxu0 %vm663_vm2, %v1409_v55 }
  0xd1   : > { %5505 = vmatprep.mubr.msk.bf16.mxu0 %vm663_vm2, %v1699_v4  ;;  %v1634_v4 = vsel %vm1613_vm4, %v1631_v6, %v1633_v38 }
  0xd2   : > { %v1703_v2 = vpack.c.bf16 %v1637_v37, %v1634_v4 }
  0xd8   : > { %5506 = vmatmul.mubr.msk.bf16.vlgmr.msra.gmra.mrb[0].mxu0 %vm663_vm2, %v1700_v11  ;;  %v1645_v11 = vrot.slane %v6264_v52, 4  ;;  %v1650_v52 = vrot.slane %v6279_v62, 4  ;;  %v1656_v62 = vrot.slane %v6301_v24, 4  ;;  %v1662_v24 = vsel %vm1613_vm4, %v1659_v0, %v1661_v26 }
  0xd9   : > { %5509 = vmatprep.mubr.msk.bf16.mxu0 %vm663_vm2, %v1701_v17  ;;  %v1709_v29 = vpack.c.bf16 %v1665_v25, %v1662_v24 }
  0xda   : > { %v1646_v47 = vsel %vm1613_vm4, %v1643_v5, %v1645_v11  ;;  %v1648_v53 = vsel %vm1613_vm4, %v1645_v11, %v1647_v49  ;;  %v1651_v54 = vsel %vm1613_vm4, %v1649_v51, %v1650_v52  ;;  %v1653_v20 = vsel %vm1613_vm4, %v1650_v52, %v1652_v13 }
  0xdb   : > { %v1705_v48 = vpack.c.bf16 %v1646_v47, %v1644_v15  ;;  %v1706_v21 = vpack.c.bf16 %v1651_v54, %v1648_v53  ;;  %v1707_v61 = vpack.c.bf16 %v1655_v60, %v1653_v20  ;;  %v1658_v33 = vsel %vm1613_vm4, %v1656_v62, %v1657_v63 }
  0xdc   : > { %v1708_v55 = vpack.c.bf16 %v1660_v46, %v1658_v33 }
  0xe0   : > { %5510 = vmatmul.mubr.msk.bf16.gmra.mrb[4].mxu0 %vm663_vm2, %v1702_v1 }
  0xe1   : > { %5513 = vmatprep.mubr.msk.bf16.mxu0 %vm663_vm2, %v1703_v2 }
  0xe8   : > { %5514 = vmatmul.mubr.msk.bf16.gmra.mrb[8].mxu0 %vm663_vm2, %v1704_v19 }
  0xe9   : > { %5517 = vmatprep.mubr.msk.bf16.mxu0 %vm663_vm2, %v1705_v48 }
  0xf0   : > { %5518 = vmatmul.mubr.msk.bf16.gmra.mrb[12].mxu0 %vm663_vm2, %v1706_v21 }
  0xf1   : > { %5521 = vmatprep.mubr.msk.bf16.mxu0 %vm663_vm2, %v1707_v61 }
  0xf8   : > { %5522 = vmatmul.mubr.msk.bf16.gmra.mrb[16].mxu0 %vm663_vm2, %v1708_v55 }
  0xf9   : > { %5525 = vmatprep.mubr.msk.bf16.mxu0 %vm663_vm2, %v1709_v29 }
 0x100   : > { %5526 = vmatmul.mubr.msk.bf16.gmra.mrb[20].mxu0 %vm663_vm2, %v1710_v58  ;;  %v5877_v58 = vld [vmem:[%s7695_s3] ss:$8 sps:$4 sm:$0xff]  }
 0x101   : > { %3769 = vmatprep.mubr.bf16.mxu0 %v6067_v59 }
 0x1ab   : > { %v5507_v7 = vpop.f32.mrb[0].mxu0 }
 0x1ac   : > { %v1795_v16 = vpop.f32.mrb[1].mxu0  ;;  %v1923_v17 = vadd.f32 %v5507_v7, %v6688_v39  ;;  %v5882_v7 = vld [vmem:[%s7695_s3 + $0x10] ss:$8 sps:$4 sm:$0xff]  }
 0x1ad   : > { %v5508_v18 = vpop.f32.mrb[2].mxu0  ;;  %v1921_v23 = vadd.f32 %v6688_v39, %v1795_v16  ;;  %v5885_v16 = vld [vmem:[%s7695_s3 + $0x20] ss:$8 sps:$4 sm:$0xff]  }
 0x1ae   : > { %v1924_v22 = vadd.f32 %v5508_v18, %v6688_v39  ;;  %v1798_v10 = vpop.f32.mrb[3].mxu0  ;;  %v5886_v18 = vld [vmem:[%s7695_s3 + $0x34] ss:$8 sps:$4 sm:$0xff]  }
 0x1af   : > { %v1922_v44 = vadd.f32 %v6688_v39, %v1798_v10  ;;  %v5891_v10 = vld [vmem:[%s7695_s3 + $0x40] ss:$8 sps:$4 sm:$0xff]  }
 0x1b0   : > { %v6694_v30 = vpack.c.bf16 %v1924_v22, %v1923_v17  ;;  %v5888_v17 = vld [vmem:[%s7695_s3 + $0x30] ss:$8 sps:$4 sm:$0xff]   ;;  %v5889_v22 = vld [vmem:[%s7695_s3 + $0x44] ss:$8 sps:$4 sm:$0xff]  }
 0x1b1   : > { %v6696_v6 = vpack.c.bf16 %v1922_v44, %v1921_v23  ;;  %v5892_v23 = vld [vmem:[%s7695_s3 + $0x54] ss:$8 sps:$4 sm:$0xff]   ;;  %v5894_v44 = vld [vmem:[%s7695_s3 + $0x50] ss:$8 sps:$4 sm:$0xff]  }
 0x1b3   : > { %v5511_v50 = vpop.f32.mrb[4].mxu0  ;;  %2071 = vmatpush1.bf16.msra.mxu1 %v6696_v6 }
 0x1b4   : > { %v1811_v38 = vpop.f32.mrb[5].mxu0  ;;  %2072 = vmatprep.subr.bf16.mxu1 %v6067_v59  ;;  %v1927_v43 = vadd.f32 %v5511_v50, %v6688_v39  ;;  %v5898_v50 = vld [vmem:[%s7695_s3 + $0x74] ss:$8 sps:$4 sm:$0xff]  }
 0x1b5   : > { %v5512_v34 = vpop.f32.mrb[6].mxu0  ;;  %v1925_v12 = vadd.f32 %v6688_v39, %v1811_v38  ;;  %v5900_v38 = vld [vmem:[%s7695_s3 + $0x70] ss:$8 sps:$4 sm:$0xff]  }
 0x1b6   : > { %v1928_v32 = vadd.f32 %v5512_v34, %v6688_v39  ;;  %v1814_v41 = vpop.f32.mrb[7].mxu0  ;;  %v5903_v34 = vld [vmem:[%s7695_s3 + $0x84] ss:$8 sps:$4 sm:$0xff]  }
 0x1b7   : > { %v1926_v31 = vadd.f32 %v6688_v39, %v1814_v41  ;;  %2073 = vmatpush1.bf16.msra.mxu1 %v6694_v30  ;;  %v5906_v41 = vld [vmem:[%s7695_s3 + $0x90] ss:$8 sps:$4 sm:$0xff]  }
 0x1b8   : > { %v6705_v4 = vpack.c.bf16 %v1928_v32, %v1927_v43  ;;  %2074 = vmatprep.subr.bf16.mxu1 %v6067_v59  ;;  %v5901_v43 = vld [vmem:[%s7695_s3 + $0x80] ss:$8 sps:$4 sm:$0xff]   ;;  %v5904_v32 = vld [vmem:[%s7695_s3 + $0x94] ss:$8 sps:$4 sm:$0xff]  }
 0x1b9   : > { %v6708_v37 = vpack.c.bf16 %v1926_v31, %v1925_v12  ;;  %v5907_v12 = vld [vmem:[%s7695_s3 + $0xa4] ss:$8 sps:$4 sm:$0xff]   ;;  %v5909_v31 = vld [vmem:[%s7695_s3 + $0xa0] ss:$8 sps:$4 sm:$0xff]  }
 0x1bb   : > { %v5515_v1 = vpop.f32.mrb[8].mxu0  ;;  %2075 = vmatpush1.bf16.msra.mxu1 %v6708_v37 }
 0x1bc   : > { %v1827_v2 = vpop.f32.mrb[9].mxu0  ;;  %2076 = vmatprep.subr.bf16.mxu1 %v6067_v59  ;;  %v1931_v40 = vadd.f32 %v5515_v1, %v6688_v39  ;;  %v5913_v1 = vld [vmem:[%s7695_s3 + $0xc4] ss:$8 sps:$4 sm:$0xff]  }
 0x1bd   : > { %v5516_v8 = vpop.f32.mrb[10].mxu0  ;;  %v1929_v11 = vadd.f32 %v6688_v39, %v1827_v2  ;;  %v5915_v2 = vld [vmem:[%s7695_s3 + $0xc0] ss:$8 sps:$4 sm:$0xff]  }
 0x1be   : > { %v1932_v42 = vadd.f32 %v5516_v8, %v6688_v39  ;;  %v1830_v5 = vpop.f32.mrb[11].mxu0  ;;  %v5916_v8 = vld [vmem:[%s7695_s3 + $0xd4] ss:$8 sps:$4 sm:$0xff]  }
 0x1bf   : > { %v1930_v45 = vadd.f32 %v6688_v39, %v1830_v5  ;;  %2077 = vmatpush1.bf16.msra.mxu1 %v6705_v4  ;;  %v5921_v5 = vld [vmem:[%s7695_s3 + $0xe0] ss:$8 sps:$4 sm:$0xff]  }
 0x1c0   : > { %v6717_v9 = vpack.c.bf16 %v1932_v42, %v1931_v40  ;;  %2078 = vmatprep.subr.bf16.mxu1 %v6067_v59  ;;  %v5918_v40 = vld [vmem:[%s7695_s3 + $0xd0] ss:$8 sps:$4 sm:$0xff]   ;;  %v5919_v42 = vld [vmem:[%s7695_s3 + $0xe4] ss:$8 sps:$4 sm:$0xff]  }
 0x1c1   : > { %v6720_v15 = vpack.c.bf16 %v1930_v45, %v1929_v11  ;;  %v5922_v11 = vld [vmem:[%s7695_s3 + $0xf4] ss:$8 sps:$4 sm:$0xff]   ;;  %v5924_v45 = vld [vmem:[%s7695_s3 + $0xf0] ss:$8 sps:$4 sm:$0xff]  }
 0x1c3   : > { %v5519_v47 = vpop.f32.mrb[12].mxu0  ;;  %2079 = vmatpush1.bf16.msra.mxu1 %v6720_v15 }
 0x1c4   : > { %v1843_v19 = vpop.f32.mrb[13].mxu0  ;;  %2080 = vmatprep.subr.bf16.mxu1 %v6067_v59  ;;  %v1935_v49 = vadd.f32 %v5519_v47, %v6688_v39  ;;  %v5927_v47 = vld [vmem:[%s7696_s4 + $0x10] sm:$0xff]  }
 0x1c5   : > { %v5520_v48 = vpop.f32.mrb[14].mxu0  ;;  %v1933_v13 = vadd.f32 %v6688_v39, %v1843_v19  ;;  %v5928_v19 = vld [vmem:[%s7696_s4 + $0x18] sm:$0xff]  }
 0x1c6   : > { %v1936_v51 = vadd.f32 %v5520_v48, %v6688_v39  ;;  %v1846_v52 = vpop.f32.mrb[15].mxu0  ;;  %v5929_v48 = vld [vmem:[%s7696_s4 + $0x20] sm:$0xff]  }
 0x1c7   : > { %v1934_v14 = vadd.f32 %v6688_v39, %v1846_v52  ;;  %2081 = vmatpush1.bf16.msra.mxu1 %v6717_v9  ;;  %v5932_v52 = vld [vmem:[%s7696_s4 + $0x38] ss:$0 sps:$4 sm:$0xff]  }
 0x1c8   : > { %v6729_v53 = vpack.c.bf16 %v1936_v51, %v1935_v49  ;;  %2082 = vmatprep.subr.bf16.mxu1 %v6067_v59  ;;  %v5930_v49 = vld [vmem:[%s7696_s4 + $0x28] sm:$0xff]   ;;  %v5931_v51 = vld [vmem:[%s7696_s4 + $0x30] sm:$0xff]  }
 0x1c9   : > { %v1967_v54 = vpack.c.bf16 %v1934_v14, %v1933_v13  ;;  %v2487_v13 = vsel %vm1613_vm4, %v5932_v52, 0  ;;  %v5933_v14 = vld [vmem:[%s7696_s4 + $0x3c] sm:$0xff]  }
 0x1cb   : > { %v5523_v20 = vpop.f32.mrb[16].mxu0  ;;  %2083 = vmatpush1.bf16.msra.mxu1 %v1967_v54 }
 0x1cc   : > { %v1859_v60 = vpop.f32.mrb[17].mxu0  ;;  %2084 = vmatprep.subr.bf16.mxu1 %v6067_v59  ;;  %v1939_v61 = vadd.f32 %v5523_v20, %v6688_v39 }
 0x1cd   : > { %v5524_v21 = vpop.f32.mrb[18].mxu0  ;;  %v1937_v0 = vadd.f32 %v6688_v39, %v1859_v60 }
 0x1ce   : > { %v1940_v62 = vadd.f32 %v5524_v21, %v6688_v39  ;;  %v1862_v63 = vpop.f32.mrb[19].mxu0 }
 0x1cf   : > { %v1938_v26 = vadd.f32 %v6688_v39, %v1862_v63  ;;  %2085 = vmatpush1.bf16.msra.mxu1 %v6729_v53 }
 0x1d0   : > { %v1970_v27 = vpack.c.bf16 %v1940_v62, %v1939_v61  ;;  %2086 = vmatprep.subr.bf16.mxu1 %v6067_v59 }
 0x1d1   : > { %v1969_v28 = vpack.c.bf16 %v1938_v26, %v1937_v0 }
 0x1d3   : > { %v5527_v33 = vpop.f32.mrb[20].mxu0  ;;  %2087 = vmatpush1.bf16.msra.mxu1 %v1969_v28 }
 0x1d4   : > { %v1875_v46 = vpop.f32.mrb[21].mxu0  ;;  %2088 = vmatprep.subr.bf16.mxu1 %v6067_v59  ;;  %v1943_v25 = vadd.f32 %v5527_v33, %v6688_v39 }
 0x1d5   : > { %v5528_v24 = vpop.f32.mrb[22].mxu0  ;;  %v1941_v35 = vadd.f32 %v6688_v39, %v1875_v46 }
 0x1d6   : > { %v1944_v55 = vadd.f32 %v5528_v24, %v6688_v39  ;;  %v1878_v29 = vpop.f32.mrb[23].mxu0 }
 0x1d7   : > { %v1942_v36 = vadd.f32 %v6688_v39, %v1878_v29  ;;  %2089 = vmatpush1.bf16.msra.mxu1 %v1970_v27  ;;  %v5883_v39 = vld [vmem:[%s7695_s3 + $0x24] ss:$8 sps:$4 sm:$0xff]  }
 0x1d8   : > { %v1972_v56 = vpack.c.bf16 %v1944_v55, %v1943_v25  ;;  %2090 = vmatprep.subr.bf16.mxu1 %v6067_v59 }
 0x1d9   : > { %v1971_v57 = vpack.c.bf16 %v1942_v36, %v1941_v35 }
 0x1db   : > { %2091 = vmatpush1.bf16.msra.mxu1 %v1971_v57 }
 0x1dc   : > { %2092 = vmatprep.subr.bf16.mxu1 %v6067_v59 }
 0x1df   : > { %2093 = vmatpush1.bf16.msra.mxu1 %v1972_v56 }
 0x1e0   : > { %2280 = vmatprep.subr.bf16.mxu1 %v6067_v59 }
 0x1e2   : > { %2103 = vmatmul.mubr.bf16.vlgmr.msra.gmra.mrb[0].mxu1 %v5877_v58 }
 0x1e3   : > { %2281 = vmatpush1.bf16.msra.mxu1 %v6696_v6  ;;  %4932 = vmatprep.mubr.msk.bf16.mxu1 %vm2045_vm5, %v5880_v3  ;;  %v5897_v6 = vld [vmem:[%s7695_s3 + $0x60] ss:$8 sps:$4 sm:$0xff]  }
 0x1e4   : > { %2282 = vmatprep.subr.bf16.mxu1 %v6067_v59 }
 0x1e7   : > { %2283 = vmatpush1.bf16.msra.mxu1 %v6694_v30  ;;  %v5895_v30 = vld [vmem:[%s7695_s3 + $0x64] ss:$8 sps:$4 sm:$0xff]  }
 0x1e8   : > { %2284 = vmatprep.subr.bf16.mxu1 %v6067_v59 }
 0x1ea   : > { %2111 = vmatmul.mubr.bf16.gmra.mrb[4].mxu1 %v5882_v7 }
 0x1eb   : > { %2285 = vmatpush1.bf16.msra.mxu1 %v6708_v37  ;;  %4933 = vmatprep.mubr.msk.bf16.mxu1 %vm2045_vm5, %v5883_v39  ;;  %v5912_v37 = vld [vmem:[%s7695_s3 + $0xb0] ss:$8 sps:$4 sm:$0xff]  }
 0x1ec   : > { %2286 = vmatprep.subr.bf16.mxu1 %v6067_v59 }
 0x1ef   : > { %2287 = vmatpush1.bf16.msra.mxu1 %v6705_v4  ;;  %v5910_v4 = vld [vmem:[%s7695_s3 + $0xb4] ss:$8 sps:$4 sm:$0xff]  }
 0x1f0   : > { %2288 = vmatprep.subr.bf16.mxu1 %v6067_v59 }
 0x1f2   : > { %2119 = vmatmul.mubr.bf16.gmra.mrb[8].mxu1 %v5885_v16 }
 0x1f3   : > { %2289 = vmatpush1.bf16.msra.mxu1 %v6720_v15  ;;  %4934 = vmatprep.mubr.msk.bf16.mxu1 %vm2045_vm5, %v5886_v18  ;;  %v5926_v15 = vld [vmem:[%s7696_s4 + $0x8] sm:$0xff]  }
 0x1f4   : > { %2290 = vmatprep.subr.bf16.mxu1 %v6067_v59 }
 0x1f7   : > { %2291 = vmatpush1.bf16.msra.mxu1 %v6717_v9  ;;  %v5925_v9 = vld [vmem:[%s7696_s4] sm:$0xff]  }
 0x1f8   : > { %2292 = vmatprep.subr.bf16.mxu1 %v6067_v59 }
 0x1fa   : > { %2127 = vmatmul.mubr.bf16.gmra.mrb[12].mxu1 %v5888_v17 }
 0x1fb   : > { %2293 = vmatpush1.bf16.msra.mxu1 %v1967_v54  ;;  %4935 = vmatprep.mubr.msk.bf16.mxu1 %vm2045_vm5, %v5889_v22 }
 0x1fc   : > { %2294 = vmatprep.subr.bf16.mxu1 %v6067_v59 }
 0x1ff   : > { %2295 = vmatpush1.bf16.msra.mxu1 %v6729_v53 }
 0x200   : > { %2296 = vmatprep.subr.bf16.mxu1 %v6067_v59 }
 0x202   : > { %2135 = vmatmul.mubr.bf16.gmra.mrb[16].mxu1 %v5891_v10 }
 0x203   : > { %2297 = vmatpush1.bf16.msra.mxu1 %v1969_v28  ;;  %4936 = vmatprep.mubr.msk.bf16.mxu1 %vm2045_vm5, %v5892_v23 }
 0x204   : > { %2298 = vmatprep.subr.bf16.mxu1 %v6067_v59 }
 0x207   : > { %2299 = vmatpush1.bf16.msra.mxu1 %v1970_v27 }
 0x208   : > { %2300 = vmatprep.subr.bf16.mxu1 %v6067_v59 }
 0x20a   : > { %2143 = vmatmul.mubr.bf16.gmra.mrb[20].mxu1 %v5894_v44 }
 0x20b   : > { %2301 = vmatpush1.bf16.msra.mxu1 %v1971_v57  ;;  %4937 = vmatprep.mubr.msk.bf16.mxu1 %vm2045_vm5, %v5895_v30 }
 0x20c   : > { %2302 = vmatprep.subr.bf16.mxu1 %v6067_v59 }
 0x20f   : > { %2303 = vmatpush1.bf16.msra.mxu1 %v1972_v56 }
 0x210   : > { %5529 = vmatprep.subr.bf16.mxu1 %v5925_v9 }
 0x212   : > { %2151 = vmatmul.mubr.bf16.gmra.mrb[24].mxu1 %v5897_v6 }
 0x213   : > { %4938 = vmatprep.mubr.msk.bf16.mxu1 %vm2045_vm5, %v5898_v50 }
 0x21a   : > { %2159 = vmatmul.mubr.bf16.gmra.mrb[28].mxu1 %v5900_v38 }
 0x21b   : > { %4971 = vmatprep.mubr.msk.bf16.mxu1 %vm2045_vm5, %v5903_v34 }
 0x222   : > { %2313 = vmatmul.mubr.bf16.vlgmr.msra.gmra.mrb[32].mxu1 %v5901_v43 }
 0x223   : > { %4972 = vmatprep.mubr.msk.bf16.mxu1 %vm2045_vm5, %v5904_v32  ;;  %5530 = vmatpush3.bf16.msra.mxu1 %v5925_v9 }
 0x224   : > { %5531 = vmatprep.subr.bf16.mxu1 %v5926_v15 }
 0x227   : > { %5532 = vmatpush3.bf16.msra.mxu1 %v5926_v15 }
 0x228   : > { %5533 = vmatprep.subr.bf16.mxu1 %v5927_v47 }
 0x22a   : > { %2321 = vmatmul.mubr.bf16.gmra.mrb[36].mxu1 %v5906_v41 }
 0x22b   : > { %4973 = vmatprep.mubr.msk.bf16.mxu1 %vm2045_vm5, %v5907_v12  ;;  %5534 = vmatpush3.bf16.msra.mxu1 %v5927_v47  ;;  %v5936_v47 = vld [vmem:[%s7696_s4 + $0x54] sm:$0xff]  }
 0x22c   : > { %5535 = vmatprep.subr.bf16.mxu1 %v5928_v19 }
 0x22f   : > { %5536 = vmatpush3.bf16.msra.mxu1 %v5928_v19 }
 0x230   : > { %5537 = vmatprep.subr.bf16.mxu1 %v5929_v48 }
 0x232   : > { %2329 = vmatmul.mubr.bf16.gmra.mrb[40].mxu1 %v5909_v31 }
 0x233   : > { %4974 = vmatprep.mubr.msk.bf16.mxu1 %vm2045_vm5, %v5910_v4  ;;  %5538 = vmatpush3.bf16.msra.mxu1 %v5929_v48 }
 0x234   : > { %5539 = vmatprep.subr.bf16.mxu1 %v5930_v49 }
 0x237   : > { %5540 = vmatpush3.bf16.msra.mxu1 %v5930_v49 }
 0x238   : > { %5541 = vmatprep.subr.bf16.mxu1 %v5931_v51 }
 0x23a   : > { %2337 = vmatmul.mubr.bf16.gmra.mrb[44].mxu1 %v5912_v37 }
 0x23b   : > { %4975 = vmatprep.mubr.msk.bf16.mxu1 %vm2045_vm5, %v5913_v1  ;;  %5542 = vmatpush3.bf16.msra.mxu1 %v5931_v51  ;;  %v5937_v51 = vld [vmem:[%s7696_s4 + $0x5c] sm:$0xff]  }
 0x23c   : > { %5854 = vmatprep.subr.msk.bf16.mxu1 %vm1613_vm4, %v5932_v52 }
 0x23f   : > { %5544 = vmatpush3.bf16.msra.mxu1 %v2487_v13 }
 0x240   : > { %5561 = vmatprep.subr.bf16.mxu1 %v5933_v14 }
 0x242   : > { %2345 = vmatmul.mubr.bf16.gmra.mrb[48].mxu1 %v5915_v2  ;;  %v5934_v2 = vld [vmem:[%s7696_s4 + $0x44] sm:$0xff]  }
 0x243   : > { %4976 = vmatprep.mubr.msk.bf16.mxu1 %vm2045_vm5, %v5916_v8 }
 0x24a   : > { %2353 = vmatmul.mubr.bf16.gmra.mrb[52].mxu1 %v5918_v40 }
 0x24b   : > { %4977 = vmatprep.mubr.msk.bf16.mxu1 %vm2045_vm5, %v5919_v42 }
 0x252   : > { %2361 = vmatmul.mubr.bf16.gmra.mrb[56].mxu1 %v5921_v5  ;;  %v5935_v5 = vld [vmem:[%s7696_s4 + $0x4c] sm:$0xff]  }
 0x253   : > { %4978 = vmatprep.mubr.msk.bf16.mxu1 %vm2045_vm5, %v5922_v11 }
 0x25a   : > { %2369 = vmatmul.mubr.bf16.gmra.mrb[60].mxu1 %v5924_v45 }
 0x2b5   : > { %v2104_v53 = vpop.f32.mrb[0].mxu1 }
 0x2b6   : > { %v2106_v54 = vpop.f32.mrb[1].mxu1 }
 0x2b7   : > { %v2107_v20 = vpop.f32.mrb[2].mxu1  ;;  %v5938_v54 = vld [vmem:[%s7696_s4 + $0x64] sm:$0xff]  }
 0x2b8   : > { %v2109_v60 = vpop.f32.mrb[3].mxu1 }
 0x2bd   : > { %v2112_v21 = vpop.f32.mrb[4].mxu1 }
 0x2be   : > { %v2114_v61 = vpop.f32.mrb[5].mxu1 }
 0x2bf   : > { %v2115_v62 = vpop.f32.mrb[6].mxu1  ;;  %v5939_v61 = vld [vmem:[%s7696_s4 + $0x6c] sm:$0xff]  }
 0x2c0   : > { %v2117_v63 = vpop.f32.mrb[7].mxu1 }
 0x2c5   : > { %v2120_v0 = vpop.f32.mrb[8].mxu1 }
 0x2c6   : > { %v2122_v26 = vpop.f32.mrb[9].mxu1 }
 0x2c7   : > { %v2123_v27 = vpop.f32.mrb[10].mxu1 }
 0x2c8   : > { %v2125_v28 = vpop.f32.mrb[11].mxu1 }
 0x2cd   : > { %v6902_v33 = vpop.f32.mrb[12].mxu1 }
 0x2ce   : > { %v2130_v46 = vpop.f32.mrb[13].mxu1 }
 0x2cf   : > { %v2131_v24 = vpop.f32.mrb[14].mxu1 }
 0x2d0   : > { %v2133_v25 = vpop.f32.mrb[15].mxu1 }
 0x2d5   : > { %v6904_v55 = vpop.f32.mrb[16].mxu1 }
 0x2d6   : > { %v2138_v29 = vpop.f32.mrb[17].mxu1 }
 0x2d7   : > { %v6906_v35 = vpop.f32.mrb[18].mxu1 }
 0x2d8   : > { %v2141_v36 = vpop.f32.mrb[19].mxu1 }
 0x2dd   : > { %v6908_v56 = vpop.f32.mrb[20].mxu1 }
 0x2de   : > { %v2146_v57 = vpop.f32.mrb[21].mxu1 }
 0x2df   : > { %v6910_v58 = vpop.f32.mrb[22].mxu1 }
 0x2e0   : > { %v2149_v3 = vpop.f32.mrb[23].mxu1 }
 0x2e5   : > { %v6912_v7 = vpop.f32.mrb[24].mxu1 }
 0x2e6   : > { %v2154_v39 = vpop.f32.mrb[25].mxu1 }
 0x2e7   : > { %v6914_v16 = vpop.f32.mrb[26].mxu1 }
 0x2e8   : > { %v2157_v18 = vpop.f32.mrb[27].mxu1 }
 0x2ed   : > { %v6916_v17 = vpop.f32.mrb[28].mxu1 }
 0x2ee   : > { %v2162_v22 = vpop.f32.mrb[29].mxu1 }
 0x2ef   : > { %v6918_v10 = vpop.f32.mrb[30].mxu1 }
 0x2f0   : > { %v2165_v23 = vpop.f32.mrb[31].mxu1 }
 0x2f5   : > { %v2314_v44 = vpop.f32.mrb[32].mxu1 }
 0x2f6   : > { %v2377_v30 = vmax.f32 %v2104_v53, %v2314_v44  ;;  %v2316_v6 = vpop.f32.mrb[33].mxu1 }
 0x2f7   : > { %v2317_v50 = vpop.f32.mrb[34].mxu1 }
 0x2f8   : > { %v2378_v38 = vmax.f32 %v2107_v20, %v2317_v50  ;;  %v2319_v34 = vpop.f32.mrb[35].mxu1 }
 0x2f9   : > { %v5949_v34 = vld [vmem:[%s7697_s5 + $0x64] ss:$8 sps:$4 sm:$0xff]  }
 0x2fa   : > { %v6920_v43 = vpack.c.bf16 %v2378_v38, %v2377_v30 }
 0x2fc   : > { %5545 = vmatprep.mubr.msk.bf16.mxu1 %vm2461_vm6, %v6920_v43 }
 0x2fd   : > { %v2322_v32 = vpop.f32.mrb[36].mxu1 }
 0x2fe   : > { %v2379_v41 = vmax.f32 %v2112_v21, %v2322_v32  ;;  %v2324_v12 = vpop.f32.mrb[37].mxu1  ;;  %v5950_v32 = vld [vmem:[%s7697_s5 + $0x74] ss:$8 sps:$4 sm:$0x3f]  }
 0x2ff   : > { %v2325_v31 = vpop.f32.mrb[38].mxu1 }
 0x300   : > { %v2380_v4 = vmax.f32 %v2115_v62, %v2325_v31  ;;  %v2327_v37 = vpop.f32.mrb[39].mxu1  ;;  %v5955_v31 = vld [vmem:[%s7697_s5 + $0x4] ss:$8 sps:$4 sm:$0xff]  }
 0x302   : > { %v6924_v1 = vpack.c.bf16 %v2380_v4, %v2379_v41  ;;  %v5952_v41 = vld [vmem:[%s7697_s5 + $0x70] ss:$8 sps:$4 sm:$0x3f]  }
 0x303   : > { %v2904_v12 = vsel %vm700_vm0, %v5952_v41, 0 }
 0x304   : > { %5546 = vmatmul.mubr.msk.bf16.vlgmr.msra.gmra.mrb[64].mxu1 %vm2461_vm6, %v6924_v1 }
 0x305   : > { %v2330_v8 = vpop.f32.mrb[40].mxu1  ;;  %5562 = vmatpush3.bf16.msra.mxu1 %v5933_v14 }
 0x306   : > { %v2381_v40 = vmax.f32 %v2120_v0, %v2330_v8  ;;  %v2332_v42 = vpop.f32.mrb[41].mxu1  ;;  %5563 = vmatprep.subr.bf16.mxu1 %v5934_v2 }
 0x307   : > { %v2333_v11 = vpop.f32.mrb[42].mxu1 }
 0x308   : > { %v2382_v45 = vmax.f32 %v2123_v27, %v2333_v11  ;;  %v2335_v9 = vpop.f32.mrb[43].mxu1  ;;  %v5940_v27 = vld [vmem:[%s7696_s4 + $0x74] ss:$0 sps:$4 sm:$0xff]  }
 0x309   : > { %5564 = vmatpush3.bf16.msra.mxu1 %v5934_v2 }
 0x30a   : > { %v2410_v15 = vpack.c.bf16 %v2382_v45, %v2381_v40  ;;  %5565 = vmatprep.subr.bf16.mxu1 %v5935_v5 }
 0x30c   : > { %5549 = vmatprep.mubr.msk.bf16.mxu1 %vm2461_vm6, %v2410_v15 }
 0x30d   : > { %v2338_v19 = vpop.f32.mrb[44].mxu1  ;;  %5566 = vmatpush3.bf16.msra.mxu1 %v5935_v5 }
 0x30e   : > { %v2383_v48 = vmax.f32 %v6902_v33, %v2338_v19  ;;  %v2340_v49 = vpop.f32.mrb[45].mxu1  ;;  %5567 = vmatprep.subr.bf16.mxu1 %v5936_v47 }
 0x30f   : > { %v2341_v52 = vpop.f32.mrb[46].mxu1 }
 0x310   : > { %v2384_v13 = vmax.f32 %v2131_v24, %v2341_v52  ;;  %v2343_v14 = vpop.f32.mrb[47].mxu1  ;;  %v2648_v24 = vsel %vm1613_vm4, %v5940_v27, 0 }
 0x311   : > { %5568 = vmatpush3.bf16.msra.mxu1 %v5936_v47 }
 0x312   : > { %v2411_v53 = vpack.c.bf16 %v2384_v13, %v2383_v48  ;;  %5569 = vmatprep.subr.bf16.mxu1 %v5937_v51 }
 0x314   : > { %5550 = vmatmul.mubr.msk.bf16.gmra.mrb[68].mxu1 %vm2461_vm6, %v2411_v53 }
 0x315   : > { %v2346_v20 = vpop.f32.mrb[48].mxu1  ;;  %5570 = vmatpush3.bf16.msra.mxu1 %v5937_v51 }
 0x316   : > { %v2385_v60 = vmax.f32 %v6904_v55, %v2346_v20  ;;  %v2348_v21 = vpop.f32.mrb[49].mxu1  ;;  %5571 = vmatprep.subr.bf16.mxu1 %v5938_v54 }
 0x317   : > { %v2349_v62 = vpop.f32.mrb[50].mxu1 }
 0x318   : > { %v2386_v63 = vmax.f32 %v6906_v35, %v2349_v62  ;;  %v2351_v0 = vpop.f32.mrb[51].mxu1 }
 0x319   : > { %5572 = vmatpush3.bf16.msra.mxu1 %v5938_v54 }
 0x31a   : > { %v2412_v26 = vpack.c.bf16 %v2386_v63, %v2385_v60  ;;  %5573 = vmatprep.subr.bf16.mxu1 %v5939_v61 }
 0x31c   : > { %5553 = vmatprep.mubr.msk.bf16.mxu1 %vm2461_vm6, %v2412_v26 }
 0x31d   : > { %v2354_v28 = vpop.f32.mrb[52].mxu1  ;;  %5574 = vmatpush3.bf16.msra.mxu1 %v5939_v61 }
 0x31e   : > { %v2387_v33 = vmax.f32 %v6908_v56, %v2354_v28  ;;  %v2356_v46 = vpop.f32.mrb[53].mxu1  ;;  %5855 = vmatprep.subr.msk.bf16.mxu1 %vm1613_vm4, %v5940_v27 }
 0x31f   : > { %v2357_v25 = vpop.f32.mrb[54].mxu1 }
 0x320   : > { %v2388_v55 = vmax.f32 %v6910_v58, %v2357_v25  ;;  %v2359_v29 = vpop.f32.mrb[55].mxu1 }
 0x321   : > { %5576 = vmatpush3.bf16.msra.mxu1 %v2648_v24 }
 0x322   : > { %v2413_v35 = vpack.c.bf16 %v2388_v55, %v2387_v33 }
 0x324   : > { %5554 = vmatmul.mubr.msk.bf16.gmra.mrb[72].mxu1 %vm2461_vm6, %v2413_v35 }
 0x325   : > { %v2362_v36 = vpop.f32.mrb[56].mxu1 }
 0x326   : > { %v2389_v57 = vmax.f32 %v6912_v7, %v2362_v36  ;;  %v2364_v3 = vpop.f32.mrb[57].mxu1  ;;  %v5941_v7 = vld [vmem:[%s7697_s5 + $0x40] ss:$8 sps:$4 sm:$0xff]  }
 0x327   : > { %v2365_v39 = vpop.f32.mrb[58].mxu1 }
 0x328   : > { %v2390_v56 = vmax.f32 %v6914_v16, %v2365_v39  ;;  %v2367_v18 = vpop.f32.mrb[59].mxu1  ;;  %v5943_v16 = vld [vmem:[%s7697_s5 + $0x44] ss:$8 sps:$4 sm:$0xff]  }
 0x329   : > { %2909 = vmatprep.subr.bf16.mxu1 %v5943_v16 }
 0x32a   : > { %v2414_v22 = vpack.c.bf16 %v2390_v56, %v2389_v57 }
 0x32c   : > { %5557 = vmatprep.mubr.msk.bf16.mxu1 %vm2461_vm6, %v2414_v22 }
 0x32d   : > { %v2370_v23 = vpop.f32.mrb[60].mxu1 }
 0x32e   : > { %v2391_v44 = vmax.f32 %v6916_v17, %v2370_v23  ;;  %v2372_v58 = vpop.f32.mrb[61].mxu1  ;;  %v5946_v17 = vld [vmem:[%s7697_s5 + $0x54] ss:$8 sps:$4 sm:$0xff]  }
 0x32f   : > { %v2373_v30 = vpop.f32.mrb[62].mxu1 }
 0x330   : > { %v2392_v6 = vmax.f32 %v6918_v10, %v2373_v30  ;;  %v2375_v50 = vpop.f32.mrb[63].mxu1  ;;  %v5944_v10 = vld [vmem:[%s7697_s5 + $0x50] ss:$8 sps:$4 sm:$0xff]  }
 0x332   : > { %v2415_v38 = vpack.c.bf16 %v2392_v6, %v2391_v44 }
 0x334   : > { %5558 = vmatmul.mubr.msk.bf16.gmra.mrb[76].mxu1 %vm2461_vm6, %v2415_v38 }
 0x335   : > { %5577 = vmatprep.mubr.msk.bf16.mxu1 %vm2461_vm6, %v6920_v43  ;;  %v5947_v43 = vld [vmem:[%s7697_s5 + $0x60] ss:$8 sps:$4 sm:$0xff]  }
 0x33c   : > { %5578 = vmatmul.mubr.msk.bf16.vlgmr.msra.gmra.mrb[80].mxu1 %vm2461_vm6, %v6924_v1 }
 0x33d   : > { %5581 = vmatprep.mubr.msk.bf16.mxu1 %vm2461_vm6, %v2410_v15  ;;  %2910 = vmatpush1.bf16.msra.mxu1 %v5941_v7 }
 0x33e   : > { %2911 = vmatprep.subr.bf16.mxu1 %v5946_v17 }
 0x341   : > { %2912 = vmatpush1.bf16.msra.mxu1 %v5944_v10 }
 0x342   : > { %2913 = vmatprep.subr.bf16.mxu1 %v5949_v34  ;;  %v5953_v34 = vld [vmem:[%s7697_s5] ss:$8 sps:$4 sm:$0xff]  }
 0x344   : > { %5582 = vmatmul.mubr.msk.bf16.gmra.mrb[84].mxu1 %vm2461_vm6, %v2411_v53 }
 0x345   : > { %5585 = vmatprep.mubr.msk.bf16.mxu1 %vm2461_vm6, %v2412_v26  ;;  %2914 = vmatpush1.bf16.msra.mxu1 %v5947_v43 }
 0x346   : > { %5042 = vmatprep.subr.msk.bf16.mxu1 %vm700_vm0, %v5950_v32 }
 0x349   : > { %2916 = vmatpush1.bf16.msra.mxu1 %v2904_v12 }
 0x34a   : > { %3038 = vmatprep.subr.bf16.mxu1 %v5955_v31  ;;  %v5958_v31 = vld [vmem:[%s7697_s5 + $0x14] ss:$8 sps:$4 sm:$0xff]  }
 0x34c   : > { %5586 = vmatmul.mubr.msk.bf16.gmra.mrb[88].mxu1 %vm2461_vm6, %v2413_v35 }
 0x34d   : > { %5589 = vmatprep.mubr.msk.bf16.mxu1 %vm2461_vm6, %v2414_v22 }
 0x354   : > { %5590 = vmatmul.mubr.msk.bf16.gmra.mrb[92].mxu1 %vm2461_vm6, %v2415_v38 }
 0x355   : > { %2941 = vmatprep.mubr.bf16.mxu1 %v6067_v59 }
 0x3d7   : > { %v5547_v4 = vpop.f32.mrb[64].mxu1 }
 0x3d8   : > { %v2523_v37 = vpop.f32.mrb[65].mxu1 }
 0x3d9   : > { %v5548_v1 = vpop.f32.mrb[66].mxu1 }
 0x3da   : > { %v2526_v2 = vpop.f32.mrb[67].mxu1 }
 0x3e7   : > { %v7006_v8 = vpop.f32.mrb[68].mxu1 }
 0x3e8   : > { %v7008_v40 = vpop.f32.mrb[69].mxu1 }
 0x3e9   : > { %v7010_v42 = vpop.f32.mrb[70].mxu1 }
 0x3ea   : > { %v7012_v5 = vpop.f32.mrb[71].mxu1 }
 0x3f7   : > { %v7014_v11 = vpop.f32.mrb[72].mxu1 }
 0x3f8   : > { %v7016_v45 = vpop.f32.mrb[73].mxu1 }
 0x3f9   : > { %v7018_v9 = vpop.f32.mrb[74].mxu1 }
 0x3fa   : > { %v7020_v15 = vpop.f32.mrb[75].mxu1 }
 0x407   : > { %v7022_v47 = vpop.f32.mrb[76].mxu1 }
 0x408   : > { %v7024_v19 = vpop.f32.mrb[77].mxu1 }
 0x409   : > { %v7026_v48 = vpop.f32.mrb[78].mxu1 }
 0x40a   : > { %v7028_v49 = vpop.f32.mrb[79].mxu1 }
 0x40f   : > { %v5579_v51 = vpop.f32.mrb[80].mxu1 }
 0x410   : > { %v2749_v52 = vmax.f32 %v5547_v4, %v5579_v51  ;;  %v2684_v13 = vpop.f32.mrb[81].mxu1  ;;  %v5964_v4 = vld [vmem:[%s7697_s5 + $0x30] ss:$8 sps:$4 sm:$0x3f]  }
 0x411   : > { %v2747_v14 = vmax.f32 %v2523_v37, %v2684_v13  ;;  %v5580_v53 = vpop.f32.mrb[82].mxu1 }
 0x412   : > { %v7030_v54 = vmax.f32 %v2749_v52, 0.0  ;;  %v2750_v20 = vmax.f32 %v5548_v1, %v5580_v53  ;;  %v2687_v60 = vpop.f32.mrb[83].mxu1 }
 0x413   : > { %v7032_v21 = vmax.f32 %v2747_v14, 0.0  ;;  %v2748_v61 = vmax.f32 %v2526_v2, %v2687_v60  ;;  %v3033_v60 = vsel %vm700_vm0, %v5964_v4, 0 }
 0x414   : > { %v2810_v62 = vrot.slane %v7030_v54, 1  ;;  %v3114_v63 = vrot.slane %v7030_v54, 2  ;;  %v3304_v26 = vrot.slane %v7030_v54, 3  ;;  %v3494_v27 = vrot.slane %v7030_v54, 4 }
 0x415   : > { %v2787_v0 = vpack.c.bf16 %v7030_v54, %v7032_v21  ;;  %v2766_v28 = vmax.f32 %v2750_v20, 0.0  ;;  %v2764_v33 = vmax.f32 %v2748_v61, 0.0  ;;  %v2807_v46 = vrot.slane %v7032_v21, 1  ;;  %v5961_v20 = vld [vmem:[%s7697_s5 + $0x24] ss:$8 sps:$4 sm:$0xff]  }
 0x416   : > { %v3111_v24 = vrot.slane %v7032_v21, 2  ;;  %v3301_v25 = vrot.slane %v7032_v21, 3  ;;  %v3491_v55 = vrot.slane %v7032_v21, 4  ;;  %v5974_v54 = vld [vmem:[%s7697_s5 + $0xb4] ss:$8 sps:$4 sm:$0x3f]  }
 0x417   : > { %v5583_v29 = vpop.f32.mrb[84].mxu1  ;;  %v2811_v35 = vrot.slane %v2766_v28, 1  ;;  %v3115_v36 = vrot.slane %v2766_v28, 2  ;;  %v3305_v57 = vrot.slane %v2766_v28, 3  ;;  %v3495_v3 = vrot.slane %v2766_v28, 4 }
 0x418   : > { %v2700_v39 = vpop.f32.mrb[85].mxu1  ;;  %v2808_v56 = vrot.slane %v2764_v33, 1  ;;  %v3112_v18 = vrot.slane %v2764_v33, 2  ;;  %v3302_v22 = vrot.slane %v2764_v33, 3  ;;  %v3492_v23 = vrot.slane %v2764_v33, 4 }
 0x419   : > { %v5584_v44 = vpop.f32.mrb[86].mxu1  ;;  %v2812_v58 = vsel %vm554_vm1, %v2810_v62, %v2811_v35  ;;  %v7046_v30 = vsel %vm700_vm0, %v3114_v63, %v3115_v36  ;;  %v7049_v6 = vsel %vm1312_vm3, %v3304_v26, %v3305_v57  ;;  %v7052_v50 = vsel %vm1613_vm4, %v3494_v27, %v3495_v3  ;;  %v5959_v36 = vld [vmem:[%s7697_s5 + $0x20] ss:$8 sps:$4 sm:$0xff]   ;;  %v5976_v21 = vld [vmem:[%s7697_s5 + $0xb0] ss:$8 sps:$4 sm:$0x3f]  }
 0x41a   : > { %v2703_v38 = vpop.f32.mrb[87].mxu1  ;;  %v2809_v7 = vsel %vm554_vm1, %v2807_v46, %v2808_v56  ;;  %v7056_v16 = vsel %vm700_vm0, %v3111_v24, %v3112_v18  ;;  %v7059_v17 = vsel %vm1312_vm3, %v3301_v25, %v3302_v22  ;;  %v7062_v10 = vsel %vm1613_vm4, %v3491_v55, %v3492_v23 }
 0x41b   : > { %v2848_v43 = vpack.c.bf16 %v2812_v58, %v2809_v7  ;;  %v3152_v32 = vpack.c.bf16 %v7046_v30, %v7056_v16  ;;  %v3342_v41 = vpack.c.bf16 %v7049_v6, %v7059_v17  ;;  %v3532_v12 = vpack.c.bf16 %v7052_v50, %v7062_v10  ;;  %v5986_v30 = vld [vmem:[%s7697_s5 + $0xf4] ss:$8 sps:$4 sm:$0x3f]   ;;  %v5988_v16 = vld [vmem:[%s7697_s5 + $0xf0] ss:$8 sps:$4 sm:$0x3f]  }
 0x41c   : > { %v2753_v37 = vmax.f32 %v7006_v8, %v5583_v29  ;;  %v2751_v1 = vmax.f32 %v7008_v40, %v2700_v39  ;;  %v2754_v2 = vmax.f32 %v7010_v42, %v5584_v44  ;;  %v2752_v51 = vmax.f32 %v7012_v5, %v2703_v38  ;;  %v5956_v8 = vld [vmem:[%s7697_s5 + $0x10] ss:$8 sps:$4 sm:$0xff]   ;;  %v5962_v39 = vld [vmem:[%s7697_s5 + $0x34] ss:$8 sps:$4 sm:$0x3f]  }
 0x41d   : > { %5043 = vmatmul.mubr.msk.bf16.vlgmr.msra.gmra.mrb[96].mxu1 %vm2890_vm7, %v2848_v43  ;;  %v5998_v6 = vld [vmem:[%s7697_s5 + $0x134] ss:$8 sps:$4 sm:$0x3f]   ;;  %v6000_v17 = vld [vmem:[%s7697_s5 + $0x130] ss:$8 sps:$4 sm:$0x3f]   ;;  %v3683_v50 = vlaneseq }
 0x41e   : > { %v7084_v52 = vmax.f32 %v2754_v2, 0.0  ;;  %v7086_v13 = vmax.f32 %v2752_v51, 0.0  ;;  %2951 = vmatprep.mubr.bf16.mxu1 %v6067_v59  ;;  %3039 = vmatpush1.bf16.msra.mxu1 %v5953_v34  ;;  %v7092_v53 = vmax.f32 %v2753_v37, 0.0  ;;  %v7094_v40 = vmax.f32 %v2751_v1, 0.0 }
 0x41f   : > { %v5587_v14 = vpop.f32.mrb[88].mxu1  ;;  %3040 = vmatprep.subr.bf16.mxu1 %v5958_v31  ;;  %v3684_v10 = vshrl.u32 %v3683_v50, 7 }
 0x420   : > { %v2757_v42 = vmax.f32 %v7014_v11, %v5587_v14  ;;  %v2716_v5 = vpop.f32.mrb[89].mxu1  ;;  %v2817_v61 = vrot.slane %v7084_v52, 1  ;;  %v3121_v62 = vrot.slane %v7084_v52, 2  ;;  %v3311_v63 = vrot.slane %v7084_v52, 3 }
 0x421   : > { %v3501_v26 = vrot.slane %v7084_v52, 4  ;;  %v5588_v27 = vpop.f32.mrb[90].mxu1  ;;  %v2814_v28 = vrot.slane %v7086_v13, 1  ;;  %v3118_v11 = vrot.slane %v7086_v13, 2  ;;  %v3308_v33 = vrot.slane %v7086_v13, 3 }
 0x422   : > { %v3498_v46 = vrot.slane %v7086_v13, 4  ;;  %v2719_v24 = vpop.f32.mrb[91].mxu1  ;;  %v7109_v25 = vmax.f32 %v2757_v42, 0.0  ;;  %v2755_v55 = vmax.f32 %v7016_v45, %v2716_v5  ;;  %v2758_v29 = vmax.f32 %v7018_v9, %v5588_v27  ;;  %3041 = vmatpush1.bf16.msra.mxu1 %v5956_v8  ;;  %v5967_v27 = vld [vmem:[%s7697_s5 + $0x84] ss:$8 sps:$4 sm:$0xff]  }
 0x423   : > { %v2756_v35 = vmax.f32 %v7020_v15, %v2719_v24  ;;  %v2813_v57 = vrot.slane %v7094_v40, 1  ;;  %v2816_v3 = vrot.slane %v7092_v53, 1  ;;  %3042 = vmatprep.subr.bf16.mxu1 %v5961_v20  ;;  %v2788_v45 = vpack.c.bf16 %v7092_v53, %v7094_v40 }
 0x424   : > { %v3117_v9 = vrot.slane %v7094_v40, 2  ;;  %v7125_v15 = vmax.f32 %v2755_v55, 0.0  ;;  %v7127_v56 = vmax.f32 %v2758_v29, 0.0  ;;  %v2822_v22 = vrot.slane %v7109_v25, 1 }
 0x425   : > { %v7129_v18 = vmax.f32 %v2756_v35, 0.0  ;;  %v2815_v23 = vsel %vm554_vm1, %v2813_v57, %v2814_v28  ;;  %v2818_v44 = vsel %vm554_vm1, %v2816_v3, %v2817_v61  ;;  %v3120_v38 = vrot.slane %v7092_v53, 2 }
 0x426   : > { %v7135_v58 = vsel %vm700_vm0, %v3117_v9, %v3118_v11  ;;  %v2823_v7 = vrot.slane %v7127_v56, 1  ;;  %v3127_v34 = vrot.slane %v7127_v56, 2  ;;  %v3317_v43 = vrot.slane %v7127_v56, 3  ;;  %3043 = vmatpush1.bf16.msra.mxu1 %v5959_v36 }
 0x427   : > { %v3507_v31 = vrot.slane %v7127_v56, 4  ;;  %v5591_v4 = vpop.f32.mrb[92].mxu1  ;;  %v2820_v37 = vrot.slane %v7129_v18, 1  ;;  %v3124_v1 = vrot.slane %v7129_v18, 2  ;;  %v3314_v2 = vrot.slane %v7129_v18, 3  ;;  %5055 = vmatprep.subr.msk.bf16.mxu1 %vm700_vm0, %v5962_v39 }
 0x428   : > { %v3504_v51 = vrot.slane %v7129_v18, 4  ;;  %v2732_v14 = vpop.f32.mrb[93].mxu1  ;;  %v2849_v8 = vpack.c.bf16 %v2818_v44, %v2815_v23  ;;  %v2761_v42 = vmax.f32 %v7022_v47, %v5591_v4  ;;  %v2819_v61 = vrot.slane %v7125_v15, 1 }
 0x429   : > { %v2759_v5 = vmax.f32 %v7024_v19, %v2732_v14  ;;  %v5592_v20 = vpop.f32.mrb[94].mxu1  ;;  %v2824_v24 = vsel %vm554_vm1, %v2822_v22, %v2823_v7  ;;  %v2789_v55 = vpack.c.bf16 %v7109_v25, %v7125_v15  ;;  %v7158_v29 = vsel %vm700_vm0, %v3120_v38, %v3121_v62 }
 0x42a   : > { %v2762_v28 = vmax.f32 %v7026_v48, %v5592_v20  ;;  %v2735_v11 = vpop.f32.mrb[95].mxu1  ;;  %5044 = vmatmul.mubr.msk.bf16.gmra.mrb[100].mxu1 %vm2890_vm7, %v2849_v8  ;;  %v7161_v47 = vmax.f32 %v2761_v42, 0.0  ;;  %v2821_v36 = vsel %vm554_vm1, %v2819_v61, %v2820_v37  ;;  %v3153_v62 = vpack.c.bf16 %v7158_v29, %v7135_v58  ;;  %v5989_v58 = vld [vmem:[%s7697_s5 + $0x100] ss:$8 sps:$4 sm:$0xff]   ;;  %v5994_v29 = vld [vmem:[%s7697_s5 + $0x114] ss:$8 sps:$4 sm:$0xff]  }
 0x42b   : > { %v7163_v19 = vmax.f32 %v2759_v5, 0.0  ;;  %v2760_v35 = vmax.f32 %v7028_v49, %v2735_v11  ;;  %2961 = vmatprep.mubr.bf16.mxu1 %v6067_v59  ;;  %v2850_v57 = vpack.c.bf16 %v2824_v24, %v2821_v36  ;;  %3045 = vmatpush1.bf16.msra.mxu1 %v3033_v60  ;;  %v3123_v3 = vrot.slane %v7125_v15, 2 }
 0x42c   : > { %v7167_v48 = vmax.f32 %v2762_v28, 0.0  ;;  %v2828_v22 = vrot.slane %v7161_v47, 1  ;;  %3212 = vmatprep.subr.bf16.mxu1 %v5967_v27  ;;  %v3126_v5 = vrot.slane %v7109_v25, 2  ;;  %v3132_v27 = vrot.slane %v7161_v47, 2 }
 0x42d   : > { %v2776_v39 = vmax.f32 %v2760_v35, 0.0  ;;  %v2825_v9 = vrot.slane %v7163_v19, 1  ;;  %v2790_v49 = vpack.c.bf16 %v7161_v47, %v7163_v19  ;;  %v7183_v42 = vsel %vm700_vm0, %v3123_v3, %v3124_v1 }
 0x42e   : > { %v2829_v23 = vrot.slane %v7167_v48, 1  ;;  %v3133_v44 = vrot.slane %v7167_v48, 2  ;;  %v3323_v60 = vrot.slane %v7167_v48, 3  ;;  %v3513_v38 = vrot.slane %v7167_v48, 4 }
 0x42f   : > { %v2826_v7 = vrot.slane %v2776_v39, 1  ;;  %v3130_v4 = vrot.slane %v2776_v39, 2  ;;  %v3320_v37 = vrot.slane %v2776_v39, 3  ;;  %v3510_v14 = vrot.slane %v2776_v39, 4 }
 0x430   : > { %v2830_v8 = vsel %vm554_vm1, %v2828_v22, %v2829_v23  ;;  %v3129_v20 = vrot.slane %v7163_v19, 2  ;;  %v3307_v28 = vrot.slane %v7094_v40, 3  ;;  %v3310_v11 = vrot.slane %v7092_v53, 3 }
 0x431   : > { %v2827_v61 = vsel %vm554_vm1, %v2825_v9, %v2826_v7  ;;  %v7192_v35 = vsel %vm700_vm0, %v3126_v5, %v3127_v34  ;;  %v3313_v1 = vrot.slane %v7125_v15, 3  ;;  %v7202_v3 = vsel %vm700_vm0, %v3132_v27, %v3133_v44 }
 0x432   : > { %v2851_v24 = vpack.c.bf16 %v2830_v8, %v2827_v61  ;;  %v7195_v36 = vsel %vm700_vm0, %v3129_v20, %v3130_v4  ;;  %5045 = vmatmul.mubr.msk.bf16.gmra.mrb[104].mxu1 %vm2890_vm7, %v2850_v57  ;;  %v3154_v48 = vpack.c.bf16 %v7192_v35, %v7183_v42  ;;  %v7207_v39 = vsel %vm1312_vm3, %v3307_v28, %v3308_v33 }
 0x433   : > { %v7212_v34 = vsel %vm1312_vm3, %v3310_v11, %v3311_v63  ;;  %2971 = vmatprep.mubr.bf16.mxu1 %v6067_v59  ;;  %v3155_v57 = vpack.c.bf16 %v7202_v3, %v7195_v36  ;;  %v7220_v22 = vsel %vm1312_vm3, %v3313_v1, %v3314_v2  ;;  %v3316_v23 = vrot.slane %v7109_v25, 3  ;;  %v5979_v1 = vld [vmem:[%s7697_s5 + $0xc4] ss:$8 sps:$4 sm:$0xff]  }
 0x434   : > { %v3343_v9 = vpack.c.bf16 %v7212_v34, %v7207_v39  ;;  %v3319_v33 = vrot.slane %v7163_v19, 3  ;;  %v3322_v44 = vrot.slane %v7161_v47, 3  ;;  %v3497_v63 = vrot.slane %v7094_v40, 4  ;;  %v5982_v40 = vld [vmem:[%s7697_s5 + $0xd4] ss:$8 sps:$4 sm:$0xff]  }
 0x435   : > { %v3500_v7 = vrot.slane %v7092_v53, 4  ;;  %v7230_v4 = vsel %vm1312_vm3, %v3316_v23, %v3317_v43  ;;  %v3503_v8 = vrot.slane %v7125_v15, 4  ;;  %v3506_v2 = vrot.slane %v7109_v25, 4  ;;  %v5977_v53 = vld [vmem:[%s7697_s5 + $0xc0] ss:$8 sps:$4 sm:$0xff]  }
 0x436   : > { %v3509_v5 = vrot.slane %v7163_v19, 4  ;;  %v3344_v20 = vpack.c.bf16 %v7230_v4, %v7220_v22  ;;  %v7238_v61 = vsel %vm1312_vm3, %v3319_v33, %v3320_v37  ;;  %v7241_v27 = vsel %vm1312_vm3, %v3322_v44, %v3323_v60  ;;  %v5980_v25 = vld [vmem:[%s7697_s5 + $0xd0] ss:$8 sps:$4 sm:$0xff]   ;;  %v5983_v15 = vld [vmem:[%s7697_s5 + $0xe0] ss:$8 sps:$4 sm:$0xff]  }
 0x437   : > { %v7246_v43 = vsel %vm1613_vm4, %v3497_v63, %v3498_v46  ;;  %v3345_v28 = vpack.c.bf16 %v7241_v27, %v7238_v61  ;;  %v7253_v11 = vsel %vm1613_vm4, %v3500_v7, %v3501_v26  ;;  %v7258_v37 = vsel %vm1613_vm4, %v3503_v8, %v3504_v51  ;;  %v5970_v51 = vld [vmem:[%s7697_s5 + $0x94] ss:$8 sps:$4 sm:$0xff]   ;;  %v5997_v19 = vld [vmem:[%s7697_s5 + $0x124] ss:$8 sps:$4 sm:$0xff]  }
 0x438   : > { %v7263_v13 = vsel %vm1613_vm4, %v3506_v2, %v3507_v31  ;;  %v3533_v46 = vpack.c.bf16 %v7253_v11, %v7246_v43  ;;  %v7270_v52 = vsel %vm1613_vm4, %v3509_v5, %v3510_v14  ;;  %v3512_v26 = vrot.slane %v7161_v47, 4  ;;  %v5965_v31 = vld [vmem:[%s7697_s5 + $0x80] ss:$8 sps:$4 sm:$0xff]   ;;  %v5973_v14 = vld [vmem:[%s7697_s5 + $0xa4] ss:$8 sps:$4 sm:$0xff]  }
 0x439   : > { %v3534_v60 = vpack.c.bf16 %v7263_v13, %v7258_v37  ;;  %v5992_v47 = vld [vmem:[%s7697_s5 + $0x110] ss:$8 sps:$4 sm:$0xff]   ;;  %v3689_v42 = vsub.s32 1, %v3684_v10 }
 0x43a   : > { %5046 = vmatmul.mubr.msk.bf16.gmra.mrb[108].mxu1 %vm2890_vm7, %v2851_v24  ;;  %v7275_v18 = vsel %vm1613_vm4, %v3512_v26, %v3513_v38  ;;  %v5968_v38 = vld [vmem:[%s7697_s5 + $0x90] ss:$8 sps:$4 sm:$0xff]   ;;  %v5971_v24 = vld [vmem:[%s7697_s5 + $0xa0] ss:$8 sps:$4 sm:$0xff]  }
 0x43b   : > { %3070 = vmatprep.mubr.bf16.mxu1 %v6067_v59  ;;  %v3535_v56 = vpack.c.bf16 %v7275_v18, %v7270_v52 }
 0x442   : > { %5056 = vmatmul.mubr.msk.bf16.vlgmr.msra.gmra.mrb[96].mxu1 %vm2890_vm7, %v2787_v0  ;;  %v3207_v0 = vsel %vm700_vm0, %v5976_v21, 0 }
 0x443   : > { %3080 = vmatprep.mubr.bf16.mxu1 %v6067_v59  ;;  %3213 = vmatpush1.bf16.msra.mxu1 %v5965_v31 }
 0x444   : > { %3214 = vmatprep.subr.bf16.mxu1 %v5970_v51 }
 0x447   : > { %3215 = vmatpush1.bf16.msra.mxu1 %v5968_v38 }
 0x448   : > { %3216 = vmatprep.subr.bf16.mxu1 %v5973_v14 }
 0x44a   : > { %5057 = vmatmul.mubr.msk.bf16.gmra.mrb[100].mxu1 %vm2890_vm7, %v2788_v45  ;;  %v5985_v45 = vld [vmem:[%s7697_s5 + $0xe4] ss:$8 sps:$4 sm:$0xff]  }
 0x44b   : > { %3090 = vmatprep.mubr.bf16.mxu1 %v6067_v59  ;;  %3217 = vmatpush1.bf16.msra.mxu1 %v5971_v24 }
 0x44c   : > { %5076 = vmatprep.subr.msk.bf16.mxu1 %vm700_vm0, %v5974_v54 }
 0x44f   : > { %3219 = vmatpush1.bf16.msra.mxu1 %v3207_v0 }
 0x450   : > { %3402 = vmatprep.subr.bf16.mxu1 %v5979_v1 }
 0x452   : > { %5058 = vmatmul.mubr.msk.bf16.gmra.mrb[104].mxu1 %vm2890_vm7, %v2789_v55  ;;  %v5991_v55 = vld [vmem:[%s7697_s5 + $0x104] ss:$8 sps:$4 sm:$0xff]  }
 0x453   : > { %3100 = vmatprep.mubr.bf16.mxu1 %v6067_v59 }
 0x45a   : > { %5059 = vmatmul.mubr.msk.bf16.gmra.mrb[108].mxu1 %vm2890_vm7, %v2790_v49  ;;  %v3681_v49 = vld [vmem:[%s7698_s6] sm:$0x3] }
 0x45b   : > { %3244 = vmatprep.mubr.bf16.mxu1 %v6067_v59 }
 0x462   : > { %5077 = vmatmul.mubr.msk.bf16.vlgmr.msra.gmra.mrb[96].mxu1 %vm2890_vm7, %v3152_v32  ;;  %v3397_v32 = vsel %vm700_vm0, %v5988_v16, 0  ;;  %v6004_v16 = vld [vmem:[%s7699_s7 + $0x18] sm:$0xff]  }
 0x463   : > { %3254 = vmatprep.mubr.bf16.mxu1 %v6067_v59  ;;  %3403 = vmatpush1.bf16.msra.mxu1 %v5977_v53 }
 0x464   : > { %3404 = vmatprep.subr.bf16.mxu1 %v5982_v40  ;;  %v6001_v40 = vld [vmem:[%s7699_s7] sm:$0xff]  }
 0x467   : > { %3405 = vmatpush1.bf16.msra.mxu1 %v5980_v25  ;;  %v6002_v25 = vld [vmem:[%s7699_s7 + $0x8] sm:$0xff]  }
 0x468   : > { %3406 = vmatprep.subr.bf16.mxu1 %v5985_v45  ;;  %v6003_v45 = vld [vmem:[%s7699_s7 + $0x10] sm:$0xff]  }
 0x46a   : > { %5078 = vmatmul.mubr.msk.bf16.gmra.mrb[100].mxu1 %vm2890_vm7, %v3153_v62  ;;  %v5995_v62 = vld [vmem:[%s7697_s5 + $0x120] ss:$8 sps:$4 sm:$0xff]  }
 0x46b   : > { %3264 = vmatprep.mubr.bf16.mxu1 %v6067_v59  ;;  %3407 = vmatpush1.bf16.msra.mxu1 %v5983_v15  ;;  %v6005_v15 = vld [vmem:[%s7700_s8] sm:$0xff]  }
 0x46c   : > { %5097 = vmatprep.subr.msk.bf16.mxu1 %vm700_vm0, %v5986_v30  ;;  %v6006_v30 = vld [vmem:[%s7700_s8 + $0x8] sm:$0xff]  }
 0x46f   : > { %3409 = vmatpush1.bf16.msra.mxu1 %v3397_v32  ;;  %v6007_v32 = vld [vmem:[%s7700_s8 + $0x10] sm:$0xff]  }
 0x470   : > { %3592 = vmatprep.subr.bf16.mxu1 %v5991_v55  ;;  %v6008_v55 = vld [vmem:[%s7700_s8 + $0x18] sm:$0xff]  }
 0x472   : > { %5079 = vmatmul.mubr.msk.bf16.gmra.mrb[104].mxu1 %vm2890_vm7, %v3154_v48  ;;  %v3690_v48 = vrot.slane %v3681_v49, %v3689_v42 }
 0x473   : > { %3274 = vmatprep.mubr.bf16.mxu1 %v6067_v59 }
 0x47a   : > { %5080 = vmatmul.mubr.msk.bf16.gmra.mrb[108].mxu1 %vm2890_vm7, %v3155_v57 }
 0x47b   : > { %3434 = vmatprep.mubr.bf16.mxu1 %v6067_v59 }
 0x482   : > { %5098 = vmatmul.mubr.msk.bf16.vlgmr.msra.gmra.mrb[96].mxu1 %vm2890_vm7, %v3342_v41  ;;  %v3587_v41 = vsel %vm700_vm0, %v6000_v17, 0 }
 0x483   : > { %3444 = vmatprep.mubr.bf16.mxu1 %v6067_v59  ;;  %3593 = vmatpush1.bf16.msra.mxu1 %v5989_v58  ;;  %v6009_v58 = vld [vmem:[%s7700_s8 + $0x20] sm:$0xff]  }
 0x484   : > { %3594 = vmatprep.subr.bf16.mxu1 %v5994_v29  ;;  %v6010_v29 = vld [vmem:[%s7700_s8 + $0x28] sm:$0xff]  }
 0x487   : > { %3595 = vmatpush1.bf16.msra.mxu1 %v5992_v47  ;;  %v6011_v47 = vld [vmem:[%s7700_s8 + $0x30] sm:$0xff]  }
 0x488   : > { %3596 = vmatprep.subr.bf16.mxu1 %v5997_v19  ;;  %v6012_v19 = vld [vmem:[%s7700_s8 + $0x38] sm:$0xff]  }
 0x48a   : > { %5099 = vmatmul.mubr.msk.bf16.gmra.mrb[100].mxu1 %vm2890_vm7, %v3343_v9 }
 0x48b   : > { %3454 = vmatprep.mubr.bf16.mxu1 %v6067_v59  ;;  %3597 = vmatpush1.bf16.msra.mxu1 %v5995_v62  ;;  %v6013_v62 = vld [vmem:[%s7700_s8 + $0x40] sm:$0xff]  }
 0x48c   : > { %5118 = vmatprep.subr.msk.bf16.mxu1 %vm700_vm0, %v5998_v6  ;;  %v6014_v6 = vld [vmem:[%s7700_s8 + $0x48] sm:$0xff]  }
 0x48f   : > { %3599 = vmatpush1.bf16.msra.mxu1 %v3587_v41 }
 0x492   : > { %5100 = vmatmul.mubr.msk.bf16.gmra.mrb[104].mxu1 %vm2890_vm7, %v3344_v20 }
 0x493   : > { %3464 = vmatprep.mubr.bf16.mxu1 %v6067_v59 }
 0x49a   : > { %5101 = vmatmul.mubr.msk.bf16.gmra.mrb[108].mxu1 %vm2890_vm7, %v3345_v28 }
 0x49b   : > { %3624 = vmatprep.mubr.bf16.mxu1 %v6067_v59 }
 0x4a2   : > { %5119 = vmatmul.mubr.msk.bf16.vlgmr.msra.gmra.mrb[96].mxu1 %vm2890_vm7, %v3532_v12  ;;  %v3685_v12 = vsub.s32 0, %v3684_v10 }
 0x4a3   : > { %3634 = vmatprep.mubr.bf16.mxu1 %v6067_v59 }
 0x4a4   : > { %v3686_v35 = vrot.slane %v3681_v49, %v3685_v12 }
 0x4aa   : > { %5120 = vmatmul.mubr.msk.bf16.gmra.mrb[100].mxu1 %vm2890_vm7, %v3533_v46 }
 0x4ab   : > { %3644 = vmatprep.mubr.bf16.mxu1 %v6067_v59 }
 0x4b2   : > { %5121 = vmatmul.mubr.msk.bf16.gmra.mrb[104].mxu1 %vm2890_vm7, %v3534_v60 }
 0x4b3   : > { %3654 = vmatprep.mubr.bf16.mxu1 %v6067_v59 }
 0x4ba   : > { %5122 = vmatmul.mubr.msk.bf16.gmra.mrb[108].mxu1 %vm2890_vm7, %v3535_v56 }
 0x575   : > { %v3626_v36 = vpop.f32.mrb[96].mxu1 }
 0x576   : > { %v3628_v3 = vpop.f32.mrb[97].mxu1  ;;  %v3693_v34 = vadd.f32 %v3686_v35, %v3626_v36 }
 0x577   : > { %v3630_v39 = vpop.f32.mrb[98].mxu1  ;;  %v3694_v22 = vadd.f32 %v3690_v48, %v3628_v3 }
 0x578   : > { %v3695_v57 = vadd.f32 %v3686_v35, %v3630_v39  ;;  %v3632_v9 = vpop.f32.mrb[99].mxu1 }
 0x579   : > { %v3696_v23 = vadd.f32 %v3690_v48, %v3632_v9 }
 0x57a   : > { %v3713_v33 = vpack.c.bf16 %v3695_v57, %v3693_v34 }
 0x57b   : > { %v3714_v44 = vpack.c.bf16 %v3696_v23, %v3694_v22 }
 0x57d   : > { %v3636_v63 = vpop.f32.mrb[100].mxu1  ;;  %3737 = vmatprep.subr.bf16.mxu0 %v3714_v44 }
 0x57e   : > { %v3638_v7 = vpop.f32.mrb[101].mxu1  ;;  %3738 = vmatpush1.bf16.msra.mxu0 %v3713_v33  ;;  %v3697_v8 = vadd.f32 %v3686_v35, %v3636_v63 }
 0x57f   : > { %v3640_v4 = vpop.f32.mrb[102].mxu1  ;;  %v3698_v20 = vadd.f32 %v3690_v48, %v3638_v7 }
 0x580   : > { %v3699_v2 = vadd.f32 %v3686_v35, %v3640_v4  ;;  %v3642_v5 = vpop.f32.mrb[103].mxu1 }
 0x581   : > { %v3700_v61 = vadd.f32 %v3690_v48, %v3642_v5  ;;  %v6016_v5 = vld [vmem:[%s7700_s8 + $0x58] sm:$0xff]  }
 0x582   : > { %v3715_v27 = vpack.c.bf16 %v3699_v2, %v3697_v8 }
 0x583   : > { %v3716_v43 = vpack.c.bf16 %v3700_v61, %v3698_v20 }
 0x585   : > { %v3646_v28 = vpop.f32.mrb[104].mxu1  ;;  %3739 = vmatprep.subr.bf16.mxu0 %v3716_v43 }
 0x586   : > { %v3648_v11 = vpop.f32.mrb[105].mxu1  ;;  %3740 = vmatpush1.bf16.msra.mxu0 %v3715_v27  ;;  %v3701_v13 = vadd.f32 %v3686_v35, %v3646_v28 }
 0x587   : > { %v3650_v37 = vpop.f32.mrb[106].mxu1  ;;  %v3702_v52 = vadd.f32 %v3690_v48, %v3648_v11  ;;  %v6017_v11 = vld [vmem:[%s7700_s8 + $0x60] sm:$0xff]  }
 0x588   : > { %v3703_v46 = vadd.f32 %v3686_v35, %v3650_v37  ;;  %v3652_v60 = vpop.f32.mrb[107].mxu1  ;;  %v6018_v37 = vld [vmem:[%s7700_s8 + $0x68] sm:$0xff]  }
 0x589   : > { %v3704_v26 = vadd.f32 %v3690_v48, %v3652_v60  ;;  %v6021_v60 = vld [vmem:[%s7700_s8 + $0x80] sm:$0xff]  }
 0x58a   : > { %v3717_v18 = vpack.c.bf16 %v3703_v46, %v3701_v13  ;;  %v6019_v13 = vld [vmem:[%s7700_s8 + $0x70] sm:$0xff]   ;;  %v6020_v46 = vld [vmem:[%s7700_s8 + $0x78] sm:$0xff]  }
 0x58b   : > { %v3718_v56 = vpack.c.bf16 %v3704_v26, %v3702_v52  ;;  %v6022_v52 = vld [vmem:[%s7700_s8 + $0x88] sm:$0xff]   ;;  %v6023_v26 = vld [vmem:[%s7700_s8 + $0x90] sm:$0xff]  }
 0x58d   : > { %v3656_v31 = vpop.f32.mrb[108].mxu1  ;;  %3741 = vmatprep.subr.bf16.mxu0 %v3718_v56 }
 0x58e   : > { %v3658_v51 = vpop.f32.mrb[109].mxu1  ;;  %3742 = vmatpush1.bf16.msra.mxu0 %v3717_v18  ;;  %v3705_v14 = vadd.f32 %v3686_v35, %v3656_v31  ;;  %v6026_v31 = vld [vmem:[%s7702_s10 + $0x8] sm:$0xff]  }
 0x58f   : > { %v3660_v38 = vpop.f32.mrb[110].mxu1  ;;  %v3706_v21 = vadd.f32 %v3690_v48, %v3658_v51  ;;  %v6028_v51 = vld [vmem:[%s7702_s10 + $0x10] sm:$0xff]  }
 0x590   : > { %v3707_v24 = vadd.f32 %v3686_v35, %v3660_v38  ;;  %v3662_v54 = vpop.f32.mrb[111].mxu1  ;;  %v6030_v38 = vld [vmem:[%s7702_s10 + $0x18] sm:$0xff]  }
 0x591   : > { %v3708_v0 = vadd.f32 %v3690_v48, %v3662_v54 }
 0x592   : > { %v3719_v1 = vpack.c.bf16 %v3707_v24, %v3705_v14  ;;  %v6032_v14 = vld [vmem:[%s7702_s10 + $0x20] sm:$0xff]  }
 0x593   : > { %v3720_v53 = vpack.c.bf16 %v3708_v0, %v3706_v21 }
 0x595   : > { %3743 = vmatprep.subr.bf16.mxu0 %v3720_v53 }
 0x596   : > { %3744 = vmatpush1.bf16.msra.mxu0 %v3719_v1 }
 0x597   : > { %3811 = vmatprep.subr.bf16.mxu0 %v3714_v44  ;;  %v6015_v44 = vld [vmem:[%s7700_s8 + $0x50] sm:$0xff]  }
 0x599   : > { %5125 = vmatmul.mubr.msk.bf16.vlgmr.msra.gmra.mrb[24].mxu0 %vm2045_vm5, %v6001_v40 }
 0x59a   : > { %3812 = vmatpush1.bf16.msra.mxu0 %v3713_v33  ;;  %3779 = vmatprep.mubr.bf16.mxu0 %v6067_v59 }
 0x59b   : > { %3813 = vmatprep.subr.bf16.mxu0 %v3716_v43 }
 0x59e   : > { %3814 = vmatpush1.bf16.msra.mxu0 %v3715_v27 }
 0x59f   : > { %3815 = vmatprep.subr.bf16.mxu0 %v3718_v56  ;;  %v6068_v56 = vmov 0.0  }
 0x5a0   : > { %5623 = vmatprep.subr.bf16.mxu1 %v6068_v56  ;;  %5633 = vmatprep.mubr.msk.bf16.mxu1 %vm6069_vm9, %v6068_v56 }
 0x5a1   : > { %5126 = vmatmul.mubr.msk.bf16.gmra.mrb[28].mxu0 %vm2045_vm5, %v6002_v25 }
 0x5a2   : > { %3816 = vmatpush1.bf16.msra.mxu0 %v3717_v18  ;;  %3843 = vmatprep.mubr.bf16.mxu0 %v6067_v59  ;;  %v6024_v18 = vld [vmem:[%s7700_s8 + $0x98] sm:$0xff]  }
 0x5a3   : > { %3817 = vmatprep.subr.bf16.mxu0 %v3720_v53 }
 0x5a6   : > { %3818 = vmatpush1.bf16.msra.mxu0 %v3719_v1 }
 0x5a7   : > { %3963 = vmatprep.subr.bf16.mxu0 %v6067_v59 }
 0x5a9   : > { %5133 = vmatmul.mubr.msk.bf16.vlgmr.msra.gmra.mrb[32].mxu0 %vm2045_vm5, %v6003_v45 }
 0x5aa   : > { %3853 = vmatprep.mubr.bf16.mxu0 %v6067_v59  ;;  %3964 = vmatpush1.bf16.msra.mxu0 %v6005_v15 }
 0x5ab   : > { %3965 = vmatprep.subr.bf16.mxu0 %v6067_v59 }
 0x5ae   : > { %3966 = vmatpush1.bf16.msra.mxu0 %v6006_v30 }
 0x5af   : > { %3967 = vmatprep.subr.bf16.mxu0 %v6067_v59 }
 0x5b1   : > { %5134 = vmatmul.mubr.msk.bf16.gmra.mrb[36].mxu0 %vm2045_vm5, %v6004_v16 }
 0x5b2   : > { %3968 = vmatpush1.bf16.msra.mxu0 %v6007_v32 }
 0x5b3   : > { %3969 = vmatprep.subr.bf16.mxu0 %v6067_v59 }
 0x5b6   : > { %3970 = vmatpush1.bf16.msra.mxu0 %v6008_v55 }
 0x5b7   : > { %3971 = vmatprep.subr.bf16.mxu0 %v6067_v59 }
 0x5ba   : > { %3972 = vmatpush1.bf16.msra.mxu0 %v6009_v58 }
 0x5bb   : > { %3973 = vmatprep.subr.bf16.mxu0 %v6067_v59 }
 0x5be   : > { %3974 = vmatpush1.bf16.msra.mxu0 %v6010_v29 }
 0x5bf   : > { %3975 = vmatprep.subr.bf16.mxu0 %v6067_v59 }
 0x5c2   : > { %3976 = vmatpush1.bf16.msra.mxu0 %v6011_v47 }
 0x5c3   : > { %3977 = vmatprep.subr.bf16.mxu0 %v6067_v59 }
 0x5c6   : > { %3978 = vmatpush1.bf16.msra.mxu0 %v6012_v19 }
 0x5c7   : > { %3979 = vmatprep.subr.bf16.mxu0 %v6067_v59 }
 0x5ca   : > { %3980 = vmatpush1.bf16.msra.mxu0 %v6013_v62 }
 0x5cb   : > { %3981 = vmatprep.subr.bf16.mxu0 %v6067_v59 }
 0x5ce   : > { %3982 = vmatpush1.bf16.msra.mxu0 %v6014_v6 }
 0x5cf   : > { %4093 = vmatprep.subr.bf16.mxu0 %v6067_v59 }
 0x66c   : > { %v3771_v17 = vpop.f32.mrb[24].mxu0 }
 0x66d   : > { %v3773_v41 = vpop.f32.mrb[25].mxu0 }
 0x66e   : > { %v3775_v50 = vpop.f32.mrb[26].mxu0 }
 0x66f   : > { %v3777_v10 = vpop.f32.mrb[27].mxu0 }
 0x674   : > { %v3781_v12 = vpop.f32.mrb[28].mxu0 }
 0x675   : > { %v3783_v49 = vpop.f32.mrb[29].mxu0 }
 0x676   : > { %v3785_v42 = vpop.f32.mrb[30].mxu0 }
 0x677   : > { %v3787_v35 = vpop.f32.mrb[31].mxu0 }
 0x67c   : > { %v3845_v36 = vpop.f32.mrb[32].mxu0 }
 0x67d   : > { %v3864_v48 = vmax.f32 %v3771_v17, %v3845_v36  ;;  %v3847_v3 = vpop.f32.mrb[33].mxu0  ;;  %v6027_v36 = vld [vmem:[%s7702_s10 + $0x28] sm:$0xff]  }
 0x67e   : > { %v3865_v39 = vmax.f32 %v3773_v41, %v3847_v3  ;;  %v3849_v34 = vpop.f32.mrb[34].mxu0  ;;  %v6031_v3 = vld [vmem:[%s7702_s10 + $0x38] sm:$0xff]  }
 0x67f   : > { %v3866_v57 = vmax.f32 %v3775_v50, %v3849_v34  ;;  %v3851_v9 = vpop.f32.mrb[35].mxu0  ;;  %v6034_v34 = vld [vmem:[%s7702_s10 + $0x48] sm:$0xff]  }
 0x680   : > { %v3867_v22 = vmax.f32 %v3777_v10, %v3851_v9 }
 0x681   : > { %v3892_v23 = vpack.c.bf16 %v3866_v57, %v3864_v48  ;;  %v6029_v48 = vld [vmem:[%s7702_s10 + $0x30] sm:$0xff]  }
 0x682   : > { %v3893_v33 = vpack.c.bf16 %v3867_v22, %v3865_v39  ;;  %v6033_v39 = vld [vmem:[%s7702_s10 + $0x40] sm:$0xff]  }
 0x684   : > { %v3855_v63 = vpop.f32.mrb[36].mxu0  ;;  %5145 = vmatprep.mubr.msk.bf16.mxu0 %vm3956_vm8, %v3893_v33 }
 0x685   : > { %v3868_v7 = vmax.f32 %v3781_v12, %v3855_v63  ;;  %v3857_v4 = vpop.f32.mrb[37].mxu0  ;;  %3996 = vmatmul.mubr.bf16.vlgmr.msra.gmra.mrb[40].mxu0 %v3892_v23  ;;  %v5222_v63 = vld [vmem:[%s7701_s9 + $0xc] sm:$0xf] }
 0x686   : > { %v3869_v8 = vmax.f32 %v3783_v49, %v3857_v4  ;;  %4094 = vmatpush1.bf16.msra.mxu0 %v6015_v44  ;;  %v3859_v2 = vpop.f32.mrb[38].mxu0 }
 0x687   : > { %v3870_v20 = vmax.f32 %v3785_v42, %v3859_v2  ;;  %v3861_v61 = vpop.f32.mrb[39].mxu0  ;;  %4095 = vmatprep.subr.bf16.mxu0 %v6067_v59  ;;  %v4150_v42 = vld [vmem:[%s7701_s9] sm:$0xf] }
 0x688   : > { %v3871_v27 = vmax.f32 %v3787_v35, %v3861_v61  ;;  %v5180_v35 = vld [vmem:[%s7701_s9 + $0x4] sm:$0xf]  ;;  %v5204_v61 = vld [vmem:[%s7701_s9 + $0x8] sm:$0xf] }
 0x689   : > { %v3894_v43 = vpack.c.bf16 %v3870_v20, %v3868_v7  ;;  %v6038_v20 = vld [vmem:[%s7702_s10 + $0x80] sm:$0xff]  }
 0x68a   : > { %v3895_v28 = vpack.c.bf16 %v3871_v27, %v3869_v8  ;;  %4096 = vmatpush1.bf16.msra.mxu0 %v6016_v5  ;;  %v6036_v8 = vld [vmem:[%s7702_s10 + $0x78] sm:$0xff]   ;;  %v6035_v27 = vld [vmem:[%s7702_s10 + $0x50] sm:$0xff]  }
 0x68b   : > { %4097 = vmatprep.subr.bf16.mxu0 %v6067_v59 }
 0x68c   : > { %5146 = vmatprep.mubr.msk.bf16.mxu0 %vm3956_vm8, %v3895_v28 }
 0x68d   : > { %4004 = vmatmul.mubr.bf16.gmra.mrb[44].mxu0 %v3894_v43 }
 0x68e   : > { %4098 = vmatpush1.bf16.msra.mxu0 %v6017_v11  ;;  %5177 = vmatprep.mubr.msk.bf16.mxu0 %vm3956_vm8, %v3893_v33  ;;  %v6039_v11 = vld [vmem:[%s7702_s10 + $0x60] sm:$0xff]  }
 0x68f   : > { %4099 = vmatprep.subr.bf16.mxu0 %v6067_v59 }
 0x692   : > { %4100 = vmatpush1.bf16.msra.mxu0 %v6018_v37  ;;  %v6041_v37 = vld [vmem:[%s7702_s10 + $0x68] sm:$0xff]  }
 0x693   : > { %4101 = vmatprep.subr.bf16.mxu0 %v6067_v59 }
 0x696   : > { %4102 = vmatpush1.bf16.msra.mxu0 %v6019_v13  ;;  %v6042_v13 = vld [vmem:[%s7702_s10 + $0x90] sm:$0xff]  }
 0x697   : > { %4103 = vmatprep.subr.bf16.mxu0 %v6067_v59 }
 0x69a   : > { %4104 = vmatpush1.bf16.msra.mxu0 %v6020_v46  ;;  %v6043_v46 = vld [vmem:[%s7702_s10 + $0x70] sm:$0xff]  }
 0x69b   : > { %4105 = vmatprep.subr.bf16.mxu0 %v6067_v59 }
 0x69e   : > { %4106 = vmatpush1.bf16.msra.mxu0 %v6021_v60  ;;  %v6044_v60 = vld [vmem:[%s7702_s10 + $0x98] sm:$0xff]  }
 0x69f   : > { %4107 = vmatprep.subr.bf16.mxu0 %v6067_v59 }
 0x6a2   : > { %4108 = vmatpush1.bf16.msra.mxu0 %v6022_v52 }
 0x6a3   : > { %4109 = vmatprep.subr.bf16.mxu0 %v6067_v59 }
 0x6a6   : > { %4110 = vmatpush1.bf16.msra.mxu0 %v6023_v26 }
 0x6a7   : > { %4111 = vmatprep.subr.bf16.mxu0 %v6067_v59  ;;  %v6025_v59 = vld [vmem:[%s7702_s10] sm:$0xff]  }
 0x6a8   : > { %5624 = vmatpush3.bf16.msra.mxu1 %v6025_v59 }
 0x6a9   : > { %5625 = vmatprep.subr.bf16.mxu1 %v6068_v56 }
 0x6aa   : > { %4112 = vmatpush1.bf16.msra.mxu0 %v6024_v18 }
 0x6ab   : > { %5593 = vmatprep.subr.bf16.mxu0 %v6068_v56 }
 0x6ac   : > { %5626 = vmatpush3.bf16.msra.mxu1 %v6026_v31 }
 0x6ad   : > { %4126 = vmatmul.mubr.bf16.vlgmr.msra.gmra.mrb[48].mxu0 %v3892_v23  ;;  %5627 = vmatprep.subr.bf16.mxu1 %v6068_v56 }
 0x6ae   : > { %5178 = vmatprep.mubr.msk.bf16.mxu0 %vm3956_vm8, %v3895_v28  ;;  %v6037_v28 = vld [vmem:[%s7702_s10 + $0x58] sm:$0xff]  }
 0x6b0   : > { %5628 = vmatpush3.bf16.msra.mxu1 %v6028_v51 }
 0x6b1   : > { %5629 = vmatprep.subr.bf16.mxu1 %v6068_v56 }
 0x6b4   : > { %5630 = vmatpush3.bf16.msra.mxu1 %v6030_v38 }
 0x6b5   : > { %4134 = vmatmul.mubr.bf16.gmra.mrb[52].mxu0 %v3894_v43  ;;  %5631 = vmatprep.subr.bf16.mxu1 %v6068_v56  ;;  %v6040_v43 = vld [vmem:[%s7702_s10 + $0x88] sm:$0xff]  }
 0x6b6   : > { %5597 = vmatprep.mubr.msk.bf16.mxu0 %vm6069_vm9, %v6068_v56 }
 0x6b8   : > { %5632 = vmatpush3.bf16.msra.mxu1 %v6032_v14 }
 0x6b9   : > { %5659 = vmatprep.subr.bf16.mxu1 %v6068_v56 }
 0x758   : > { %v3997_v24 = vpop.f32.mrb[40].mxu0 }
 0x759   : > { %v3999_v54 = vpop.f32.mrb[41].mxu0 }
 0x75a   : > { %v4000_v21 = vpop.f32.mrb[42].mxu0 }
 0x75b   : > { %v4002_v0 = vpop.f32.mrb[43].mxu0 }
 0x760   : > { %v4005_v1 = vpop.f32.mrb[44].mxu0 }
 0x761   : > { %v4007_v53 = vpop.f32.mrb[45].mxu0 }
 0x762   : > { %v4008_v40 = vpop.f32.mrb[46].mxu0 }
 0x763   : > { %v4010_v25 = vpop.f32.mrb[47].mxu0 }
 0x780   : > { %v4127_v45 = vpop.f32.mrb[48].mxu0 }
 0x781   : > { %v4142_v15 = vmax.f32 %v3997_v24, %v4127_v45  ;;  %v4129_v30 = vpop.f32.mrb[49].mxu0 }
 0x782   : > { %v4130_v16 = vpop.f32.mrb[50].mxu0 }
 0x783   : > { %v4143_v32 = vmax.f32 %v4000_v21, %v4130_v16  ;;  %v4132_v55 = vpop.f32.mrb[51].mxu0  ;;  %v4146_v58 = vmax.f32 %v4142_v15, 0.0  ;;  %v6045_v16 = vld [vmem:[%s7704_s12] sm:$0xff]  }
 0x785   : > { %v4147_v29 = vmax.f32 %v4143_v32, 0.0  ;;  %v6046_v32 = vld [vmem:[%s7704_s12 + $0x8] sm:$0x7f]  }
 0x786   : > { %v4710_v55 = vsel %vm554_vm1, %v6046_v32, 0 }
 0x787   : > { %v4151_v47 = vpack.c.bf16 %v4147_v29, %v4146_v58 }
 0x788   : > { %v4135_v19 = vpop.f32.mrb[52].mxu0 }
 0x789   : > { %v4144_v62 = vmax.f32 %v4005_v1, %v4135_v19  ;;  %v4137_v6 = vpop.f32.mrb[53].mxu0  ;;  %5594 = vmatpush3.bf16.msra.mxu0 %v4151_v47 }
 0x78a   : > { %v4138_v17 = vpop.f32.mrb[54].mxu0  ;;  %5595 = vmatprep.subr.bf16.mxu0 %v6068_v56 }
 0x78b   : > { %v4145_v41 = vmax.f32 %v4008_v40, %v4138_v17  ;;  %v4140_v50 = vpop.f32.mrb[55].mxu0  ;;  %v4148_v10 = vmax.f32 %v4144_v62, 0.0 }
 0x78d   : > { %v4149_v12 = vmax.f32 %v4145_v41, 0.0  ;;  %v5240_v41 = vld [vmem:[%s7703_s11] ss:$0 sm:$0xff] }
 0x78f   : > { %v4152_v49 = vpack.c.bf16 %v4149_v12, %v4148_v10 }
 0x791   : > { %5596 = vmatpush3.bf16.msra.mxu0 %v4152_v49 }
 0x792   : > { %5601 = vmatprep.subr.bf16.mxu0 %v6068_v56 }
 0x794   : > { %5598 = vmatmul.mubr.msk.bf16.vlgmr.msra.gmra.mrb[56].mxu0 %vm3956_vm8, %v4150_v42 }
 0x795   : > { %5602 = vmatpush3.bf16.msra.mxu0 %v4151_v47  ;;  %5605 = vmatprep.mubr.msk.bf16.mxu0 %vm6069_vm9, %v6068_v56 }
 0x796   : > { %5603 = vmatprep.subr.bf16.mxu0 %v6068_v56 }
 0x799   : > { %5604 = vmatpush3.bf16.msra.mxu0 %v4152_v49 }
 0x79a   : > { %5609 = vmatprep.subr.bf16.mxu0 %v6068_v56 }
 0x79c   : > { %5606 = vmatmul.mubr.msk.bf16.vlgmr.msra.gmra.mrb[60].mxu0 %vm3956_vm8, %v5180_v35  ;;  %v5241_v35 = vld [vmem:[%s7705_s13] ss:$0 sm:$0xff] }
 0x79d   : > { %5610 = vmatpush3.bf16.msra.mxu0 %v6027_v36  ;;  %5619 = vmatprep.mubr.msk.bf16.mxu0 %vm6069_vm9, %v6068_v56 }
 0x79e   : > { %5611 = vmatprep.subr.bf16.mxu0 %v6068_v56 }
 0x7a1   : > { %5612 = vmatpush3.bf16.msra.mxu0 %v6029_v48 }
 0x7a2   : > { %5613 = vmatprep.subr.bf16.mxu0 %v6068_v56 }
 0x7a5   : > { %5614 = vmatpush3.bf16.msra.mxu0 %v6031_v3 }
 0x7a6   : > { %5615 = vmatprep.subr.bf16.mxu0 %v6068_v56 }
 0x7a9   : > { %5616 = vmatpush3.bf16.msra.mxu0 %v6033_v39 }
 0x7aa   : > { %5617 = vmatprep.subr.bf16.mxu0 %v6068_v56 }
 0x7ad   : > { %5618 = vmatpush3.bf16.msra.mxu0 %v6034_v34 }
 0x7ae   : > { %5637 = vmatprep.subr.bf16.mxu0 %v6068_v56 }
 0x867   : > { %v4190_v57 = vpop.f32.mrb[56].mxu0 }
 0x868   : > { %v4206_v9 = vpack.c.bf16 %v4190_v57, %v4190_v57  ;;  %v5599_v22 = vpop.f32.mrb[57].mxu0 }
 0x869   : > { %v4193_v23 = vpop.f32.mrb[58].mxu0 }
 0x86a   : > { %5634 = vmatmul.mubr.msk.bf16.vlgmr.msra.gmra.mrb[112].mxu1 %vm4294_vm10, %v4206_v9  ;;  %v5600_v33 = vpop.f32.mrb[59].mxu0 }
 0x86b   : > { %5660 = vmatpush3.bf16.msra.mxu1 %v4151_v47  ;;  %5663 = vmatprep.mubr.msk.bf16.mxu1 %vm6069_vm9, %v6068_v56 }
 0x86c   : > { %5661 = vmatprep.subr.bf16.mxu1 %v6068_v56 }
 0x86f   : > { %5662 = vmatpush3.bf16.msra.mxu1 %v4152_v49  ;;  %v4246_v44 = vpop.f32.mrb[60].mxu0 }
 0x870   : > { %v4263_v7 = vpack.c.bf16 %v4246_v44, %v4246_v44  ;;  %v5607_v4 = vpop.f32.mrb[61].mxu0  ;;  %5667 = vmatprep.subr.bf16.mxu1 %v6068_v56 }
 0x871   : > { %v4249_v2 = vpop.f32.mrb[62].mxu0 }
 0x872   : > { %5620 = vmatmul.mubr.msk.bf16.vlgmr.msra.gmra.mrb[64].mxu0 %vm4294_vm10, %v4263_v7  ;;  %5664 = vmatmul.mubr.msk.bf16.vlgmr.msra.gmra.mrb[116].mxu1 %vm3956_vm8, %v5222_v63  ;;  %v5608_v5 = vpop.f32.mrb[63].mxu0 }
 0x873   : > { %5638 = vmatpush3.bf16.msra.mxu0 %v4151_v47  ;;  %5641 = vmatprep.mubr.msk.bf16.mxu0 %vm6069_vm9, %v6068_v56 }
 0x874   : > { %5639 = vmatprep.subr.bf16.mxu0 %v6068_v56  ;;  %5668 = vmatpush3.bf16.msra.mxu1 %v6036_v8 }
 0x875   : > { %5669 = vmatprep.subr.bf16.mxu1 %v6068_v56  ;;  %5677 = vmatprep.mubr.msk.bf16.mxu1 %vm6069_vm9, %v6068_v56 }
 0x877   : > { %5640 = vmatpush3.bf16.msra.mxu0 %v4152_v49 }
 0x878   : > { %5645 = vmatprep.subr.bf16.mxu0 %v6068_v56  ;;  %5670 = vmatpush3.bf16.msra.mxu1 %v6038_v20 }
 0x879   : > { %5671 = vmatprep.subr.bf16.mxu1 %v6068_v56 }
 0x87a   : > { %5642 = vmatmul.mubr.msk.bf16.vlgmr.msra.gmra.mrb[68].mxu0 %vm3956_vm8, %v5204_v61 }
 0x87b   : > { %5646 = vmatpush3.bf16.msra.mxu0 %v6035_v27  ;;  %5655 = vmatprep.mubr.msk.bf16.mxu0 %vm6069_vm9, %v6068_v56 }
 0x87c   : > { %5647 = vmatprep.subr.bf16.mxu0 %v6068_v56  ;;  %5672 = vmatpush3.bf16.msra.mxu1 %v6040_v43 }
 0x87d   : > { %5673 = vmatprep.subr.bf16.mxu1 %v6068_v56 }
 0x87f   : > { %5648 = vmatpush3.bf16.msra.mxu0 %v6037_v28 }
 0x880   : > { %5649 = vmatprep.subr.bf16.mxu0 %v6068_v56  ;;  %5674 = vmatpush3.bf16.msra.mxu1 %v6042_v13 }
 0x881   : > { %5675 = vmatprep.subr.bf16.mxu1 %v6068_v56 }
 0x883   : > { %5650 = vmatpush3.bf16.msra.mxu0 %v6039_v11 }
 0x884   : > { %5651 = vmatprep.subr.bf16.mxu0 %v6068_v56  ;;  %5676 = vmatpush3.bf16.msra.mxu1 %v6044_v60 }
 0x887   : > { %5652 = vmatpush3.bf16.msra.mxu0 %v6041_v37 }
 0x888   : > { %5653 = vmatprep.subr.bf16.mxu0 %v6068_v56 }
 0x88b   : > { %5654 = vmatpush3.bf16.msra.mxu0 %v6043_v46 }
 0x88c   : > { %5681 = vmatprep.subr.bf16.mxu0 %v6068_v56 }
 0x93d   : > { %v4405_v52 = vpop.f32.mrb[112].mxu1 }
 0x93e   : > { %v5635_v26 = vpop.f32.mrb[113].mxu1 }
 0x93f   : > { %v4408_v18 = vpop.f32.mrb[114].mxu1 }
 0x940   : > { %v5636_v59 = vpop.f32.mrb[115].mxu1 }
 0x945   : > { %v4332_v31 = vpop.f32.mrb[64].mxu0  ;;  %v4581_v51 = vpop.f32.mrb[116].mxu1 }
 0x946   : > { %v5621_v38 = vpop.f32.mrb[65].mxu0  ;;  %v4406_v14 = vadd.f32 %v4405_v52, %v4332_v31  ;;  %v4598_v24 = vpack.c.bf16 %v4581_v51, %v4581_v51  ;;  %v5665_v54 = vpop.f32.mrb[117].mxu1 }
 0x947   : > { %v4335_v21 = vpop.f32.mrb[66].mxu0  ;;  %v4584_v0 = vpop.f32.mrb[118].mxu1 }
 0x948   : > { %v5622_v1 = vpop.f32.mrb[67].mxu0  ;;  %5678 = vmatmul.mubr.msk.bf16.vlgmr.msra.gmra.mrb[120].mxu1 %vm4294_vm10, %v4598_v24  ;;  %v5666_v53 = vpop.f32.mrb[119].mxu1 }
 0x94d   : > { %v4450_v40 = vpop.f32.mrb[68].mxu0 }
 0x94e   : > { %v4467_v25 = vpack.c.bf16 %v4450_v40, %v4450_v40  ;;  %v5643_v45 = vpop.f32.mrb[69].mxu0 }
 0x94f   : > { %v4453_v15 = vpop.f32.mrb[70].mxu0 }
 0x950   : > { %5656 = vmatmul.mubr.msk.bf16.vlgmr.msra.gmra.mrb[72].mxu0 %vm4294_vm10, %v4467_v25  ;;  %v5644_v30 = vpop.f32.mrb[71].mxu0 }
 0x951   : > { %5685 = vmatprep.mubr.msk.bf16.mxu0 %vm6069_vm9, %v6068_v56  ;;  %5682 = vmatpush3.bf16.msra.mxu0 %v6045_v16 }
 0x952   : > { %5683 = vmatprep.subr.bf16.mxu0 %v6068_v56 }
 0x955   : > { %5684 = vmatpush3.bf16.msra.mxu0 %v4710_v55 }
 0xa1b   : > { %v4666_v58 = vpop.f32.mrb[120].mxu1 }
 0xa1c   : > { %v5679_v29 = vpop.f32.mrb[121].mxu1 }
 0xa1d   : > { %v4669_v47 = vpop.f32.mrb[122].mxu1 }
 0xa1e   : > { %v5680_v19 = vpop.f32.mrb[123].mxu1 }
 0xa23   : > { %v4535_v62 = vpop.f32.mrb[72].mxu0 }
 0xa24   : > { %v4541_v6 = vadd.f32 %v4535_v62, %v4406_v14  ;;  %v5657_v17 = vpop.f32.mrb[73].mxu0 }
 0xa25   : > { %v4538_v50 = vpop.f32.mrb[74].mxu0 }
 0xa26   : > { %v4672_v10 = vadd.f32 %v4666_v58, %v4541_v6  ;;  %v5658_v12 = vpop.f32.mrb[75].mxu0 }
 0xa28   : > { %v4680_v49 = vadd.f32 %v5240_v41, %v4672_v10 }
 0xa2a   : > { %v4681_v42 = vmax.f32 %v4680_v49, 0.0 }
 0xa2c   : > { %v4686_v56 = vpack.c.bf16 %v4681_v42, %v4681_v42 }
 0xa2e   : > { %5686 = vmatmul.mubr.msk.bf16.vlgmr.msra.gmra.mrb[76].mxu0 %vm4705_vm11, %v4686_v56 }
 0xb01   : > { %v4746_v36 = vpop.f32.mrb[76].mxu0 }
 0xb02   : > { %v4747_v48 = vadd.f32 %v5241_v35, %v4746_v36  ;;  %v5687_v3 = vpop.f32.mrb[77].mxu0 }
 0xb03   : > { %v4749_v39 = vpop.f32.mrb[78].mxu0 }
 0xb04   : > { %v5688_v34 = vpop.f32.mrb[79].mxu0  ;;  %v4753_v57 = vsel %vm4752_vm12, %v4747_v48, -inf }
 0xb05   : > { %4754 = vmax.xlane.f32.xlu0 %v4753_v57 }
 0xb92   : > { %v4755_v9 = vpop.xlane.xlu0 %4754 }
 0xb93   : > { %v4756_v22 = vsub.f32 %v4747_v48, %v4755_v9 }
 0xb95   : > { %v4757_v23 = vmul.f32 1.442695, %v4756_v22 }
 0xb97   : > { %6047 = vpow2.f32 %v4757_v23 }
 0xba1   : > { %v6048_v33 = vpop.eup %6047 }
 0xba2   : > { %v4759_v44 = vsel %vm4752_vm12, %v6048_v33, 0.0 }
 0xba3   : > { %4760 = vadd.xlane.f32.xlu0 %v4759_v44 }
 0xc30   : > { %v4761_v63 = vpop.xlane.xlu0 %4760 }
 0xc31   : > { %6049 = vlog2.f32 %v4761_v63 }
 0xc3b   : > { %v6050_v7 = vpop.eup %6049 }
 0xc3c   : > { %v4763_v4 = vmul.f32 0.6931472, %v6050_v7 }
 0xc3e   : > { %v4764_v8 = vsub.f32 %v4756_v22, %v4763_v4 }
 0xc40   : > { %4765 = vst.msk [vmem:[%s470_s19] sm:$0xff] %vm4752_vm12, %v4764_v8 }
 0xc41 PF: > { %s24_s29 = sadd.s32 1, %s6065_s29  }
 0xc42   : > { %p21_p5 = scmp.ge.s32.totalorder %s24_s29, 5  }
 0xc44   :  { %23 = sbr.rel (!%p21_p5) target bundleno = 1 (0x1), region = 125 }

</bundles_post_ra>
